<compile_context>
chip_gen: v5e
topology: v5e:2x2
jax: 0.10.0
libtpu: 0.0.40
codegen_flags: <defaults>
</compile_context>

<pallas_src>
import functools

import jax
import jax.numpy as jnp
from jax.experimental import pallas as pl
from jax.experimental.pallas import tpu as pltpu

_BN_EPS = 1e-5
_MATMUL_DTYPE = jnp.bfloat16   # MXU operand dtype (f32 accumulation everywhere)
_STORE_DTYPE = jnp.bfloat16    # HBM dtype of the inter-stage conv outputs


def _pick_row_tile(h, w, c, budget_bytes=4 * 1024 * 1024):
    """Largest even divisor of h whose (rows, W, C) f32 tile fits the budget."""
    best = 2
    for th in range(2, h + 1, 2):
        if h % th == 0 and th * w * c * 4 <= budget_bytes:
            best = th
    return best


def _vmem_limit(est_bytes):
    """Scoped-VMEM request: enough for the pipeline, capped for v7x (64 MiB)."""
    return int(min(48 * 1024 * 1024, max(16 * 1024 * 1024, 3 * int(est_bytes))))


# ----------------------------------------------------------------------------
# Kernel 1/2: 3x3 "same" conv (+ optional on-the-fly BN+ReLU of its input)
# ----------------------------------------------------------------------------
def _shift_cols(v, d):
    """s[:, j, :] = v[:, j + d, :], zero outside [0, W).  d in {-1, +1}."""
    z = jnp.zeros((v.shape[0], 1, v.shape[2]), v.dtype)
    if d > 0:
        return jnp.concatenate([v[:, d:, :], z], axis=1)
    return jnp.concatenate([z, v[:, : v.shape[1] + d, :]], axis=1)


def _conv3x3_kernel(x_ref, xt_ref, xb_ref, w_ref, scale_ref, shift_ref,
                    y_ref, st_ref, *, th, w_out, apply_act):
    """One (image, row-tile) step.

    x_ref    : (1, TH, W, Cin)   raw input rows of this tile
    xt_ref   : (1, 1,  W, Cin)   row above (clamped index; zeroed at i == 0)
    xb_ref   : (1, 1,  W, Cin)   row below (clamped index; zeroed at last i)
    w_ref    : (9, Cin, Cout)    per-tap weights, tap index = dy*3 + dx
    scale_ref: (1, Cin)          previous layer's BN scale (apply_act only)
    shift_ref: (1, Cin)          previous layer's BN shift (apply_act only)
    y_ref    : (1, TH, W, Cout)  raw (pre-BN) conv output, bf16
    st_ref   : (1, 1, 2, Cout)   per-tile [sum, sum of squares] (f32)
    """
    i = pl.program_id(1)
    n_i = pl.num_programs(1)
    cin = x_ref.shape[-1]
    cout = y_ref.shape[-1]

    if apply_act:                       # hoisted: read/broadcast once per tile
        scale = scale_ref[...]
        shift = shift_ref[...]

    def act(v):
        v = v.astype(jnp.float32)
        if apply_act:                   # previous conv_block's BN + ReLU
            v = jnp.maximum(v * scale + shift, 0.0)
        return v

    # Row window (TH+2, W, Cin); halo rows zeroed at the image border.
    top = act(xt_ref[0])
    top = jnp.where(i > 0, top, jnp.zeros_like(top))
    bot = act(xb_ref[0])
    bot = jnp.where(i < n_i - 1, bot, jnp.zeros_like(bot))
    win = jnp.concatenate([top, act(x_ref[0]), bot],
                          axis=0).astype(_MATMUL_DTYPE)

    # dx-shifted windows with the zero column padding folded in (dx = 0, 1, 2).
    wins = (_shift_cols(win, -1), win, _shift_cols(win, 1))

    # 9 accumulating MXU matmuls (K = Cin) straight from views; f32 accumulator.
    acc = jnp.zeros((th * w_out, cout), jnp.float32)
    for dy in range(3):
        for dx in range(3):
            lhs = wins[dx][dy:dy + th].reshape(th * w_out, cin)
            acc += jnp.dot(lhs, w_ref[dy * 3 + dx],
                           preferred_element_type=jnp.float32)

    # NOTE: the Conv2d bias is intentionally *not* added - the training-mode
    # BatchNorm that follows subtracts the batch mean, cancelling it exactly.
    y_ref[0] = acc.reshape(th, w_out, cout).astype(y_ref.dtype)

    s = jnp.sum(acc, axis=0, keepdims=True)                    # (1, Cout)
    ss = jnp.sum(acc * acc, axis=0, keepdims=True)             # (1, Cout)
    st_ref[0, 0] = jnp.concatenate([s, ss], axis=0)            # (2, Cout)


def _conv_pass(x, w_taps, scale_in, shift_in, *, th, apply_act):
    """3x3 'same' conv over NHWC x -> (raw bf16 conv output, per-tile stats)."""
    n, h, w, cin = x.shape
    cout = w_taps.shape[-1]
    n_i = h // th
    in_bytes = x.dtype.itemsize

    est = (2 * (th + 2) * w * cin * in_bytes       # input tile + halos (x2 buf)
           + 2 * th * w * cout * 2                 # bf16 output tile (x2 buf)
           + 9 * cin * cout * 2                    # weights
           + 4 * (th + 2) * w * cin                # f32 activated window
           + 3 * 2 * (th + 2) * w * cin            # three bf16 shifted windows
           + 2 * 4 * th * w * cout)                # f32 accumulator
    kernel = functools.partial(_conv3x3_kernel, th=th, w_out=w,
                               apply_act=apply_act)
    y, st = pl.pallas_call(
        kernel,
        out_shape=(jax.ShapeDtypeStruct((n, h, w, cout), _STORE_DTYPE),
                   jax.ShapeDtypeStruct((n, n_i, 2, cout), jnp.float32)),
        grid=(n, n_i),
        in_specs=[
            pl.BlockSpec((1, th, w, cin), lambda b, i: (b, i, 0, 0)),
            # 1-row halos above / below the tile (clamped at the image border,
            # zeroed in-kernel).
            pl.BlockSpec((1, 1, w, cin),
                         lambda b, i: (b, jnp.maximum(i * th - 1, 0), 0, 0)),
            pl.BlockSpec((1, 1, w, cin),
                         lambda b, i: (b, jnp.minimum((i + 1) * th, h - 1), 0, 0)),
            pl.BlockSpec((9, cin, cout), lambda b, i: (0, 0, 0)),
            pl.BlockSpec((1, cin), lambda b, i: (0, 0)),
            pl.BlockSpec((1, cin), lambda b, i: (0, 0)),
        ],
        out_specs=(
            pl.BlockSpec((1, th, w, cout), lambda b, i: (b, i, 0, 0)),
            pl.BlockSpec((1, 1, 2, cout), lambda b, i: (b, i, 0, 0)),
        ),
        compiler_params=pltpu.CompilerParams(
            dimension_semantics=("parallel", "parallel"),
            vmem_limit_bytes=_vmem_limit(est)),
    )(x, x, x, w_taps, scale_in, shift_in)
    return y, st


def _bn_scale_shift(stats, gamma, beta, count):
    """Fold training-mode BatchNorm (biased variance) into y*scale + shift."""
    # TODO(synk): E[y^2]-E[y]^2 in f32 can cancel for extreme weight scales;
    # switch to per-tile mean-centered partials if that regime matters.
    total = jnp.sum(stats, axis=(0, 1))                      # (2, C)
    mean = total[0] / count
    var = jnp.maximum(total[1] / count - mean * mean, 0.0)
    scale = gamma * jax.lax.rsqrt(var + _BN_EPS)
    shift = beta - mean * scale
    return scale.reshape(1, -1), shift.reshape(1, -1)


# ----------------------------------------------------------------------------
# Kernel 3: final BN + ReLU fused with the 2x2 / stride-2 max-pool
# ----------------------------------------------------------------------------
def _bn_relu_pool_kernel(y_ref, scale_ref, shift_ref, x_ref, p_ref, row_ref,
                         *, th, w_out):
    c = y_ref.shape[-1]
    scale = scale_ref[...]
    shift = shift_ref[...]
    a = jnp.maximum(y_ref[0].astype(jnp.float32) * scale + shift, 0.0)
    x_ref[0] = a.astype(x_ref.dtype)

    # 2x2 max-pool: row pairs on the cheap leading axis (in registers), then
    # two stride-2 column reads from a small VMEM scratch.
    ar = a.reshape(th // 2, 2, w_out, c)
    row_ref[...] = jnp.maximum(ar[:, 0], ar[:, 1])           # (TH/2, W, C)
    hw = w_out // 2
    p_ref[0] = jnp.maximum(row_ref[:, pl.ds(0, hw, stride=2), :],
                           row_ref[:, pl.ds(1, hw, stride=2), :])


def _bn_relu_pool(y, scale, shift, *, th):
    n, h, w, c = y.shape
    est = 2 * th * w * c * (y.dtype.itemsize + 4) + (th // 2) * w * c * 4
    kernel = functools.partial(_bn_relu_pool_kernel, th=th, w_out=w)
    x, p = pl.pallas_call(
        kernel,
        out_shape=(jax.ShapeDtypeStruct((n, h, w, c), jnp.float32),
                   jax.ShapeDtypeStruct((n, h // 2, w // 2, c), jnp.float32)),
        grid=(n, h // th),
        in_specs=[
            pl.BlockSpec((1, th, w, c), lambda b, i: (b, i, 0, 0)),
            pl.BlockSpec((1, c), lambda b, i: (0, 0)),
            pl.BlockSpec((1, c), lambda b, i: (0, 0)),
        ],
        out_specs=(
            pl.BlockSpec((1, th, w, c), lambda b, i: (b, i, 0, 0)),
            pl.BlockSpec((1, th // 2, w // 2, c), lambda b, i: (b, i, 0, 0)),
        ),
        scratch_shapes=[pltpu.VMEM((th // 2, w, c), jnp.float32)],
        compiler_params=pltpu.CompilerParams(
            dimension_semantics=("parallel", "parallel"),
            vmem_limit_bytes=_vmem_limit(est)),
    )(y, scale, shift)
    return x, p


# ----------------------------------------------------------------------------
# Parameter prep + public forward (NCHW in / NCHW out, like PyTorch)
# ----------------------------------------------------------------------------
def encoder_block_forward(x_nchw, params, *, row_tile=None):
    """Matches encoder_block.forward (training-mode BN). Returns (x, p), NCHW."""
    n, in_c, h, w = x_nchw.shape
    out_c = params["g1"].shape[0]
    assert h % 2 == 0 and w % 2 == 0, "MaxPool2d(2,2) needs even H and W"
    assert w % 8 == 0, "W must be a multiple of 8 (sublane tiling)"
    th = row_tile or _pick_row_tile(h, w, max(in_c, out_c))
    assert h % th == 0 and th % 2 == 0

    x = jnp.transpose(x_nchw, (0, 2, 3, 1)).astype(jnp.float32)   # NCHW -> NHWC

    # HWIO (3,3,Cin,Cout) -> (9, Cin, Cout) per-tap bf16 weights (tap = dy*3+dx).
    w1 = params["w1"].reshape(9, in_c, out_c).astype(_MATMUL_DTYPE)
    w2 = params["w2"].reshape(9, out_c, out_c).astype(_MATMUL_DTYPE)

    count = n * h * w
    no_scale = jnp.ones((1, in_c), jnp.float32)
    no_shift = jnp.zeros((1, in_c), jnp.float32)

    # conv_block 1: raw conv + per-tile stats; BN folded to (scale, shift).
    y1, st1 = _conv_pass(x, w1, no_scale, no_shift, th=th, apply_act=False)
    s1, b1 = _bn_scale_shift(st1, params["g1"], params["beta1"], count)
    # conv_block 2: previous BN+ReLU applied on the fly to the input tiles.
    y2, st2 = _conv_pass(y1, w2, s1, b1, th=th, apply_act=True)
    s2, b2 = _bn_scale_shift(st2, params["g2"], params["beta2"], count)
    # Final BN + ReLU fused with the 2x2 max-pool.
    xo, po = _bn_relu_pool(y2, s2, b2, th=th)

    xo = jnp.transpose(xo, (0, 3, 1, 2))
    po = jnp.transpose(po, (0, 3, 1, 2))
    return xo, po


def make_params(key, in_c, out_c):
    """Deterministic synthetic parameters (shapes match the PyTorch module).
    Weights are HWIO (== torch Conv2d weight.permute(2, 3, 1, 0))."""
    ks = jax.random.split(key, 8)
    return {
        # conv_block 1: Conv2d(in_c, out_c, 3, padding=1) + BN(out_c)
        "w1":    0.1 * jax.random.normal(ks[0], (3, 3, in_c, out_c), jnp.float32),
        "b1":    0.1 * jax.random.normal(ks[1], (out_c,), jnp.float32),
        "g1":    1.0 + 0.1 * jax.random.normal(ks[2], (out_c,), jnp.float32),
        "beta1": 0.1 * jax.random.normal(ks[3], (out_c,), jnp.float32),
        # conv_block 2: Conv2d(out_c, out_c, 3, padding=1) + BN(out_c)
        "w2":    0.1 * jax.random.normal(ks[4], (3, 3, out_c, out_c), jnp.float32),
        "b2":    0.1 * jax.random.normal(ks[5], (out_c,), jnp.float32),
        "g2":    1.0 + 0.1 * jax.random.normal(ks[6], (out_c,), jnp.float32),
        "beta2": 0.1 * jax.random.normal(ks[7], (out_c,), jnp.float32),
    }


def _reference_forward(x_nchw, params):
    """Pure-XLA reference of encoder_block.forward (sanity check only)."""
    def conv_bn_relu(x, w, b, gamma, beta):
        y = jax.lax.conv_general_dilated(
            x, w, window_strides=(1, 1), padding="SAME",
            dimension_numbers=("NCHW", "HWIO", "NCHW"),
            precision=jax.lax.Precision.HIGHEST)
        y = y + b[None, :, None, None]
        mean = jnp.mean(y, axis=(0, 2, 3), keepdims=True)
        var = jnp.mean((y - mean) ** 2, axis=(0, 2, 3), keepdims=True)
        y = (y - mean) * jax.lax.rsqrt(var + _BN_EPS)
        y = y * gamma[None, :, None, None] + beta[None, :, None, None]
        return jnp.maximum(y, 0.0)

    a = conv_bn_relu(x_nchw, params["w1"], params["b1"], params["g1"], params["beta1"])
    a = conv_bn_relu(a, params["w2"], params["b2"], params["g2"], params["beta2"])
    p = jax.lax.reduce_window(a, -jnp.inf, jax.lax.max,
                              (1, 1, 2, 2), (1, 1, 2, 2), "VALID")
    return a, p


if __name__ == "__main__":
    key = jax.random.PRNGKey(0)
    k_x, k_p = jax.random.split(key)

    N, in_c, out_c, H, W = 2, 4, 16, 16, 16
    x = jax.random.normal(k_x, (N, in_c, H, W), jnp.float32)   # NCHW, like PyTorch
    params = make_params(k_p, in_c, out_c)

    # row_tile=8 -> a (2, 2) grid, exercising the halo / multi-tile BN path.
    fwd = jax.jit(functools.partial(encoder_block_forward, row_tile=8))
    x_out, p_out = fwd(x, params)
    jax.block_until_ready((x_out, p_out))

    assert x_out.shape == (N, out_c, H, W)
    assert p_out.shape == (N, out_c, H // 2, W // 2)

    # Sanity check against a pure-XLA f32 reference of the PyTorch module
    # (bf16 MXU operands / bf16 intermediates -> loose-ish tolerance).
    x_ref, p_ref = _reference_forward(x, params)
    assert jnp.allclose(x_out, x_ref, rtol=5e-2, atol=5e-2), \
        float(jnp.max(jnp.abs(x_out - x_ref)))
    assert jnp.allclose(p_out, p_ref, rtol=5e-2, atol=5e-2), \
        float(jnp.max(jnp.abs(p_out - p_ref)))

    print("KERNEL_OK")
</pallas_src>

<mosaic_0001>
module attributes {stable_mosaic.version = 11 : i64} {
  func.func @_conv3x3_kernel(%arg0: i32, %arg1: i32, %arg2: memref<1x8x16x4xf32, #tpu.memory_space<vmem>>, %arg3: memref<1x1x16x4xf32, #tpu.memory_space<vmem>>, %arg4: memref<1x1x16x4xf32, #tpu.memory_space<vmem>>, %arg5: memref<9x4x16xbf16, #tpu.memory_space<vmem>>, %arg6: memref<1x4xf32, #tpu.memory_space<vmem>>, %arg7: memref<1x4xf32, #tpu.memory_space<vmem>>, %arg8: memref<1x8x16x16xbf16, #tpu.memory_space<vmem>>, %arg9: memref<1x1x2x16xf32, #tpu.memory_space<vmem>>) attributes {dimension_semantics = [#tpu.dimension_semantics<parallel>, #tpu.dimension_semantics<parallel>], iteration_bounds = array<i64: 2, 2>, scalar_prefetch = 0 : i64, scratch_operands = 0 : i64, tpu.core_type = #tpu.core_type<tc>, window_params = [{transform_indices = @transform_0, window_bounds = array<i64: 1, 8, 16, 4>}, {transform_indices = @transform_1, window_bounds = array<i64: 1, 1, 16, 4>}, {transform_indices = @transform_2, window_bounds = array<i64: 1, 1, 16, 4>}, {pipeline_mode = #tpu.pipeline_mode<synchronous>, transform_indices = @transform_3, window_bounds = array<i64: 9, 4, 16>}, {pipeline_mode = #tpu.pipeline_mode<synchronous>, transform_indices = @transform_4, window_bounds = array<i64: 1, 4>}, {pipeline_mode = #tpu.pipeline_mode<synchronous>, transform_indices = @transform_5, window_bounds = array<i64: 1, 4>}, {transform_indices = @transform_6, window_bounds = array<i64: 1, 8, 16, 16>}, {transform_indices = @transform_7, window_bounds = array<i64: 1, 1, 2, 16>}]} {
    %c0 = arith.constant 0 : index
    %c0_0 = arith.constant 0 : index
    %c0_1 = arith.constant 0 : index
    %c0_2 = arith.constant 0 : index
    %0 = vector.load %arg3[%c0, %c0_0, %c0_1, %c0_2] : memref<1x1x16x4xf32, #tpu.memory_space<vmem>>, vector<1x1x16x4xf32>
    %1 = vector.shape_cast %0 : vector<1x1x16x4xf32> to vector<1x16x4xf32>
    %c0_i32 = arith.constant 0 : i32
    %2 = arith.cmpi sgt, %arg1, %c0_i32 : i32
    %cst = arith.constant 0.000000e+00 : f32
    %3 = vector.broadcast %cst : f32 to vector<1x16x4xf32>
    %4 = arith.select %2, %1, %3 : vector<1x16x4xf32>
    %c0_3 = arith.constant 0 : index
    %c0_4 = arith.constant 0 : index
    %c0_5 = arith.constant 0 : index
    %c0_6 = arith.constant 0 : index
    %5 = vector.load %arg4[%c0_3, %c0_4, %c0_5, %c0_6] : memref<1x1x16x4xf32, #tpu.memory_space<vmem>>, vector<1x1x16x4xf32>
    %6 = vector.shape_cast %5 : vector<1x1x16x4xf32> to vector<1x16x4xf32>
    %c1_i32 = arith.constant 1 : i32
    %7 = arith.cmpi slt, %arg1, %c1_i32 : i32
    %cst_7 = arith.constant 0.000000e+00 : f32
    %8 = vector.broadcast %cst_7 : f32 to vector<1x16x4xf32>
    %9 = arith.select %7, %6, %8 : vector<1x16x4xf32>
    %c0_8 = arith.constant 0 : index
    %c0_9 = arith.constant 0 : index
    %c0_10 = arith.constant 0 : index
    %c0_11 = arith.constant 0 : index
    %10 = vector.load %arg2[%c0_8, %c0_9, %c0_10, %c0_11] : memref<1x8x16x4xf32, #tpu.memory_space<vmem>>, vector<1x8x16x4xf32>
    %11 = vector.shape_cast %10 : vector<1x8x16x4xf32> to vector<8x16x4xf32>
    %12 = tpu.concatenate %4, %11, %9 in 0 : vector<1x16x4xf32>, vector<8x16x4xf32>, vector<1x16x4xf32> -> vector<10x16x4xf32>
    %13 = arith.truncf %12 : vector<10x16x4xf32> to vector<10x16x4xbf16>
    %cst_12 = arith.constant 0.000000e+00 : bf16
    %14 = vector.broadcast %cst_12 : bf16 to vector<10x1x4xbf16>
    %15 = vector.extract_strided_slice %13 {offsets = [0, 0, 0], sizes = [10, 15, 4], strides = [1, 1, 1]} : vector<10x16x4xbf16> to vector<10x15x4xbf16>
    %16 = tpu.concatenate %14, %15 in 1 : vector<10x1x4xbf16>, vector<10x15x4xbf16> -> vector<10x16x4xbf16>
    %cst_13 = arith.constant 0.000000e+00 : bf16
    %17 = vector.broadcast %cst_13 : bf16 to vector<10x1x4xbf16>
    %18 = vector.extract_strided_slice %13 {offsets = [0, 1, 0], sizes = [10, 15, 4], strides = [1, 1, 1]} : vector<10x16x4xbf16> to vector<10x15x4xbf16>
    %19 = tpu.concatenate %18, %17 in 1 : vector<10x15x4xbf16>, vector<10x1x4xbf16> -> vector<10x16x4xbf16>
    %cst_14 = arith.constant 0.000000e+00 : f32
    %20 = vector.broadcast %cst_14 : f32 to vector<128x16xf32>
    %21 = vector.extract_strided_slice %16 {offsets = [0, 0, 0], sizes = [8, 16, 4], strides = [1, 1, 1]} : vector<10x16x4xbf16> to vector<8x16x4xbf16>
    %22 = vector.shape_cast %21 : vector<8x16x4xbf16> to vector<128x4xbf16>
    %c0_15 = arith.constant 0 : index
    %c0_16 = arith.constant 0 : index
    %c0_17 = arith.constant 0 : index
    %23 = vector.load %arg5[%c0_15, %c0_16, %c0_17] : memref<9x4x16xbf16, #tpu.memory_space<vmem>>, vector<1x4x16xbf16>
    %24 = vector.shape_cast %23 : vector<1x4x16xbf16> to vector<4x16xbf16>
    %cst_18 = arith.constant dense<0.000000e+00> : vector<128x16xf32>
    %25 = tpu.matmul %22, %24, %cst_18 {dimension_numbers = #tpu.dot_dimension_numbers<[1], [0], [0], [1], [0, 0, 1, 1], [], []>} : vector<128x4xbf16>, vector<4x16xbf16>, vector<128x16xf32> -> vector<128x16xf32>
    %26 = arith.addf %20, %25 : vector<128x16xf32>
    %27 = vector.extract_strided_slice %13 {offsets = [0, 0, 0], sizes = [8, 16, 4], strides = [1, 1, 1]} : vector<10x16x4xbf16> to vector<8x16x4xbf16>
    %28 = vector.shape_cast %27 : vector<8x16x4xbf16> to vector<128x4xbf16>
    %c1 = arith.constant 1 : index
    %c0_19 = arith.constant 0 : index
    %c0_20 = arith.constant 0 : index
    %29 = vector.load %arg5[%c1, %c0_19, %c0_20] : memref<9x4x16xbf16, #tpu.memory_space<vmem>>, vector<1x4x16xbf16>
    %30 = vector.shape_cast %29 : vector<1x4x16xbf16> to vector<4x16xbf16>
    %cst_21 = arith.constant dense<0.000000e+00> : vector<128x16xf32>
    %31 = tpu.matmul %28, %30, %cst_21 {dimension_numbers = #tpu.dot_dimension_numbers<[1], [0], [0], [1], [0, 0, 1, 1], [], []>} : vector<128x4xbf16>, vector<4x16xbf16>, vector<128x16xf32> -> vector<128x16xf32>
    %32 = arith.addf %26, %31 : vector<128x16xf32>
    %33 = vector.extract_strided_slice %19 {offsets = [0, 0, 0], sizes = [8, 16, 4], strides = [1, 1, 1]} : vector<10x16x4xbf16> to vector<8x16x4xbf16>
    %34 = vector.shape_cast %33 : vector<8x16x4xbf16> to vector<128x4xbf16>
    %c2 = arith.constant 2 : index
    %c0_22 = arith.constant 0 : index
    %c0_23 = arith.constant 0 : index
    %35 = vector.load %arg5[%c2, %c0_22, %c0_23] : memref<9x4x16xbf16, #tpu.memory_space<vmem>>, vector<1x4x16xbf16>
    %36 = vector.shape_cast %35 : vector<1x4x16xbf16> to vector<4x16xbf16>
    %cst_24 = arith.constant dense<0.000000e+00> : vector<128x16xf32>
    %37 = tpu.matmul %34, %36, %cst_24 {dimension_numbers = #tpu.dot_dimension_numbers<[1], [0], [0], [1], [0, 0, 1, 1], [], []>} : vector<128x4xbf16>, vector<4x16xbf16>, vector<128x16xf32> -> vector<128x16xf32>
    %38 = arith.addf %32, %37 : vector<128x16xf32>
    %39 = vector.extract_strided_slice %16 {offsets = [1, 0, 0], sizes = [8, 16, 4], strides = [1, 1, 1]} : vector<10x16x4xbf16> to vector<8x16x4xbf16>
    %40 = vector.shape_cast %39 : vector<8x16x4xbf16> to vector<128x4xbf16>
    %c3 = arith.constant 3 : index
    %c0_25 = arith.constant 0 : index
    %c0_26 = arith.constant 0 : index
    %41 = vector.load %arg5[%c3, %c0_25, %c0_26] : memref<9x4x16xbf16, #tpu.memory_space<vmem>>, vector<1x4x16xbf16>
    %42 = vector.shape_cast %41 : vector<1x4x16xbf16> to vector<4x16xbf16>
    %cst_27 = arith.constant dense<0.000000e+00> : vector<128x16xf32>
    %43 = tpu.matmul %40, %42, %cst_27 {dimension_numbers = #tpu.dot_dimension_numbers<[1], [0], [0], [1], [0, 0, 1, 1], [], []>} : vector<128x4xbf16>, vector<4x16xbf16>, vector<128x16xf32> -> vector<128x16xf32>
    %44 = arith.addf %38, %43 : vector<128x16xf32>
    %45 = vector.extract_strided_slice %13 {offsets = [1, 0, 0], sizes = [8, 16, 4], strides = [1, 1, 1]} : vector<10x16x4xbf16> to vector<8x16x4xbf16>
    %46 = vector.shape_cast %45 : vector<8x16x4xbf16> to vector<128x4xbf16>
    %c4 = arith.constant 4 : index
    %c0_28 = arith.constant 0 : index
    %c0_29 = arith.constant 0 : index
    %47 = vector.load %arg5[%c4, %c0_28, %c0_29] : memref<9x4x16xbf16, #tpu.memory_space<vmem>>, vector<1x4x16xbf16>
    %48 = vector.shape_cast %47 : vector<1x4x16xbf16> to vector<4x16xbf16>
    %cst_30 = arith.constant dense<0.000000e+00> : vector<128x16xf32>
    %49 = tpu.matmul %46, %48, %cst_30 {dimension_numbers = #tpu.dot_dimension_numbers<[1], [0], [0], [1], [0, 0, 1, 1], [], []>} : vector<128x4xbf16>, vector<4x16xbf16>, vector<128x16xf32> -> vector<128x16xf32>
    %50 = arith.addf %44, %49 : vector<128x16xf32>
    %51 = vector.extract_strided_slice %19 {offsets = [1, 0, 0], sizes = [8, 16, 4], strides = [1, 1, 1]} : vector<10x16x4xbf16> to vector<8x16x4xbf16>
    %52 = vector.shape_cast %51 : vector<8x16x4xbf16> to vector<128x4xbf16>
    %c5 = arith.constant 5 : index
    %c0_31 = arith.constant 0 : index
    %c0_32 = arith.constant 0 : index
    %53 = vector.load %arg5[%c5, %c0_31, %c0_32] : memref<9x4x16xbf16, #tpu.memory_space<vmem>>, vector<1x4x16xbf16>
    %54 = vector.shape_cast %53 : vector<1x4x16xbf16> to vector<4x16xbf16>
    %cst_33 = arith.constant dense<0.000000e+00> : vector<128x16xf32>
    %55 = tpu.matmul %52, %54, %cst_33 {dimension_numbers = #tpu.dot_dimension_numbers<[1], [0], [0], [1], [0, 0, 1, 1], [], []>} : vector<128x4xbf16>, vector<4x16xbf16>, vector<128x16xf32> -> vector<128x16xf32>
    %56 = arith.addf %50, %55 : vector<128x16xf32>
    %57 = vector.extract_strided_slice %16 {offsets = [2, 0, 0], sizes = [8, 16, 4], strides = [1, 1, 1]} : vector<10x16x4xbf16> to vector<8x16x4xbf16>
    %58 = vector.shape_cast %57 : vector<8x16x4xbf16> to vector<128x4xbf16>
    %c6 = arith.constant 6 : index
    %c0_34 = arith.constant 0 : index
    %c0_35 = arith.constant 0 : index
    %59 = vector.load %arg5[%c6, %c0_34, %c0_35] : memref<9x4x16xbf16, #tpu.memory_space<vmem>>, vector<1x4x16xbf16>
    %60 = vector.shape_cast %59 : vector<1x4x16xbf16> to vector<4x16xbf16>
    %cst_36 = arith.constant dense<0.000000e+00> : vector<128x16xf32>
    %61 = tpu.matmul %58, %60, %cst_36 {dimension_numbers = #tpu.dot_dimension_numbers<[1], [0], [0], [1], [0, 0, 1, 1], [], []>} : vector<128x4xbf16>, vector<4x16xbf16>, vector<128x16xf32> -> vector<128x16xf32>
    %62 = arith.addf %56, %61 : vector<128x16xf32>
    %63 = vector.extract_strided_slice %13 {offsets = [2, 0, 0], sizes = [8, 16, 4], strides = [1, 1, 1]} : vector<10x16x4xbf16> to vector<8x16x4xbf16>
    %64 = vector.shape_cast %63 : vector<8x16x4xbf16> to vector<128x4xbf16>
    %c7 = arith.constant 7 : index
    %c0_37 = arith.constant 0 : index
    %c0_38 = arith.constant 0 : index
    %65 = vector.load %arg5[%c7, %c0_37, %c0_38] : memref<9x4x16xbf16, #tpu.memory_space<vmem>>, vector<1x4x16xbf16>
    %66 = vector.shape_cast %65 : vector<1x4x16xbf16> to vector<4x16xbf16>
    %cst_39 = arith.constant dense<0.000000e+00> : vector<128x16xf32>
    %67 = tpu.matmul %64, %66, %cst_39 {dimension_numbers = #tpu.dot_dimension_numbers<[1], [0], [0], [1], [0, 0, 1, 1], [], []>} : vector<128x4xbf16>, vector<4x16xbf16>, vector<128x16xf32> -> vector<128x16xf32>
    %68 = arith.addf %62, %67 : vector<128x16xf32>
    %69 = vector.extract_strided_slice %19 {offsets = [2, 0, 0], sizes = [8, 16, 4], strides = [1, 1, 1]} : vector<10x16x4xbf16> to vector<8x16x4xbf16>
    %70 = vector.shape_cast %69 : vector<8x16x4xbf16> to vector<128x4xbf16>
    %c8 = arith.constant 8 : index
    %c0_40 = arith.constant 0 : index
    %c0_41 = arith.constant 0 : index
    %71 = vector.load %arg5[%c8, %c0_40, %c0_41] : memref<9x4x16xbf16, #tpu.memory_space<vmem>>, vector<1x4x16xbf16>
    %72 = vector.shape_cast %71 : vector<1x4x16xbf16> to vector<4x16xbf16>
    %cst_42 = arith.constant dense<0.000000e+00> : vector<128x16xf32>
    %73 = tpu.matmul %70, %72, %cst_42 {dimension_numbers = #tpu.dot_dimension_numbers<[1], [0], [0], [1], [0, 0, 1, 1], [], []>} : vector<128x4xbf16>, vector<4x16xbf16>, vector<128x16xf32> -> vector<128x16xf32>
    %74 = arith.addf %68, %73 : vector<128x16xf32>
    %75 = vector.shape_cast %74 : vector<128x16xf32> to vector<8x16x16xf32>
    %76 = arith.truncf %75 : vector<8x16x16xf32> to vector<8x16x16xbf16>
    %c0_43 = arith.constant 0 : index
    %c0_44 = arith.constant 0 : index
    %c0_45 = arith.constant 0 : index
    %c0_46 = arith.constant 0 : index
    %77 = vector.load %arg8[%c0_43, %c0_44, %c0_45, %c0_46] : memref<1x8x16x16xbf16, #tpu.memory_space<vmem>>, vector<1x8x16x16xbf16>
    %78 = vector.shape_cast %77 : vector<1x8x16x16xbf16> to vector<8x16x16xbf16>
    %79 = vector.shape_cast %76 : vector<8x16x16xbf16> to vector<1x8x16x16xbf16>
    tpu.vector_store %arg8[%c0_43, %c0_44, %c0_45, %c0_46], %79 {strides = array<i32>} : memref<1x8x16x16xbf16, #tpu.memory_space<vmem>>, vector<1x8x16x16xbf16>,
    %cst_47 = arith.constant dense<0.000000e+00> : vector<16xf32>
    %80 = vector.multi_reduction <add>, %74, %cst_47 [0] : vector<128x16xf32> to vector<16xf32>
    %81 = vector.shape_cast %80 : vector<16xf32> to vector<1x16xf32>
    %82 = arith.mulf %74, %74 : vector<128x16xf32>
    %cst_48 = arith.constant dense<0.000000e+00> : vector<16xf32>
    %83 = vector.multi_reduction <add>, %82, %cst_48 [0] : vector<128x16xf32> to vector<16xf32>
    %84 = vector.shape_cast %83 : vector<16xf32> to vector<1x16xf32>
    %85 = tpu.concatenate %81, %84 in 0 : vector<1x16xf32>, vector<1x16xf32> -> vector<2x16xf32>
    %c0_49 = arith.constant 0 : index
    %c0_50 = arith.constant 0 : index
    %c0_51 = arith.constant 0 : index
    %c0_52 = arith.constant 0 : index
    %86 = vector.load %arg9[%c0_49, %c0_50, %c0_51, %c0_52] : memref<1x1x2x16xf32, #tpu.memory_space<vmem>>, vector<1x1x2x16xf32>
    %87 = vector.shape_cast %86 : vector<1x1x2x16xf32> to vector<2x16xf32>
    %88 = vector.shape_cast %85 : vector<2x16xf32> to vector<1x1x2x16xf32>
    tpu.vector_store %arg9[%c0_49, %c0_50, %c0_51, %c0_52], %88 {strides = array<i32>} : memref<1x1x2x16xf32, #tpu.memory_space<vmem>>, vector<1x1x2x16xf32>,
    return
  }
  func.func @transform_0(%arg0: i32, %arg1: i32) -> (i32, i32, i32, i32) {
    %c0_i32 = arith.constant 0 : i32
    %c0_i32_0 = arith.constant 0 : i32
    %c0_i32_1 = arith.constant 0 : i32
    return %arg0, %arg1, %c0_i32, %c0_i32_0 : i32, i32, i32, i32
  }
  func.func @transform_1(%arg0: i32, %arg1: i32) -> (i32, i32, i32, i32) {
    %c8_i32 = arith.constant 8 : i32
    %0 = arith.muli %arg1, %c8_i32 : i32
    %c1_i32 = arith.constant 1 : i32
    %1 = arith.subi %0, %c1_i32 : i32
    %c0_i32 = arith.constant 0 : i32
    %2 = arith.maxsi %1, %c0_i32 : i32
    %c0_i32_0 = arith.constant 0 : i32
    %c0_i32_1 = arith.constant 0 : i32
    %c0_i32_2 = arith.constant 0 : i32
    return %arg0, %2, %c0_i32_0, %c0_i32_1 : i32, i32, i32, i32
  }
  func.func @transform_2(%arg0: i32, %arg1: i32) -> (i32, i32, i32, i32) {
    %c1_i32 = arith.constant 1 : i32
    %0 = arith.addi %arg1, %c1_i32 : i32
    %c8_i32 = arith.constant 8 : i32
    %1 = arith.muli %0, %c8_i32 : i32
    %c15_i32 = arith.constant 15 : i32
    %2 = arith.minsi %1, %c15_i32 : i32
    %c0_i32 = arith.constant 0 : i32
    %c0_i32_0 = arith.constant 0 : i32
    %c0_i32_1 = arith.constant 0 : i32
    return %arg0, %2, %c0_i32, %c0_i32_0 : i32, i32, i32, i32
  }
  func.func @transform_3(%arg0: i32, %arg1: i32) -> (i32, i32, i32) {
    %c0_i32 = arith.constant 0 : i32
    %c0_i32_0 = arith.constant 0 : i32
    %c0_i32_1 = arith.constant 0 : i32
    %c0_i32_2 = arith.constant 0 : i32
    return %c0_i32, %c0_i32_0, %c0_i32_1 : i32, i32, i32
  }
  func.func @transform_4(%arg0: i32, %arg1: i32) -> (i32, i32) {
    %c0_i32 = arith.constant 0 : i32
    %c0_i32_0 = arith.constant 0 : i32
    %c0_i32_1 = arith.constant 0 : i32
    return %c0_i32, %c0_i32_0 : i32, i32
  }
  func.func @transform_5(%arg0: i32, %arg1: i32) -> (i32, i32) {
    %c0_i32 = arith.constant 0 : i32
    %c0_i32_0 = arith.constant 0 : i32
    %c0_i32_1 = arith.constant 0 : i32
    return %c0_i32, %c0_i32_0 : i32, i32
  }
  func.func @transform_6(%arg0: i32, %arg1: i32) -> (i32, i32, i32, i32) {
    %c0_i32 = arith.constant 0 : i32
    %c0_i32_0 = arith.constant 0 : i32
    %c0_i32_1 = arith.constant 0 : i32
    return %arg0, %arg1, %c0_i32, %c0_i32_0 : i32, i32, i32, i32
  }
  func.func @transform_7(%arg0: i32, %arg1: i32) -> (i32, i32, i32, i32) {
    %c0_i32 = arith.constant 0 : i32
    %c0_i32_0 = arith.constant 0 : i32
    %c0_i32_1 = arith.constant 0 : i32
    return %arg0, %arg1, %c0_i32, %c0_i32_0 : i32, i32, i32, i32
  }
}

module attributes {stable_mosaic.version = 11 : i64} {
  func.func @_conv3x3_kernel(%arg0: i32, %arg1: i32, %arg2: memref<1x8x16x16xbf16, #tpu.memory_space<vmem>>, %arg3: memref<1x1x16x16xbf16, #tpu.memory_space<vmem>>, %arg4: memref<1x1x16x16xbf16, #tpu.memory_space<vmem>>, %arg5: memref<9x16x16xbf16, #tpu.memory_space<vmem>>, %arg6: memref<1x16xf32, #tpu.memory_space<vmem>>, %arg7: memref<1x16xf32, #tpu.memory_space<vmem>>, %arg8: memref<1x8x16x16xbf16, #tpu.memory_space<vmem>>, %arg9: memref<1x1x2x16xf32, #tpu.memory_space<vmem>>) attributes {dimension_semantics = [#tpu.dimension_semantics<parallel>, #tpu.dimension_semantics<parallel>], iteration_bounds = array<i64: 2, 2>, scalar_prefetch = 0 : i64, scratch_operands = 0 : i64, tpu.core_type = #tpu.core_type<tc>, window_params = [{transform_indices = @transform_0, window_bounds = array<i64: 1, 8, 16, 16>}, {transform_indices = @transform_1, window_bounds = array<i64: 1, 1, 16, 16>}, {transform_indices = @transform_2, window_bounds = array<i64: 1, 1, 16, 16>}, {pipeline_mode = #tpu.pipeline_mode<synchronous>, transform_indices = @transform_3, window_bounds = array<i64: 9, 16, 16>}, {pipeline_mode = #tpu.pipeline_mode<synchronous>, transform_indices = @transform_4, window_bounds = array<i64: 1, 16>}, {pipeline_mode = #tpu.pipeline_mode<synchronous>, transform_indices = @transform_5, window_bounds = array<i64: 1, 16>}, {transform_indices = @transform_6, window_bounds = array<i64: 1, 8, 16, 16>}, {transform_indices = @transform_7, window_bounds = array<i64: 1, 1, 2, 16>}]} {
    %c0 = arith.constant 0 : index
    %c0_0 = arith.constant 0 : index
    %0 = vector.load %arg6[%c0, %c0_0] : memref<1x16xf32, #tpu.memory_space<vmem>>, vector<1x16xf32>
    %c0_1 = arith.constant 0 : index
    %c0_2 = arith.constant 0 : index
    %1 = vector.load %arg7[%c0_1, %c0_2] : memref<1x16xf32, #tpu.memory_space<vmem>>, vector<1x16xf32>
    %c0_3 = arith.constant 0 : index
    %c0_4 = arith.constant 0 : index
    %c0_5 = arith.constant 0 : index
    %c0_6 = arith.constant 0 : index
    %2 = vector.load %arg3[%c0_3, %c0_4, %c0_5, %c0_6] : memref<1x1x16x16xbf16, #tpu.memory_space<vmem>>, vector<1x1x16x16xbf16>
    %3 = vector.shape_cast %2 : vector<1x1x16x16xbf16> to vector<1x16x16xbf16>
    %4 = arith.extf %3 : vector<1x16x16xbf16> to vector<1x16x16xf32>
    %5 = vector.shape_cast %0 : vector<1x16xf32> to vector<1x1x16xf32>
    %6 = vector.broadcast %5 : vector<1x1x16xf32> to vector<1x16x16xf32>
    %7 = arith.mulf %4, %6 : vector<1x16x16xf32>
    %8 = vector.shape_cast %1 : vector<1x16xf32> to vector<1x1x16xf32>
    %9 = vector.broadcast %8 : vector<1x1x16xf32> to vector<1x16x16xf32>
    %10 = arith.addf %7, %9 : vector<1x16x16xf32>
    %cst = arith.constant 0.000000e+00 : f32
    %11 = vector.broadcast %cst : f32 to vector<1x16x16xf32>
    %12 = arith.maximumf %10, %11 : vector<1x16x16xf32>
    %c0_i32 = arith.constant 0 : i32
    %13 = arith.cmpi sgt, %arg1, %c0_i32 : i32
    %cst_7 = arith.constant 0.000000e+00 : f32
    %14 = vector.broadcast %cst_7 : f32 to vector<1x16x16xf32>
    %15 = arith.select %13, %12, %14 : vector<1x16x16xf32>
    %c0_8 = arith.constant 0 : index
    %c0_9 = arith.constant 0 : index
    %c0_10 = arith.constant 0 : index
    %c0_11 = arith.constant 0 : index
    %16 = vector.load %arg4[%c0_8, %c0_9, %c0_10, %c0_11] : memref<1x1x16x16xbf16, #tpu.memory_space<vmem>>, vector<1x1x16x16xbf16>
    %17 = vector.shape_cast %16 : vector<1x1x16x16xbf16> to vector<1x16x16xbf16>
    %18 = arith.extf %17 : vector<1x16x16xbf16> to vector<1x16x16xf32>
    %19 = vector.shape_cast %0 : vector<1x16xf32> to vector<1x1x16xf32>
    %20 = vector.broadcast %19 : vector<1x1x16xf32> to vector<1x16x16xf32>
    %21 = arith.mulf %18, %20 : vector<1x16x16xf32>
    %22 = vector.shape_cast %1 : vector<1x16xf32> to vector<1x1x16xf32>
    %23 = vector.broadcast %22 : vector<1x1x16xf32> to vector<1x16x16xf32>
    %24 = arith.addf %21, %23 : vector<1x16x16xf32>
    %cst_12 = arith.constant 0.000000e+00 : f32
    %25 = vector.broadcast %cst_12 : f32 to vector<1x16x16xf32>
    %26 = arith.maximumf %24, %25 : vector<1x16x16xf32>
    %c1_i32 = arith.constant 1 : i32
    %27 = arith.cmpi slt, %arg1, %c1_i32 : i32
    %cst_13 = arith.constant 0.000000e+00 : f32
    %28 = vector.broadcast %cst_13 : f32 to vector<1x16x16xf32>
    %29 = arith.select %27, %26, %28 : vector<1x16x16xf32>
    %c0_14 = arith.constant 0 : index
    %c0_15 = arith.constant 0 : index
    %c0_16 = arith.constant 0 : index
    %c0_17 = arith.constant 0 : index
    %30 = vector.load %arg2[%c0_14, %c0_15, %c0_16, %c0_17] : memref<1x8x16x16xbf16, #tpu.memory_space<vmem>>, vector<1x8x16x16xbf16>
    %31 = vector.shape_cast %30 : vector<1x8x16x16xbf16> to vector<8x16x16xbf16>
    %32 = arith.extf %31 : vector<8x16x16xbf16> to vector<8x16x16xf32>
    %33 = vector.shape_cast %0 : vector<1x16xf32> to vector<1x1x16xf32>
    %34 = vector.broadcast %33 : vector<1x1x16xf32> to vector<8x16x16xf32>
    %35 = arith.mulf %32, %34 : vector<8x16x16xf32>
    %36 = vector.shape_cast %1 : vector<1x16xf32> to vector<1x1x16xf32>
    %37 = vector.broadcast %36 : vector<1x1x16xf32> to vector<8x16x16xf32>
    %38 = arith.addf %35, %37 : vector<8x16x16xf32>
    %cst_18 = arith.constant 0.000000e+00 : f32
    %39 = vector.broadcast %cst_18 : f32 to vector<8x16x16xf32>
    %40 = arith.maximumf %38, %39 : vector<8x16x16xf32>
    %41 = tpu.concatenate %15, %40, %29 in 0 : vector<1x16x16xf32>, vector<8x16x16xf32>, vector<1x16x16xf32> -> vector<10x16x16xf32>
    %42 = arith.truncf %41 : vector<10x16x16xf32> to vector<10x16x16xbf16>
    %cst_19 = arith.constant 0.000000e+00 : bf16
    %43 = vector.broadcast %cst_19 : bf16 to vector<10x1x16xbf16>
    %44 = vector.extract_strided_slice %42 {offsets = [0, 0, 0], sizes = [10, 15, 16], strides = [1, 1, 1]} : vector<10x16x16xbf16> to vector<10x15x16xbf16>
    %45 = tpu.concatenate %43, %44 in 1 : vector<10x1x16xbf16>, vector<10x15x16xbf16> -> vector<10x16x16xbf16>
    %cst_20 = arith.constant 0.000000e+00 : bf16
    %46 = vector.broadcast %cst_20 : bf16 to vector<10x1x16xbf16>
    %47 = vector.extract_strided_slice %42 {offsets = [0, 1, 0], sizes = [10, 15, 16], strides = [1, 1, 1]} : vector<10x16x16xbf16> to vector<10x15x16xbf16>
    %48 = tpu.concatenate %47, %46 in 1 : vector<10x15x16xbf16>, vector<10x1x16xbf16> -> vector<10x16x16xbf16>
    %cst_21 = arith.constant 0.000000e+00 : f32
    %49 = vector.broadcast %cst_21 : f32 to vector<128x16xf32>
    %50 = vector.extract_strided_slice %45 {offsets = [0, 0, 0], sizes = [8, 16, 16], strides = [1, 1, 1]} : vector<10x16x16xbf16> to vector<8x16x16xbf16>
    %51 = vector.shape_cast %50 : vector<8x16x16xbf16> to vector<128x16xbf16>
    %c0_22 = arith.constant 0 : index
    %c0_23 = arith.constant 0 : index
    %c0_24 = arith.constant 0 : index
    %52 = vector.load %arg5[%c0_22, %c0_23, %c0_24] : memref<9x16x16xbf16, #tpu.memory_space<vmem>>, vector<1x16x16xbf16>
    %53 = vector.shape_cast %52 : vector<1x16x16xbf16> to vector<16x16xbf16>
    %cst_25 = arith.constant dense<0.000000e+00> : vector<128x16xf32>
    %54 = tpu.matmul %51, %53, %cst_25 {dimension_numbers = #tpu.dot_dimension_numbers<[1], [0], [0], [1], [0, 0, 1, 1], [], []>} : vector<128x16xbf16>, vector<16x16xbf16>, vector<128x16xf32> -> vector<128x16xf32>
    %55 = arith.addf %49, %54 : vector<128x16xf32>
    %56 = vector.extract_strided_slice %42 {offsets = [0, 0, 0], sizes = [8, 16, 16], strides = [1, 1, 1]} : vector<10x16x16xbf16> to vector<8x16x16xbf16>
    %57 = vector.shape_cast %56 : vector<8x16x16xbf16> to vector<128x16xbf16>
    %c1 = arith.constant 1 : index
    %c0_26 = arith.constant 0 : index
    %c0_27 = arith.constant 0 : index
    %58 = vector.load %arg5[%c1, %c0_26, %c0_27] : memref<9x16x16xbf16, #tpu.memory_space<vmem>>, vector<1x16x16xbf16>
    %59 = vector.shape_cast %58 : vector<1x16x16xbf16> to vector<16x16xbf16>
    %cst_28 = arith.constant dense<0.000000e+00> : vector<128x16xf32>
    %60 = tpu.matmul %57, %59, %cst_28 {dimension_numbers = #tpu.dot_dimension_numbers<[1], [0], [0], [1], [0, 0, 1, 1], [], []>} : vector<128x16xbf16>, vector<16x16xbf16>, vector<128x16xf32> -> vector<128x16xf32>
    %61 = arith.addf %55, %60 : vector<128x16xf32>
    %62 = vector.extract_strided_slice %48 {offsets = [0, 0, 0], sizes = [8, 16, 16], strides = [1, 1, 1]} : vector<10x16x16xbf16> to vector<8x16x16xbf16>
    %63 = vector.shape_cast %62 : vector<8x16x16xbf16> to vector<128x16xbf16>
    %c2 = arith.constant 2 : index
    %c0_29 = arith.constant 0 : index
    %c0_30 = arith.constant 0 : index
    %64 = vector.load %arg5[%c2, %c0_29, %c0_30] : memref<9x16x16xbf16, #tpu.memory_space<vmem>>, vector<1x16x16xbf16>
    %65 = vector.shape_cast %64 : vector<1x16x16xbf16> to vector<16x16xbf16>
    %cst_31 = arith.constant dense<0.000000e+00> : vector<128x16xf32>
    %66 = tpu.matmul %63, %65, %cst_31 {dimension_numbers = #tpu.dot_dimension_numbers<[1], [0], [0], [1], [0, 0, 1, 1], [], []>} : vector<128x16xbf16>, vector<16x16xbf16>, vector<128x16xf32> -> vector<128x16xf32>
    %67 = arith.addf %61, %66 : vector<128x16xf32>
    %68 = vector.extract_strided_slice %45 {offsets = [1, 0, 0], sizes = [8, 16, 16], strides = [1, 1, 1]} : vector<10x16x16xbf16> to vector<8x16x16xbf16>
    %69 = vector.shape_cast %68 : vector<8x16x16xbf16> to vector<128x16xbf16>
    %c3 = arith.constant 3 : index
    %c0_32 = arith.constant 0 : index
    %c0_33 = arith.constant 0 : index
    %70 = vector.load %arg5[%c3, %c0_32, %c0_33] : memref<9x16x16xbf16, #tpu.memory_space<vmem>>, vector<1x16x16xbf16>
    %71 = vector.shape_cast %70 : vector<1x16x16xbf16> to vector<16x16xbf16>
    %cst_34 = arith.constant dense<0.000000e+00> : vector<128x16xf32>
    %72 = tpu.matmul %69, %71, %cst_34 {dimension_numbers = #tpu.dot_dimension_numbers<[1], [0], [0], [1], [0, 0, 1, 1], [], []>} : vector<128x16xbf16>, vector<16x16xbf16>, vector<128x16xf32> -> vector<128x16xf32>
    %73 = arith.addf %67, %72 : vector<128x16xf32>
    %74 = vector.extract_strided_slice %42 {offsets = [1, 0, 0], sizes = [8, 16, 16], strides = [1, 1, 1]} : vector<10x16x16xbf16> to vector<8x16x16xbf16>
    %75 = vector.shape_cast %74 : vector<8x16x16xbf16> to vector<128x16xbf16>
    %c4 = arith.constant 4 : index
    %c0_35 = arith.constant 0 : index
    %c0_36 = arith.constant 0 : index
    %76 = vector.load %arg5[%c4, %c0_35, %c0_36] : memref<9x16x16xbf16, #tpu.memory_space<vmem>>, vector<1x16x16xbf16>
    %77 = vector.shape_cast %76 : vector<1x16x16xbf16> to vector<16x16xbf16>
    %cst_37 = arith.constant dense<0.000000e+00> : vector<128x16xf32>
    %78 = tpu.matmul %75, %77, %cst_37 {dimension_numbers = #tpu.dot_dimension_numbers<[1], [0], [0], [1], [0, 0, 1, 1], [], []>} : vector<128x16xbf16>, vector<16x16xbf16>, vector<128x16xf32> -> vector<128x16xf32>
    %79 = arith.addf %73, %78 : vector<128x16xf32>
    %80 = vector.extract_strided_slice %48 {offsets = [1, 0, 0], sizes = [8, 16, 16], strides = [1, 1, 1]} : vector<10x16x16xbf16> to vector<8x16x16xbf16>
    %81 = vector.shape_cast %80 : vector<8x16x16xbf16> to vector<128x16xbf16>
    %c5 = arith.constant 5 : index
    %c0_38 = arith.constant 0 : index
    %c0_39 = arith.constant 0 : index
    %82 = vector.load %arg5[%c5, %c0_38, %c0_39] : memref<9x16x16xbf16, #tpu.memory_space<vmem>>, vector<1x16x16xbf16>
    %83 = vector.shape_cast %82 : vector<1x16x16xbf16> to vector<16x16xbf16>
    %cst_40 = arith.constant dense<0.000000e+00> : vector<128x16xf32>
    %84 = tpu.matmul %81, %83, %cst_40 {dimension_numbers = #tpu.dot_dimension_numbers<[1], [0], [0], [1], [0, 0, 1, 1], [], []>} : vector<128x16xbf16>, vector<16x16xbf16>, vector<128x16xf32> -> vector<128x16xf32>
    %85 = arith.addf %79, %84 : vector<128x16xf32>
    %86 = vector.extract_strided_slice %45 {offsets = [2, 0, 0], sizes = [8, 16, 16], strides = [1, 1, 1]} : vector<10x16x16xbf16> to vector<8x16x16xbf16>
    %87 = vector.shape_cast %86 : vector<8x16x16xbf16> to vector<128x16xbf16>
    %c6 = arith.constant 6 : index
    %c0_41 = arith.constant 0 : index
    %c0_42 = arith.constant 0 : index
    %88 = vector.load %arg5[%c6, %c0_41, %c0_42] : memref<9x16x16xbf16, #tpu.memory_space<vmem>>, vector<1x16x16xbf16>
    %89 = vector.shape_cast %88 : vector<1x16x16xbf16> to vector<16x16xbf16>
    %cst_43 = arith.constant dense<0.000000e+00> : vector<128x16xf32>
    %90 = tpu.matmul %87, %89, %cst_43 {dimension_numbers = #tpu.dot_dimension_numbers<[1], [0], [0], [1], [0, 0, 1, 1], [], []>} : vector<128x16xbf16>, vector<16x16xbf16>, vector<128x16xf32> -> vector<128x16xf32>
    %91 = arith.addf %85, %90 : vector<128x16xf32>
    %92 = vector.extract_strided_slice %42 {offsets = [2, 0, 0], sizes = [8, 16, 16], strides = [1, 1, 1]} : vector<10x16x16xbf16> to vector<8x16x16xbf16>
    %93 = vector.shape_cast %92 : vector<8x16x16xbf16> to vector<128x16xbf16>
    %c7 = arith.constant 7 : index
    %c0_44 = arith.constant 0 : index
    %c0_45 = arith.constant 0 : index
    %94 = vector.load %arg5[%c7, %c0_44, %c0_45] : memref<9x16x16xbf16, #tpu.memory_space<vmem>>, vector<1x16x16xbf16>
    %95 = vector.shape_cast %94 : vector<1x16x16xbf16> to vector<16x16xbf16>
    %cst_46 = arith.constant dense<0.000000e+00> : vector<128x16xf32>
    %96 = tpu.matmul %93, %95, %cst_46 {dimension_numbers = #tpu.dot_dimension_numbers<[1], [0], [0], [1], [0, 0, 1, 1], [], []>} : vector<128x16xbf16>, vector<16x16xbf16>, vector<128x16xf32> -> vector<128x16xf32>
    %97 = arith.addf %91, %96 : vector<128x16xf32>
    %98 = vector.extract_strided_slice %48 {offsets = [2, 0, 0], sizes = [8, 16, 16], strides = [1, 1, 1]} : vector<10x16x16xbf16> to vector<8x16x16xbf16>
    %99 = vector.shape_cast %98 : vector<8x16x16xbf16> to vector<128x16xbf16>
    %c8 = arith.constant 8 : index
    %c0_47 = arith.constant 0 : index
    %c0_48 = arith.constant 0 : index
    %100 = vector.load %arg5[%c8, %c0_47, %c0_48] : memref<9x16x16xbf16, #tpu.memory_space<vmem>>, vector<1x16x16xbf16>
    %101 = vector.shape_cast %100 : vector<1x16x16xbf16> to vector<16x16xbf16>
    %cst_49 = arith.constant dense<0.000000e+00> : vector<128x16xf32>
    %102 = tpu.matmul %99, %101, %cst_49 {dimension_numbers = #tpu.dot_dimension_numbers<[1], [0], [0], [1], [0, 0, 1, 1], [], []>} : vector<128x16xbf16>, vector<16x16xbf16>, vector<128x16xf32> -> vector<128x16xf32>
    %103 = arith.addf %97, %102 : vector<128x16xf32>
    %104 = vector.shape_cast %103 : vector<128x16xf32> to vector<8x16x16xf32>
    %105 = arith.truncf %104 : vector<8x16x16xf32> to vector<8x16x16xbf16>
    %c0_50 = arith.constant 0 : index
    %c0_51 = arith.constant 0 : index
    %c0_52 = arith.constant 0 : index
    %c0_53 = arith.constant 0 : index
    %106 = vector.load %arg8[%c0_50, %c0_51, %c0_52, %c0_53] : memref<1x8x16x16xbf16, #tpu.memory_space<vmem>>, vector<1x8x16x16xbf16>
    %107 = vector.shape_cast %106 : vector<1x8x16x16xbf16> to vector<8x16x16xbf16>
    %108 = vector.shape_cast %105 : vector<8x16x16xbf16> to vector<1x8x16x16xbf16>
    tpu.vector_store %arg8[%c0_50, %c0_51, %c0_52, %c0_53], %108 {strides = array<i32>} : memref<1x8x16x16xbf16, #tpu.memory_space<vmem>>, vector<1x8x16x16xbf16>,
    %cst_54 = arith.constant dense<0.000000e+00> : vector<16xf32>
    %109 = vector.multi_reduction <add>, %103, %cst_54 [0] : vector<128x16xf32> to vector<16xf32>
    %110 = vector.shape_cast %109 : vector<16xf32> to vector<1x16xf32>
    %111 = arith.mulf %103, %103 : vector<128x16xf32>
    %cst_55 = arith.constant dense<0.000000e+00> : vector<16xf32>
    %112 = vector.multi_reduction <add>, %111, %cst_55 [0] : vector<128x16xf32> to vector<16xf32>
    %113 = vector.shape_cast %112 : vector<16xf32> to vector<1x16xf32>
    %114 = tpu.concatenate %110, %113 in 0 : vector<1x16xf32>, vector<1x16xf32> -> vector<2x16xf32>
    %c0_56 = arith.constant 0 : index
    %c0_57 = arith.constant 0 : index
    %c0_58 = arith.constant 0 : index
    %c0_59 = arith.constant 0 : index
    %115 = vector.load %arg9[%c0_56, %c0_57, %c0_58, %c0_59] : memref<1x1x2x16xf32, #tpu.memory_space<vmem>>, vector<1x1x2x16xf32>
    %116 = vector.shape_cast %115 : vector<1x1x2x16xf32> to vector<2x16xf32>
    %117 = vector.shape_cast %114 : vector<2x16xf32> to vector<1x1x2x16xf32>
    tpu.vector_store %arg9[%c0_56, %c0_57, %c0_58, %c0_59], %117 {strides = array<i32>} : memref<1x1x2x16xf32, #tpu.memory_space<vmem>>, vector<1x1x2x16xf32>,
    return
  }
  func.func @transform_0(%arg0: i32, %arg1: i32) -> (i32, i32, i32, i32) {
    %c0_i32 = arith.constant 0 : i32
    %c0_i32_0 = arith.constant 0 : i32
    %c0_i32_1 = arith.constant 0 : i32
    return %arg0, %arg1, %c0_i32, %c0_i32_0 : i32, i32, i32, i32
  }
  func.func @transform_1(%arg0: i32, %arg1: i32) -> (i32, i32, i32, i32) {
    %c8_i32 = arith.constant 8 : i32
    %0 = arith.muli %arg1, %c8_i32 : i32
    %c1_i32 = arith.constant 1 : i32
    %1 = arith.subi %0, %c1_i32 : i32
    %c0_i32 = arith.constant 0 : i32
    %2 = arith.maxsi %1, %c0_i32 : i32
    %c0_i32_0 = arith.constant 0 : i32
    %c0_i32_1 = arith.constant 0 : i32
    %c0_i32_2 = arith.constant 0 : i32
    return %arg0, %2, %c0_i32_0, %c0_i32_1 : i32, i32, i32, i32
  }
  func.func @transform_2(%arg0: i32, %arg1: i32) -> (i32, i32, i32, i32) {
    %c1_i32 = arith.constant 1 : i32
    %0 = arith.addi %arg1, %c1_i32 : i32
    %c8_i32 = arith.constant 8 : i32
    %1 = arith.muli %0, %c8_i32 : i32
    %c15_i32 = arith.constant 15 : i32
    %2 = arith.minsi %1, %c15_i32 : i32
    %c0_i32 = arith.constant 0 : i32
    %c0_i32_0 = arith.constant 0 : i32
    %c0_i32_1 = arith.constant 0 : i32
    return %arg0, %2, %c0_i32, %c0_i32_0 : i32, i32, i32, i32
  }
  func.func @transform_3(%arg0: i32, %arg1: i32) -> (i32, i32, i32) {
    %c0_i32 = arith.constant 0 : i32
    %c0_i32_0 = arith.constant 0 : i32
    %c0_i32_1 = arith.constant 0 : i32
    %c0_i32_2 = arith.constant 0 : i32
    return %c0_i32, %c0_i32_0, %c0_i32_1 : i32, i32, i32
  }
  func.func @transform_4(%arg0: i32, %arg1: i32) -> (i32, i32) {
    %c0_i32 = arith.constant 0 : i32
    %c0_i32_0 = arith.constant 0 : i32
    %c0_i32_1 = arith.constant 0 : i32
    return %c0_i32, %c0_i32_0 : i32, i32
  }
  func.func @transform_5(%arg0: i32, %arg1: i32) -> (i32, i32) {
    %c0_i32 = arith.constant 0 : i32
    %c0_i32_0 = arith.constant 0 : i32
    %c0_i32_1 = arith.constant 0 : i32
    return %c0_i32, %c0_i32_0 : i32, i32
  }
  func.func @transform_6(%arg0: i32, %arg1: i32) -> (i32, i32, i32, i32) {
    %c0_i32 = arith.constant 0 : i32
    %c0_i32_0 = arith.constant 0 : i32
    %c0_i32_1 = arith.constant 0 : i32
    return %arg0, %arg1, %c0_i32, %c0_i32_0 : i32, i32, i32, i32
  }
  func.func @transform_7(%arg0: i32, %arg1: i32) -> (i32, i32, i32, i32) {
    %c0_i32 = arith.constant 0 : i32
    %c0_i32_0 = arith.constant 0 : i32
    %c0_i32_1 = arith.constant 0 : i32
    return %arg0, %arg1, %c0_i32, %c0_i32_0 : i32, i32, i32, i32
  }
}

module attributes {stable_mosaic.version = 11 : i64} {
  func.func @_bn_relu_pool_kernel(%arg0: i32, %arg1: i32, %arg2: memref<1x8x16x16xbf16, #tpu.memory_space<vmem>>, %arg3: memref<1x16xf32, #tpu.memory_space<vmem>>, %arg4: memref<1x16xf32, #tpu.memory_space<vmem>>, %arg5: memref<1x8x16x16xf32, #tpu.memory_space<vmem>>, %arg6: memref<1x4x8x16xf32, #tpu.memory_space<vmem>>, %arg7: memref<4x16x16xf32, #tpu.memory_space<vmem>>) attributes {dimension_semantics = [#tpu.dimension_semantics<parallel>, #tpu.dimension_semantics<parallel>], iteration_bounds = array<i64: 2, 2>, scalar_prefetch = 0 : i64, scratch_operands = 1 : i64, tpu.core_type = #tpu.core_type<tc>, window_params = [{transform_indices = @transform_0, window_bounds = array<i64: 1, 8, 16, 16>}, {pipeline_mode = #tpu.pipeline_mode<synchronous>, transform_indices = @transform_1, window_bounds = array<i64: 1, 16>}, {pipeline_mode = #tpu.pipeline_mode<synchronous>, transform_indices = @transform_2, window_bounds = array<i64: 1, 16>}, {transform_indices = @transform_3, window_bounds = array<i64: 1, 8, 16, 16>}, {transform_indices = @transform_4, window_bounds = array<i64: 1, 4, 8, 16>}]} {
    %c0 = arith.constant 0 : index
    %c0_0 = arith.constant 0 : index
    %0 = vector.load %arg3[%c0, %c0_0] : memref<1x16xf32, #tpu.memory_space<vmem>>, vector<1x16xf32>
    %c0_1 = arith.constant 0 : index
    %c0_2 = arith.constant 0 : index
    %1 = vector.load %arg4[%c0_1, %c0_2] : memref<1x16xf32, #tpu.memory_space<vmem>>, vector<1x16xf32>
    %c0_3 = arith.constant 0 : index
    %c0_4 = arith.constant 0 : index
    %c0_5 = arith.constant 0 : index
    %c0_6 = arith.constant 0 : index
    %2 = vector.load %arg2[%c0_3, %c0_4, %c0_5, %c0_6] : memref<1x8x16x16xbf16, #tpu.memory_space<vmem>>, vector<1x8x16x16xbf16>
    %3 = vector.shape_cast %2 : vector<1x8x16x16xbf16> to vector<8x16x16xbf16>
    %4 = arith.extf %3 : vector<8x16x16xbf16> to vector<8x16x16xf32>
    %5 = vector.shape_cast %0 : vector<1x16xf32> to vector<1x1x16xf32>
    %6 = vector.broadcast %5 : vector<1x1x16xf32> to vector<8x16x16xf32>
    %7 = arith.mulf %4, %6 : vector<8x16x16xf32>
    %8 = vector.shape_cast %1 : vector<1x16xf32> to vector<1x1x16xf32>
    %9 = vector.broadcast %8 : vector<1x1x16xf32> to vector<8x16x16xf32>
    %10 = arith.addf %7, %9 : vector<8x16x16xf32>
    %cst = arith.constant 0.000000e+00 : f32
    %11 = vector.broadcast %cst : f32 to vector<8x16x16xf32>
    %12 = arith.maximumf %10, %11 : vector<8x16x16xf32>
    %c0_7 = arith.constant 0 : index
    %c0_8 = arith.constant 0 : index
    %c0_9 = arith.constant 0 : index
    %c0_10 = arith.constant 0 : index
    %13 = vector.load %arg5[%c0_7, %c0_8, %c0_9, %c0_10] : memref<1x8x16x16xf32, #tpu.memory_space<vmem>>, vector<1x8x16x16xf32>
    %14 = vector.shape_cast %13 : vector<1x8x16x16xf32> to vector<8x16x16xf32>
    %15 = vector.shape_cast %12 : vector<8x16x16xf32> to vector<1x8x16x16xf32>
    tpu.vector_store %arg5[%c0_7, %c0_8, %c0_9, %c0_10], %15 {strides = array<i32>} : memref<1x8x16x16xf32, #tpu.memory_space<vmem>>, vector<1x8x16x16xf32>,
    %16 = vector.shape_cast %12 : vector<8x16x16xf32> to vector<4x2x16x16xf32>
    %17 = vector.extract_strided_slice %16 {offsets = [0, 0, 0, 0], sizes = [4, 1, 16, 16], strides = [1, 1, 1, 1]} : vector<4x2x16x16xf32> to vector<4x1x16x16xf32>
    %18 = vector.shape_cast %17 : vector<4x1x16x16xf32> to vector<4x16x16xf32>
    %19 = vector.extract_strided_slice %16 {offsets = [0, 1, 0, 0], sizes = [4, 1, 16, 16], strides = [1, 1, 1, 1]} : vector<4x2x16x16xf32> to vector<4x1x16x16xf32>
    %20 = vector.shape_cast %19 : vector<4x1x16x16xf32> to vector<4x16x16xf32>
    %21 = arith.maximumf %18, %20 : vector<4x16x16xf32>
    %c0_11 = arith.constant 0 : index
    %c0_12 = arith.constant 0 : index
    %c0_13 = arith.constant 0 : index
    %22 = vector.load %arg7[%c0_11, %c0_12, %c0_13] : memref<4x16x16xf32, #tpu.memory_space<vmem>>, vector<4x16x16xf32>
    tpu.vector_store %arg7[%c0_11, %c0_12, %c0_13], %21 {strides = array<i32>} : memref<4x16x16xf32, #tpu.memory_space<vmem>>, vector<4x16x16xf32>,
    %c0_14 = arith.constant 0 : index
    %c0_15 = arith.constant 0 : index
    %c0_16 = arith.constant 0 : index
    %23 = tpu.strided_load %arg7[%c0_14, %c0_15, %c0_16] {strides = array<i32: 1, 2, 1>} : memref<4x16x16xf32, #tpu.memory_space<vmem>>, vector<4x8x16xf32>
    %c0_17 = arith.constant 0 : index
    %c1 = arith.constant 1 : index
    %c0_18 = arith.constant 0 : index
    %24 = tpu.strided_load %arg7[%c0_17, %c1, %c0_18] {strides = array<i32: 1, 2, 1>} : memref<4x16x16xf32, #tpu.memory_space<vmem>>, vector<4x8x16xf32>
    %25 = arith.maximumf %23, %24 : vector<4x8x16xf32>
    %c0_19 = arith.constant 0 : index
    %c0_20 = arith.constant 0 : index
    %c0_21 = arith.constant 0 : index
    %c0_22 = arith.constant 0 : index
    %26 = vector.load %arg6[%c0_19, %c0_20, %c0_21, %c0_22] : memref<1x4x8x16xf32, #tpu.memory_space<vmem>>, vector<1x4x8x16xf32>
    %27 = vector.shape_cast %26 : vector<1x4x8x16xf32> to vector<4x8x16xf32>
    %28 = vector.shape_cast %25 : vector<4x8x16xf32> to vector<1x4x8x16xf32>
    tpu.vector_store %arg6[%c0_19, %c0_20, %c0_21, %c0_22], %28 {strides = array<i32>} : memref<1x4x8x16xf32, #tpu.memory_space<vmem>>, vector<1x4x8x16xf32>,
    return
  }
  func.func @transform_0(%arg0: i32, %arg1: i32) -> (i32, i32, i32, i32) {
    %c0_i32 = arith.constant 0 : i32
    %c0_i32_0 = arith.constant 0 : i32
    %c0_i32_1 = arith.constant 0 : i32
    return %arg0, %arg1, %c0_i32, %c0_i32_0 : i32, i32, i32, i32
  }
  func.func @transform_1(%arg0: i32, %arg1: i32) -> (i32, i32) {
    %c0_i32 = arith.constant 0 : i32
    %c0_i32_0 = arith.constant 0 : i32
    %c0_i32_1 = arith.constant 0 : i32
    return %c0_i32, %c0_i32_0 : i32, i32
  }
  func.func @transform_2(%arg0: i32, %arg1: i32) -> (i32, i32) {
    %c0_i32 = arith.constant 0 : i32
    %c0_i32_0 = arith.constant 0 : i32
    %c0_i32_1 = arith.constant 0 : i32
    return %c0_i32, %c0_i32_0 : i32, i32
  }
  func.func @transform_3(%arg0: i32, %arg1: i32) -> (i32, i32, i32, i32) {
    %c0_i32 = arith.constant 0 : i32
    %c0_i32_0 = arith.constant 0 : i32
    %c0_i32_1 = arith.constant 0 : i32
    return %arg0, %arg1, %c0_i32, %c0_i32_0 : i32, i32, i32, i32
  }
  func.func @transform_4(%arg0: i32, %arg1: i32) -> (i32, i32, i32, i32) {
    %c0_i32 = arith.constant 0 : i32
    %c0_i32_0 = arith.constant 0 : i32
    %c0_i32_1 = arith.constant 0 : i32
    return %arg0, %arg1, %c0_i32, %c0_i32_0 : i32, i32, i32, i32
  }
}

</mosaic_0001>

<bundles_post_ra>
// kernel: encoder_block_forward.5
= control target key start
LH: loop header
LB: loop body
LE: loop exit
PB: predicated region body
PF: predicated region fallthrough
CT: control target
= control target key end

     0   :  { %10 = vsyncpa [#allocation4], 0  ;;  %s1046_s0 = inlined_call_operand.vmem [shape: bf16[2,16,16,16], index: 0, kind: input, shape index: {}]   ;;  %s1047_s1 = inlined_call_operand.vmem [shape: f32[1,16], index: 1, kind: input, shape index: {}]   ;;  %s1048_s2 = inlined_call_operand.vmem [shape: f32[1,16], index: 2, kind: input, shape index: {}]   ;;  %s1049_s3 = inlined_call_operand.vmem [shape: f32[2,16,16,16], index: 3, kind: output, shape index: {0}]   ;;  %s1050_s4 = inlined_call_operand.hbm [shape: f32[2,8,8,16], index: 4, kind: output, shape index: {1}]  }
   0x1   :  { %12 = vsyncpa [#allocation4 + $0x1], 0  ;;  %s816_s15 = smov 0   ;;  %s818_s16 = smov 0  }
   0x2   :  { %s820_s17 = smov 0   ;;  %s822_s18 = smov 0  }
   0x3   :  { %s824_s19 = smov 0   ;;  %s826_s20 = smov 0  }
   0x4   :  { %s828_s21 = smov 0   ;;  %s830_s22 = smov 0  }
   0x5 LB: > { %s559_s23 = sadd.s32 4294967295, %s787_s22   ;;  %s560_s24 = sadd.s32 4294967294, %s787_s22   ;;  %s787_s22 = sphi %s830_s22, %s18_s22   ;;  %s783_s21 = sphi %s828_s21, %s1059_s21   ;;  %s779_s20 = sphi %s826_s20, %s1058_s20   ;;  %s775_s19 = sphi %s824_s19, %s1057_s19   ;;  %s771_s18 = sphi %s822_s18, %s1056_s18   ;;  %s767_s17 = sphi %s820_s17, %s1055_s17   ;;  %s763_s16 = sphi %s818_s16, %s1054_s16   ;;  %s759_s15 = sphi %s816_s15, %s1053_s15  }
   0x6   : > { %s27_s25 = sadd.s32 1, %s779_s20  ;;  %s30_s26 = sadd.s32 1, %s783_s21 }
   0x7   : > { %p28_p0 = scmp.ge.s32.totalorder %s27_s25, 2  ;;  %p147_p1 = scmp.ne.s32.totalorder %s767_s17, %s763_s16 }
   0x8   : > { %p148_p2 = scmp.eq.s32.totalorder %s559_s23, 3  ;;  %p153_p5 = scmp.ne.s32.totalorder %s763_s16, %s759_s15 }
   0x9   : > { %s1061_s25 = smov (%p28_p0, %s27_s25), 0  ;;  %s1063_s26 = smov (!%p28_p0, %s30_s26), %s783_s21 }
   0xa   : > { %s133_s27 = ssub.s32 %s779_s20, %s1061_s25  ;;  %p867_p3 = por %p148_p2, %p147_p1 }
   0xb   : > { %p32_p4 = scmp.ge.s32.totalorder %s1063_s26, 2  ;;  %p154_p6 = scmp.eq.s32.totalorder %s560_s24, 3 }
   0xc   : > { %p563_p7 = scmp.ge.s32.totalorder %s787_s22, 1  ;;  %p192_p9 = scmp.lt.s32.totalorder %s787_s22, 5 }
   0xd   : > { %s1065_s26 = smov (%p32_p4, %s1063_s26), 0  ;;  %p876_p8 = por %p154_p6, %p153_p5 }
   0xe   : > { %s132_s30 = ssub.s32 %s783_s21, %s1065_s26  ;;  %s137_s5 = sadd.s32 1, %s767_s17 }
   0xf   : > { %s134_s6 = sor.u32 %s133_s27, %s132_s30  ;;  %p193_p10 = pnand %p563_p7, %p192_p9 }
  0x10   : > { %p135_p11 = scmp.eq.s32.totalorder %s134_s6, 0  ;;  %s565_s8 = sshll.u32 (!%p193_p10), %s771_s18, 3 }
  0x11   : > { %196 = sbr.rel (%p193_p10) target bundleno = 72 (0x48), region = 32  ;;  %p234_p12 = scmp.lt.s32.totalorder (!%p193_p10), %s775_s19, 1 }
  0x12   : > { %s885_s7 = scalar_select %p135_p11, %s767_s17, %s137_s5  }
  0x13   : > { %p236_p13 = scmp.lt.s32.totalorder (!%p193_p10), %s565_s8, 15  ;;  %s230_s14 = sand.u32 (!%p193_p10), 1, %s763_s16  }
  0x16   : > { %s235_s9 = scalar_select %p234_p12, %s775_s19, 1  ;;  %v901_v0 = vld [vmem:[%s1047_s1] ss:$0 sm:$0xff]  ;;  %vm344_vm0 = vcmask 130048  }
  0x17   : > { %s1067_s8 = smov (!%p236_p13, %s565_s8), 15  ;;  %v909_v6 = vld [vmem:[%s1048_s2] ss:$0 sm:$0xff] }
  0x18   : > { %s567_s10 = sshll.u32 %s235_s9, 5  ;;  %s566_s11 = sshll.u32 %s1067_s8, 1 }
  0x19   : > { %s890_s12 = sadd.s32 %s567_s10, %s566_s11  ;;  %s411_s9 = scalar_lea.sflag [#allocation4], %s230_s14 }
  0x1a   : > { %s568_s13 = sshll.u32 %s890_s12, 2  ;;  %s572_s8 = sshll.u32 %s890_s12, 3 }
  0x1b   : > { %s896_s24 = scalar_lea.vmem %s1046_s0, %s568_s13  ;;  %s928_s11 = scalar_lea.vmem %s1049_s3, %s572_s8 }
  0x1c   : > { %v580_v1 = vld [vmem:[%s896_s24] sm:$0xff]   ;;  %v611_v2 = vld [vmem:[%s896_s24 + $0x8] sm:$0xff]   ;;  %v612_v3 = vld [vmem:[%s896_s24 + $0x10] sm:$0xff]   ;;  %s574_s12 = sshll.u32 %s771_s18, 2  ;;  %s575_s13 = sshll.u32 %s775_s19, 3 }
  0x1d   : > { %v581_v4 = vunpack.c.l.bf16 %v580_v1  ;;  %v585_v5 = vunpack.c.l.bf16 %v611_v2  ;;  %v582_v7 = vunpack.c.h.bf16 %v580_v1  ;;  %v586_v8 = vunpack.c.h.bf16 %v611_v2  ;;  %v613_v9 = vld [vmem:[%s896_s24 + $0x18] sm:$0xff]   ;;  %v614_v30 = vld [vmem:[%s896_s24 + $0x20] sm:$0xff]   ;;  %v615_v31 = vld [vmem:[%s896_s24 + $0x28] sm:$0xff]   ;;  %s426_s23 = sadd.s32 %s575_s13, %s574_s12 }
  0x1e   : > { %v589_v10 = vunpack.c.l.bf16 %v612_v3  ;;  %v593_v11 = vunpack.c.l.bf16 %v613_v9  ;;  %v590_v12 = vunpack.c.h.bf16 %v612_v3  ;;  %v594_v13 = vunpack.c.h.bf16 %v613_v9  ;;  %v616_v40 = vld [vmem:[%s896_s24 + $0x30] sm:$0xff]   ;;  %v617_v41 = vld [vmem:[%s896_s24 + $0x38] sm:$0xff]   ;;  %s564_s24 = sshll.u32 %s230_s14, 5  ;;  %s576_s18 = sshll.u32 %s426_s23, 3 }
  0x1f   : > { %v293_v14 = vmul.f32 %v901_v0, %v581_v4  ;;  %v295_v15 = vmul.f32 %v901_v0, %v585_v5  ;;  %v294_v16 = vmul.f32 %v901_v0, %v582_v7  ;;  %v296_v17 = vmul.f32 %v901_v0, %v586_v8  ;;  %s428_s30 = scalar_lea.hbm %s1050_s4, %s576_s18  ;;  %s232_s5 = scalar_lea.vmem [#allocation3], %s564_s24 }
  0x20   : > { %v297_v18 = vmul.f32 %v901_v0, %v589_v10  ;;  %v299_v19 = vmul.f32 %v901_v0, %v593_v11  ;;  %v298_v20 = vmul.f32 %v901_v0, %v590_v12  ;;  %v300_v21 = vmul.f32 %v901_v0, %v594_v13  ;;  %s429_s6 = sshll.u32 %s232_s5, 4  ;;  %s431_s8 = sshll.u32 %s428_s30, 4  ;;  %s430_s6 = int_to_ptr.vmem [resolvable:$true] %s429_s6  ;;  %s432_s8 = int_to_ptr.hbm [resolvable:$true] %s431_s8 }
  0x21   : > { %v312_v22 = vadd.f32 %v909_v6, %v293_v14  ;;  %v314_v23 = vadd.f32 %v909_v6, %v295_v15  ;;  %v313_v24 = vadd.f32 %v909_v6, %v294_v16  ;;  %v315_v25 = vadd.f32 %v909_v6, %v296_v17  ;;  %s707_s10 = sshra.s32 %s432_s8, 4  ;;  %s713_s23 = scalar_lea.hbm %s1050_s4, 128  ;;  %s708_s10 = int_to_ptr.hbm [resolvable:$true] %s707_s10 }
  0x22   : > { %v316_v26 = vadd.f32 %v909_v6, %v297_v18  ;;  %v318_v27 = vadd.f32 %v909_v6, %v299_v19  ;;  %v317_v28 = vadd.f32 %v909_v6, %v298_v20  ;;  %v319_v29 = vadd.f32 %v909_v6, %v300_v21  ;;  %p714_p4 = scmp.lt.s32.totalorder %s708_s10, %s1050_s4 }
  0x23   : > { %v328_v32 = vmax.f32 %v312_v22, 0.0  ;;  %v330_v33 = vmax.f32 %v314_v23, 0.0  ;;  %v329_v34 = vmax.f32 %v313_v24, 0.0  ;;  %v331_v35 = vmax.f32 %v315_v25, 0.0 }
  0x24   : > { %v332_v36 = vmax.f32 %v316_v26, 0.0  ;;  %v334_v37 = vmax.f32 %v318_v27, 0.0  ;;  %v333_v38 = vmax.f32 %v317_v28, 0.0  ;;  %v335_v39 = vmax.f32 %v319_v29, 0.0 }
  0x25   : > { %v361_v42 = vmax.f32 %v328_v32, %v330_v33  ;;  %345 = vst.msk [vmem:[%s928_s11] sm:$0xff] %vm344_vm0, %v328_v32  ;;  %v362_v43 = vmax.f32 %v329_v34, %v331_v35  ;;  %v597_v44 = vunpack.c.l.bf16 %v614_v30  ;;  %v601_v45 = vunpack.c.l.bf16 %v615_v31 }
  0x26   : > { %347 = vst.msk [vmem:[%s928_s11 + $0x10] sm:$0xff] %vm344_vm0, %v330_v33  ;;  %v363_v46 = vmax.f32 %v332_v36, %v334_v37  ;;  %v364_v47 = vmax.f32 %v333_v38, %v335_v39  ;;  %v598_v48 = vunpack.c.h.bf16 %v614_v30  ;;  %v602_v49 = vunpack.c.h.bf16 %v615_v31 }
  0x27   : > { %369 = vst.msk [vmem:[#allocation2] sm:$0xff] %vm344_vm0, %v361_v42  ;;  %v301_v50 = vmul.f32 %v901_v0, %v597_v44  ;;  %v303_v51 = vmul.f32 %v901_v0, %v601_v45  ;;  %v605_v52 = vunpack.c.l.bf16 %v616_v40  ;;  %v609_v53 = vunpack.c.l.bf16 %v617_v41 }
  0x28   : > { %370 = vst.msk [vmem:[#allocation2 + $0x8] sm:$0xff] %vm344_vm0, %v362_v43  ;;  %v302_v54 = vmul.f32 %v901_v0, %v598_v48  ;;  %v304_v55 = vmul.f32 %v901_v0, %v602_v49  ;;  %v606_v56 = vunpack.c.h.bf16 %v616_v40  ;;  %v610_v57 = vunpack.c.h.bf16 %v617_v41 }
  0x29   : > { %346 = vst.msk [vmem:[%s928_s11 + $0x8] sm:$0xff] %vm344_vm0, %v329_v34  ;;  %v320_v58 = vadd.f32 %v909_v6, %v301_v50  ;;  %v322_v59 = vadd.f32 %v909_v6, %v303_v51  ;;  %v305_v60 = vmul.f32 %v901_v0, %v605_v52  ;;  %v307_v61 = vmul.f32 %v901_v0, %v609_v53 }
  0x2a   : > { %348 = vst.msk [vmem:[%s928_s11 + $0x18] sm:$0xff] %vm344_vm0, %v331_v35  ;;  %v321_v62 = vadd.f32 %v909_v6, %v302_v54  ;;  %v323_v63 = vadd.f32 %v909_v6, %v304_v55  ;;  %v306_v1 = vmul.f32 %v901_v0, %v606_v56  ;;  %v308_v2 = vmul.f32 %v901_v0, %v610_v57 }
  0x2b   : > { %371 = vst.msk [vmem:[#allocation2 + $0x10] sm:$0xff] %vm344_vm0, %v363_v46  ;;  %v336_v3 = vmax.f32 %v320_v58, 0.0  ;;  %v338_v4 = vmax.f32 %v322_v59, 0.0  ;;  %v324_v5 = vadd.f32 %v909_v6, %v305_v60  ;;  %v326_v7 = vadd.f32 %v909_v6, %v307_v61 }
  0x2c   : > { %349 = vst.msk [vmem:[%s928_s11 + $0x20] sm:$0xff] %vm344_vm0, %v332_v36  ;;  %v337_v8 = vmax.f32 %v321_v62, 0.0  ;;  %v339_v9 = vmax.f32 %v323_v63, 0.0  ;;  %v325_v0 = vadd.f32 %v909_v6, %v306_v1  ;;  %v327_v11 = vadd.f32 %v909_v6, %v308_v2 }
  0x2d   : > { %351 = vst.msk [vmem:[%s928_s11 + $0x30] sm:$0xff] %vm344_vm0, %v334_v37  ;;  %v365_v10 = vmax.f32 %v336_v3, %v338_v4  ;;  %v340_v12 = vmax.f32 %v324_v5, 0.0  ;;  %v342_v13 = vmax.f32 %v326_v7, 0.0 }
  0x2e   : > { %372 = vst.msk [vmem:[#allocation2 + $0x18] sm:$0xff] %vm344_vm0, %v364_v47  ;;  %v366_v14 = vmax.f32 %v337_v8, %v339_v9  ;;  %v341_v15 = vmax.f32 %v325_v0, 0.0  ;;  %v343_v16 = vmax.f32 %v327_v11, 0.0 }
  0x2f   : > { %350 = vst.msk [vmem:[%s928_s11 + $0x28] sm:$0xff] %vm344_vm0, %v333_v38  ;;  %v367_v6 = vmax.f32 %v340_v12, %v342_v13  ;;  %v377_v18 = vld [vmem:[#allocation2] ss:$2 sm:$0xff]  ;;  %v385_v19 = vld [vmem:[#allocation2 + $0x1] ss:$2 sm:$0xff] }
  0x30   : > { %352 = vst.msk [vmem:[%s928_s11 + $0x38] sm:$0xff] %vm344_vm0, %v335_v39  ;;  %v368_v17 = vmax.f32 %v341_v15, %v343_v16  ;;  %v392_v22 = vmax.f32 %v377_v18, %v385_v19 }
  0x31   : > { %373 = vst.msk [vmem:[#allocation2 + $0x20] sm:$0xff] %vm344_vm0, %v365_v10 }
  0x32   : > { %353 = vst.msk [vmem:[%s928_s11 + $0x40] sm:$0xff] %vm344_vm0, %v336_v3 }
  0x33   : > { %355 = vst.msk [vmem:[%s928_s11 + $0x50] sm:$0xff] %vm344_vm0, %v338_v4 }
  0x34   : > { %374 = vst.msk [vmem:[#allocation2 + $0x28] sm:$0xff] %vm344_vm0, %v366_v14 }
  0x35   : > { %354 = vst.msk [vmem:[%s928_s11 + $0x48] sm:$0xff] %vm344_vm0, %v337_v8  ;;  %v379_v20 = vld [vmem:[#allocation2 + $0x10] ss:$2 sm:$0xff]  ;;  %v387_v21 = vld [vmem:[#allocation2 + $0x11] ss:$2 sm:$0xff] }
  0x36   : > { %356 = vst.msk [vmem:[%s928_s11 + $0x58] sm:$0xff] %vm344_vm0, %v339_v9  ;;  %v393_v23 = vmax.f32 %v379_v20, %v387_v21 }
  0x37   : > { %375 = vst.msk [vmem:[#allocation2 + $0x30] sm:$0xff] %vm344_vm0, %v367_v6 }
  0x38   : > { %357 = vst.msk [vmem:[%s928_s11 + $0x60] sm:$0xff] %vm344_vm0, %v340_v12 }
  0x39   : > { %359 = vst.msk [vmem:[%s928_s11 + $0x70] sm:$0xff] %vm344_vm0, %v342_v13 }
  0x3a   : > { %376 = vst.msk [vmem:[#allocation2 + $0x38] sm:$0xff] %vm344_vm0, %v368_v17 }
  0x3b   : > { %358 = vst.msk [vmem:[%s928_s11 + $0x68] sm:$0xff] %vm344_vm0, %v341_v15  ;;  %v381_v24 = vld [vmem:[#allocation2 + $0x20] ss:$2 sm:$0xff]  ;;  %v389_v25 = vld [vmem:[#allocation2 + $0x21] ss:$2 sm:$0xff] }
  0x3c   : > { %360 = vst.msk [vmem:[%s928_s11 + $0x78] sm:$0xff] %vm344_vm0, %v343_v16  ;;  %v394_v26 = vmax.f32 %v381_v24, %v389_v25  ;;  %s709_s11 = scalar_lea.hbm %s708_s10, 32 }
  0x3d   : > { %396 = vst.msk [vmem:[%s232_s5] sm:$0xff] %vm344_vm0, %v392_v22  ;;  %p710_p0 = scmp.ne.s32.totalorder %s708_s10, %s709_s11  ;;  %p715_p5 = scmp.lt.s32.totalorder %s713_s23, %s709_s11 }
  0x3e   : > { %397 = vst.msk [vmem:[%s232_s5 + $0x8] sm:$0xff] %vm344_vm0, %v393_v23 }
  0x3f   : > { %398 = vst.msk [vmem:[%s232_s5 + $0x10] sm:$0xff] %vm344_vm0, %v394_v26  ;;  %p711_p1 = pnand %p710_p0, %p867_p3  ;;  %p716_p6 = por %p715_p5, %p714_p4 }
  0x41   : > { %v383_v27 = vld [vmem:[#allocation2 + $0x30] ss:$2 sm:$0xff]  ;;  %v391_v28 = vld [vmem:[#allocation2 + $0x31] ss:$2 sm:$0xff]  ;;  %p712_p2 = pneg %p711_p1 }
  0x42   : > { %v395_v29 = vmax.f32 %v383_v27, %v391_v28 }
  0x43   : > { %p717_p7 = pnand %p716_p6, %p712_p2 }
  0x44   : > { %399 = vst.msk [vmem:[%s232_s5 + $0x18] sm:$0xff] %vm344_vm0, %v395_v29 }
  0x45   : > { %720 = shalt.err (!%p717_p7)
}
  0x46   : > { %s789_s14 = smov 128   ;;  %s790_s19 = smov 8  }
  0x47   : > { %618 = dma.vmem_to_hbm [thread:$0]  (%p867_p3), %s430_s6, 512, %s432_s8, %s411_s9, %s789_s14, %s789_s14, %s790_s19  }
  0x48 PF: > { %p624_p9 = scmp.ge.s32.totalorder %s787_s22, 2  ;;  %s459_s27 = sand.u32 1, %s759_s15  }
  0x49   : > { %s460_s30 = scalar_lea.sflag [#allocation4], %s459_s27 }
  0x4a   : > { %p621_p10 = pnand %p624_p9, %p876_p8 }
  0x4c   : > { %p622_p11 = pneg %p621_p10 }
  0x4e   : > { %754 = dma.done.wait (%p622_p11), %s460_s30, 512  }
  0x4f   : > { %756 = vsyncadd (%p622_p11), %s460_s30, 4294966784  ;;  %s18_s22 = sadd.s32 1, %s787_s22   ;;  %s1053_s15 = smov %s763_s16 }
  0x50   : > { %p15_p12 = scmp.ge.s32.totalorder %s18_s22, 6   ;;  %s1054_s16 = smov %s767_s17 }
  0x51   : > { %s1055_s17 = smov %s885_s7  ;;  %s1056_s18 = smov %s779_s20 }
  0x52   : > { %s1057_s19 = smov %s783_s21  ;;  %s1058_s20 = smov %s1061_s25 }
  0x53   : > { %s1059_s21 = smov %s1065_s26  ;;  %17 = sbr.rel (!%p15_p12) target bundleno = 5 (0x5), region = 86 }
  0x58   :  { %466 = vsyncpa [#allocation4], 1 }
  0x59   :  { %468 = vsyncpa [#allocation4 + $0x1], 1 }

// kernel: encoder_block_forward.3
= control target key start
LH: loop header
LB: loop body
LE: loop exit
PB: predicated region body
PF: predicated region fallthrough
CT: control target
= control target key end

     0   :  { %s1965_s24 = smov 0   ;;  %s1967_s25 = smov 0   ;;  %s2515_s0 = inlined_call_operand.vmem [shape: f32[2,16,16,4], index: 0, kind: input, shape index: {}, may-alias: {0,1,2}]   ;;  %s2516_s1 = inlined_call_operand.vmem [shape: f32[2,16,16,4], index: 1, kind: input, shape index: {}, may-alias: {0,1,2}]   ;;  %s2517_s2 = inlined_call_operand.vmem [shape: f32[2,16,16,4], index: 2, kind: input, shape index: {}, may-alias: {0,1,2}]   ;;  %s2518_s3 = inlined_call_operand.vmem [shape: bf16[9,4,16], index: 3, kind: input, shape index: {}]   ;;  %s2519_s4 = inlined_call_operand.vmem [shape: f32[1,4], index: 4, kind: input, shape index: {}]   ;;  %s2520_s5 = inlined_call_operand.vmem [shape: f32[1,4], index: 5, kind: input, shape index: {}]   ;;  %s2521_s6 = inlined_call_operand.vmem [shape: bf16[2,16,16,16], index: 6, kind: output, shape index: {0}]   ;;  %s2522_s7 = inlined_call_operand.vmem [shape: f32[2,2,2,16], index: 7, kind: output, shape index: {1}]  }
   0x1   :  { %s1969_s26 = smov 0   ;;  %s1971_s27 = smov 0  }
   0x2   :  { %s1973_s28 = smov 0  }
   0x3 LB: > { %s27_s4 = sadd.s32 1, %s1915_s26  ;;  %s30_s5 = sadd.s32 1, %s1919_s27  ;;  %s1923_s28 = sphi %s1973_s28, %s18_s28   ;;  %s1919_s27 = sphi %s1971_s27, %s2531_s27   ;;  %s1915_s26 = sphi %s1969_s26, %s2530_s26   ;;  %s1911_s25 = sphi %s1967_s25, %s2529_s25   ;;  %s1907_s24 = sphi %s1965_s24, %s2528_s24  }
   0x4   : > { %p28_p0 = scmp.ge.s32.totalorder %s27_s4, 2  ;;  %p1712_p1 = scmp.ge.s32.totalorder %s1923_s28, 1 }
   0x5   : > { %p328_p2 = scmp.lt.s32.totalorder %s1923_s28, 5 }
   0x6   : > { %s2533_s4 = smov (%p28_p0, %s27_s4), 0  ;;  %s2535_s5 = smov (!%p28_p0, %s30_s5), %s1919_s27 }
   0x7   : > { %p329_p3 = pnand %p1712_p1, %p328_p2  ;;  %p32_p4 = scmp.ge.s32.totalorder %s2535_s5, 2 }
   0x8   : > { %s2001_s8 = sshll.u32 (!%p329_p3), %s1907_s24, 3  ;;  %p405_p5 = scmp.lt.s32.totalorder (!%p329_p3), %s1911_s25, 1 }
   0x9   : > { %s2537_s5 = smov (%p32_p4, %s2535_s5), 0  ;;  %332 = sbr.rel (%p329_p3) target bundleno = 467 (0x1d3), region = 44 }
   0xa   : > { %p407_p6 = scmp.lt.s32.totalorder (!%p329_p3), %s2001_s8, 15  ;;  %s1718_s19 = sadd.s32 (!%p329_p3), 4294967295, %s2001_s8 }
   0xb   : > { %p417_p7 = scmp.gt.s32.totalorder (!%p329_p3), %s1718_s19, 0  ;;  %p1719_p8 = scmp.lt.s32.totalorder (!%p329_p3), %s1718_s19, 15 }
   0xc   : > { %p471_p9 = scmp.gt.s32.totalorder (!%p329_p3), %s1907_s24, 0  ;;  %p462_p11 = scmp.lt.s32.totalorder (!%p329_p3), %s1907_s24, 1 }
   0xe   : > { %v1740_v0 = vld [vmem:[%s2518_s3 + $0x2] sm:$0x3]  ;;  %vm727_vm0 = vcmask 1041408   ;;  %v1757_v2 = vld [vmem:[%s2518_s3 + $0x4] sm:$0x3]  ;;  %s2539_s25 = smov (!%p405_p5, %s1911_s25), 1 }
   0xf   : > { %v729_v1 = vsel %vm727_vm0, %v1740_v0, 0  ;;  %v1766_v3 = vld [vmem:[%s2518_s3 + $0x6] sm:$0x3]  ;;  %v883_v4 = vsel %vm727_vm0, %v1757_v2, 0  ;;  %v707_v6 = vld [vmem:[%s2518_s3] sm:$0x3] }
  0x10   : > { %1830 = vmatpush.bf16.msra.mxu1 %v729_v1  ;;  %1831 = vmatpush.bf16.msra.mxu2 %v729_v1  ;;  %v956_v5 = vsel %vm727_vm0, %v1766_v3, 0  ;;  %s408_s15 = scalar_select %p407_p6, %s2001_s8, 15  ;;  %v805_v7 = vsel %vm727_vm0, %v707_v6, 0  ;;  %v1775_v8 = vld [vmem:[%s2518_s3 + $0x8] sm:$0x3]  ;;  %vm710_vm1 = vcmask 31744  }
  0x11   : > { %1832 = vmatpush.bf16.msra.mxu3 %v729_v1  ;;  %s2024_s18 = sshll.u32 %s2539_s25, 5  ;;  %738 = vmatpush.bf16.msra.mxu0 %v729_v1  ;;  %v1028_v9 = vsel %vm727_vm0, %v1775_v8, 0  ;;  %v1793_v35 = vld [vmem:[%s2518_s3 + $0xc] sm:$0x3]  ;;  %v1802_v36 = vld [vmem:[%s2518_s3 + $0xe] sm:$0x3] }
  0x12   : > { %s1714_s20 = sshll.u32 %s408_s15, 1  ;;  %v1174_v46 = vsel %vm727_vm0, %v1793_v35, 0  ;;  %v1246_v47 = vsel %vm727_vm0, %v1802_v36, 0  ;;  %v1784_v1 = vld [vmem:[%s2518_s3 + $0xa] sm:$0x3]  ;;  %vm651_vm2 = vcmask 1040384  }
  0x13   : > { %s2029_s21 = sadd.s32 %s2024_s18, %s1714_s20  ;;  %v1811_v2 = vld [vmem:[%s2518_s3 + $0x10] sm:$0x3]  ;;  %vm652_vm3 = vsmask.f32 256  ;;  %vm694_vm4 = vcmask 1047552   ;;  %vm1402_vm8 = vcmask 125952  }
  0x14   : > { %892 = vmatpush.bf16.msrb.mxu2 %v883_v4  ;;  %814 = vmatpush.bf16.msrb.mxu1 %v805_v7  ;;  %s1716_s22 = sshll.u32 %s2029_s21, 3  ;;  %v1319_v6 = vsel %vm727_vm0, %v1811_v2, 0  ;;  %vm695_vm5 = vsmask.f32 7424  ;;  %vm2101_vm6 = vmand %vm651_vm2, %vm652_vm3  ;;  %s1737_s17 = sshll.u32 %s2029_s21, 2  ;;  %vm1419_vm9 = vcmask 130048  }
  0x15   : > { %965 = vmatpush.bf16.msrb.mxu3 %v956_v5  ;;  %1037 = vmatpush.bf16.msrb.mxu0 %v1028_v9  ;;  %s2036_s30 = scalar_lea.vmem %s2515_s0, %s1716_s22  ;;  %v1101_v5 = vsel %vm727_vm0, %v1784_v1, 0  ;;  %vm2106_vm7 = vmand %vm694_vm4, %vm695_vm5  ;;  %s2411_s22 = scalar_lea.vmem %s2521_s6, %s1737_s17  ;;  %vm1512_vm10 = vcmask 123904  }
  0x16   : > { %v487_v10 = vld [vmem:[%s2036_s30 + $0x10] sm:$0xff]  ;;  %v488_v11 = vld [vmem:[%s2036_s30 + $0x18] sm:$0xff]  ;;  %s418_s9 = scalar_select %p417_p7, %s1718_s19, 0  ;;  %v489_v31 = vld [vmem:[%s2036_s30 + $0x20] sm:$0xff] }
  0x17   : > { %v491_v12 = vld [vmem:[%s2036_s30 + $0x30] sm:$0xff]  ;;  %v505_v13 = vpack.c.bf16 %v487_v10, %v487_v10  ;;  %v506_v14 = vpack.c.bf16 %v488_v11, %v488_v11  ;;  %v492_v15 = vld [vmem:[%s2036_s30 + $0x38] sm:$0xff]  ;;  %v490_v32 = vld [vmem:[%s2036_s30 + $0x28] sm:$0xff]  ;;  %s1874_s16 = scalar_select %p471_p9, 255, 0  ;;  %v507_v40 = vpack.c.bf16 %v489_v31, %v489_v31 }
  0x18   : > { %v509_v16 = vpack.c.bf16 %v491_v12, %v491_v12  ;;  %v495_v17 = vld [vmem:[%s2036_s30 + $0x50] sm:$0xff]  ;;  %v496_v18 = vld [vmem:[%s2036_s30 + $0x58] sm:$0xff]  ;;  %v510_v19 = vpack.c.bf16 %v492_v15, %v492_v15  ;;  %s2541_s9 = smov (!%p1719_p8, %s418_s9), 15  ;;  %v493_v33 = vld [vmem:[%s2036_s30 + $0x40] sm:$0xff]  ;;  %v508_v41 = vpack.c.bf16 %v490_v32, %v490_v32  ;;  %s2547_s24 = smov (!%p462_p11, %s1907_s24), 1 }
  0x19   : > { %v513_v20 = vpack.c.bf16 %v495_v17, %v495_v17  ;;  %v514_v21 = vpack.c.bf16 %v496_v18, %v496_v18  ;;  %v545_v22 = vunpack.c.l.b16 %v505_v13  ;;  %v546_v23 = vunpack.c.l.b16 %v506_v14  ;;  %s1724_s10 = sshll.u32 %s2541_s9, 1  ;;  %v494_v34 = vld [vmem:[%s2036_s30 + $0x48] sm:$0xff]  ;;  %v497_v37 = vld [vmem:[%s2036_s30 + $0x60] sm:$0xff]  ;;  %s1738_s21 = sshll.u32 %s2539_s25, 1 }
  0x1a   : > { %v549_v24 = vunpack.c.l.b16 %v509_v16  ;;  %v550_v25 = vunpack.c.l.b16 %v510_v19  ;;  %s425_s11 = sadd.s32 %s1724_s10, %s2024_s18  ;;  %v498_v38 = vld [vmem:[%s2036_s30 + $0x68] sm:$0xff]  ;;  %v511_v42 = vpack.c.bf16 %v493_v33, %v493_v33  ;;  %v512_v45 = vpack.c.bf16 %v494_v34, %v494_v34  ;;  %v485_v51 = vld [vmem:[%s2036_s30] sm:$0xff]  ;;  %s465_s23 = sadd.s32 %s1738_s21, %s2547_s24 }
  0x1b   : > { %v553_v26 = vunpack.c.l.b16 %v513_v20  ;;  %v554_v27 = vunpack.c.l.b16 %v514_v21  ;;  %v2045_v28 = vpack.c.b16 %v546_v23, %v545_v22  ;;  %s1726_s12 = sshll.u32 %s425_s11, 3  ;;  %v515_v49 = vpack.c.bf16 %v497_v37, %v497_v37  ;;  %v486_v52 = vld [vmem:[%s2036_s30 + $0x8] sm:$0xff]  ;;  %s1739_s29 = sshll.u32 %s465_s23, 1 }
  0x1c   : > { %v2048_v29 = vpack.c.b16 %v550_v25, %v549_v24  ;;  %s427_s15 = scalar_lea.vmem %s2516_s1, %s1726_s12  ;;  %v516_v50 = vpack.c.bf16 %v498_v38, %v498_v38  ;;  %v547_v55 = vunpack.c.l.b16 %v507_v40  ;;  %v548_v56 = vunpack.c.l.b16 %v508_v41 }
  0x1d   : > { %v2050_v30 = vpack.c.b16 %v554_v27, %v553_v26  ;;  %1743 = vmatmul.msk.bf16.vlgmr.msra.gmra.mxu1 %vm710_vm1, %v2045_v28  ;;  %v1875_v39 = vld [vmem:[%s427_s15] sm:%s1874_s16]  ;;  %v1878_v43 = vld [vmem:[%s427_s15 + $0x8] sm:%s1874_s16]  ;;  %v551_v57 = vunpack.c.l.b16 %v511_v42  ;;  %v503_v58 = vpack.c.bf16 %v485_v51, %v485_v51  ;;  %v504_v59 = vpack.c.bf16 %v486_v52, %v486_v52  ;;  %s1880_s14 = scalar_select %p462_p11, 255, 0 }
  0x1e   : > { %1745 = vmatmul.msk.bf16.vlgmr.msra.gmra.mxu2 %vm710_vm1, %v2048_v29  ;;  %v501_v44 = vpack.c.bf16 %v1875_v39, %v1875_v39  ;;  %v502_v48 = vpack.c.bf16 %v1878_v43, %v1878_v43  ;;  %v552_v61 = vunpack.c.l.b16 %v512_v45  ;;  %v555_v62 = vunpack.c.l.b16 %v515_v49  ;;  %1110 = vmatpush.bf16.msra.mxu1 %v1101_v5 }
  0x1f   : > { %1747 = vmatmul.msk.bf16.vlgmr.msra.gmra.mxu3 %vm710_vm1, %v2050_v30  ;;  %1183 = vmatpush.bf16.msra.mxu2 %v1174_v46  ;;  %v556_v63 = vunpack.c.l.b16 %v516_v50  ;;  %v2080_v0 = vpack.c.b16 %v548_v56, %v547_v55  ;;  %v543_v3 = vunpack.c.l.b16 %v503_v58  ;;  %v544_v4 = vunpack.c.l.b16 %v504_v59 }
  0x20   : > { %1255 = vmatpush.bf16.msra.mxu3 %v1246_v47  ;;  %v541_v53 = vunpack.c.l.b16 %v501_v44  ;;  %v542_v54 = vunpack.c.l.b16 %v502_v48  ;;  %v2090_v7 = vpack.c.b16 %v552_v61, %v551_v57  ;;  %v586_v25 = vshrl.u32 %v2045_v28, 16 }
  0x21   : > { %v2092_v8 = vpack.c.b16 %v556_v63, %v555_v62  ;;  %v562_v9 = vpack.c.b16 %v544_v4, %v543_v3  ;;  %v589_v31 = vshll.u32 %v2045_v28, 16  ;;  %v593_v36 = vshrl.u32 %v2080_v0, 16 }
  0x22   : > { %v561_v60 = vpack.c.b16 %v542_v54, %v541_v53  ;;  %v588_v27 = vrot.slane %v586_v25, 7  ;;  %v596_v39 = vshll.u32 %v2080_v0, 16  ;;  %v600_v44 = vshrl.u32 %v2048_v29, 16 }
  0x23   : > { %v579_v12 = vshrl.u32 %v562_v9, 16  ;;  %v582_v16 = vshll.u32 %v562_v9, 16  ;;  %v668_v37 = vrot.slane %v589_v31, 1  ;;  %v595_v38 = vrot.slane %v593_v36, 7 }
  0x24   : > { %1741 = vmatmul.msk.bf16.vlgmr.msra.gmra.mxu0 %vm710_vm1, %v561_v60  ;;  %v572_v10 = vshrl.u32 %v561_v60, 16  ;;  %v575_v11 = vshll.u32 %v561_v60, 16  ;;  %v591_v33 = vor.u32 %v589_v31, %v588_v27  ;;  %v670_v45 = vrot.slane %v596_v39, 1 }
  0x25   : > { %1328 = vmatpush.bf16.msra.mxu0 %v1319_v6  ;;  %v581_v15 = vrot.slane %v579_v12, 7  ;;  %v666_v26 = vrot.slane %v582_v16, 1  ;;  %v669_v40 = vor.u32 %v668_v37, %v586_v25  ;;  %v598_v41 = vor.u32 %v596_v39, %v595_v38  ;;  %v499_v6 = vld [vmem:[%s2036_s30 + $0x70] sm:$0xff] }
  0x26   : > { %v574_v13 = vrot.slane %v572_v10, 7  ;;  %v664_v14 = vrot.slane %v575_v11, 1  ;;  %v2128_v35 = vsel %vm2101_vm6, 0, %v591_v33  ;;  %v602_v46 = vrot.slane %v600_v44, 7 }
  0x27   : > { %v584_v20 = vor.u32 %v582_v16, %v581_v15  ;;  %v667_v32 = vor.u32 %v666_v26, %v579_v12  ;;  %v2141_v42 = vsel %vm2106_vm7, %v669_v40, 0  ;;  %v2145_v43 = vsel %vm2101_vm6, 0, %v598_v41 }
  0x28   : > { %v577_v17 = vor.u32 %v575_v11, %v574_v13  ;;  %v665_v19 = vor.u32 %v664_v14, %v572_v10  ;;  %v603_v47 = vshll.u32 %v2048_v29, 16  ;;  %v671_v48 = vor.u32 %v670_v45, %v593_v36 }
  0x29   : > { %v655_v24 = vsel %vm2101_vm6, 0, %v584_v20  ;;  %v2124_v34 = vsel %vm2106_vm7, %v667_v32, 0  ;;  %v607_v52 = vshrl.u32 %v2090_v7, 16  ;;  %v610_v55 = vshll.u32 %v2090_v7, 16 }
  0x2a   : > { %v654_v22 = vsel %vm2101_vm6, 0, %v577_v17  ;;  %v697_v23 = vsel %vm2106_vm7, %v665_v19, 0  ;;  %v605_v49 = vor.u32 %v603_v47, %v602_v46  ;;  %v2159_v50 = vsel %vm2106_vm7, %v671_v48, 0 }
  0x2b   : > { %v672_v53 = vrot.slane %v603_v47, 1  ;;  %v609_v54 = vrot.slane %v607_v52, 7  ;;  %v614_v60 = vshrl.u32 %v2050_v30, 16  ;;  %v674_v61 = vrot.slane %v610_v55, 1 }
  0x2c   : > { %v2163_v51 = vsel %vm2101_vm6, 0, %v605_v49  ;;  %v617_v63 = vshll.u32 %v2050_v30, 16  ;;  %v621_v5 = vshrl.u32 %v2092_v8, 16  ;;  %v624_v12 = vshll.u32 %v2092_v8, 16 }
  0x2d   : > { %1744 = vmatmul.msk.bf16.gmra.mxu1 %vm710_vm1, %v2080_v0  ;;  %v673_v56 = vor.u32 %v672_v53, %v600_v44  ;;  %v612_v57 = vor.u32 %v610_v55, %v609_v54  ;;  %v616_v62 = vrot.slane %v614_v60, 7  ;;  %v675_v1 = vor.u32 %v674_v61, %v607_v52 }
  0x2e   : > { %1746 = vmatmul.msk.bf16.gmra.mxu2 %vm710_vm1, %v2090_v7  ;;  %v676_v10 = vrot.slane %v617_v63, 1  ;;  %v623_v11 = vrot.slane %v621_v5, 7  ;;  %v517_v13 = vpack.c.bf16 %v499_v6, %v499_v6  ;;  %v678_v32 = vrot.slane %v624_v12, 1 }
  0x2f   : > { %1748 = vmatmul.msk.bf16.gmra.mxu3 %vm710_vm1, %v2092_v8  ;;  %v2177_v58 = vsel %vm2106_vm7, %v673_v56, 0  ;;  %v2181_v59 = vsel %vm2101_vm6, 0, %v612_v57  ;;  %v619_v2 = vor.u32 %v617_v63, %v616_v62  ;;  %v2195_v3 = vsel %vm2106_vm7, %v675_v1, 0 }
  0x30   : > { %v677_v15 = vor.u32 %v676_v10, %v614_v60  ;;  %v626_v16 = vor.u32 %v624_v12, %v623_v11  ;;  %v557_v17 = vunpack.c.l.b16 %v517_v13  ;;  %v679_v38 = vor.u32 %v678_v32, %v621_v5 }
  0x31   : > { %v2199_v4 = vsel %vm2101_vm6, 0, %v619_v2 }
  0x32   : > { %v2253_v45 = vsel %vm2106_vm7, %v679_v38, 0 }
  0x34   : > { %1742 = vmatmul.msk.bf16.gmra.mxu0 %vm710_vm1, %v562_v9 }
  0x3d   : > { %1749 = vmatmul.msk.bf16.vlgmr.msrb.gmra.mxu1 %vm710_vm1, %v654_v22  ;;  %v2217_v22 = vsel %vm2106_vm7, %v677_v15, 0 }
  0x3e   : > { %1758 = vmatmul.msk.bf16.vlgmr.msrb.gmra.mxu2 %vm710_vm1, %v697_v23  ;;  %v2221_v23 = vsel %vm2101_vm6, 0, %v626_v16 }
  0x3f   : > { %1767 = vmatmul.msk.bf16.vlgmr.msrb.gmra.mxu3 %vm710_vm1, %v655_v24 }
  0x44   : > { %1776 = vmatmul.msk.bf16.vlgmr.msrb.gmra.mxu0 %vm710_vm1, %v562_v9  ;;  %v500_v9 = vld [vmem:[%s2036_s30 + $0x78] sm:$0xff]  ;;  %s1829_s30 = sadd.s32 8, %s2001_s8 }
  0x45   : > { %v518_v14 = vpack.c.bf16 %v500_v9, %v500_v9  ;;  %p2328_p10 = scmp.lt.s32.totalorder %s1829_s30, 15 }
  0x47   : > { %v558_v19 = vunpack.c.l.b16 %v518_v14  ;;  %s2543_s30 = smov (!%p2328_p10, %s1829_s30), 15 }
  0x48   : > { %s2545_s30 = smov (!%p2328_p10, %s2543_s30), 15 }
  0x49   : > { %s1731_s8 = sshll.u32 %s2545_s30, 1  ;;  %s467_s30 = scalar_lea.vmem %s2522_s7, %s1739_s29 }
  0x4a   : > { %s442_s12 = sadd.s32 %s1731_s8, %s2024_s18 }
  0x4b   : > { %s1733_s13 = sshll.u32 %s442_s12, 3 }
  0x4c   : > { %s444_s18 = scalar_lea.vmem %s2517_s2, %s1733_s13 }
  0x4d   : > { %1750 = vmatmul.msk.bf16.gmra.mxu1 %vm710_vm1, %v655_v24  ;;  %v2223_v24 = vpack.c.b16 %v558_v19, %v557_v17 }
  0x4e   : > { %1759 = vmatmul.msk.bf16.gmra.mxu2 %vm710_vm1, %v2124_v34 }
  0x4f   : > { %1768 = vmatmul.msk.bf16.gmra.mxu3 %vm710_vm1, %v2128_v35  ;;  %v628_v25 = vshrl.u32 %v2223_v24, 16  ;;  %v631_v36 = vshll.u32 %v2223_v24, 16 }
  0x51   : > { %v630_v33 = vrot.slane %v628_v25, 7 }
  0x53   : > { %v633_v39 = vor.u32 %v631_v36, %v630_v33 }
  0x54   : > { %1777 = vmatmul.msk.bf16.gmra.mxu0 %vm710_vm1, %v2045_v28 }
  0x55   : > { %v2257_v46 = vsel %vm2101_vm6, 0, %v633_v39 }
  0x5d   : > { %1751 = vmatmul.msk.bf16.gmra.mxu1 %vm710_vm1, %v2128_v35 }
  0x5e   : > { %1760 = vmatmul.msk.bf16.gmra.mxu2 %vm710_vm1, %v2141_v42 }
  0x5f   : > { %1769 = vmatmul.msk.bf16.gmra.mxu3 %vm710_vm1, %v2145_v43 }
  0x64   : > { %1778 = vmatmul.msk.bf16.gmra.mxu0 %vm710_vm1, %v2080_v0 }
  0x6d   : > { %1752 = vmatmul.msk.bf16.gmra.mxu1 %vm710_vm1, %v2145_v43 }
  0x6e   : > { %1761 = vmatmul.msk.bf16.gmra.mxu2 %vm710_vm1, %v2159_v50 }
  0x6f   : > { %1770 = vmatmul.msk.bf16.gmra.mxu3 %vm710_vm1, %v2163_v51 }
  0x74   : > { %1779 = vmatmul.msk.bf16.gmra.mxu0 %vm710_vm1, %v2048_v29 }
  0x7d   : > { %1753 = vmatmul.msk.bf16.gmra.mxu1 %vm710_vm1, %v2163_v51 }
  0x7e   : > { %1762 = vmatmul.msk.bf16.gmra.mxu2 %vm710_vm1, %v2177_v58 }
  0x7f   : > { %1771 = vmatmul.msk.bf16.gmra.mxu3 %vm710_vm1, %v2181_v59 }
  0x84   : > { %1780 = vmatmul.msk.bf16.gmra.mxu0 %vm710_vm1, %v2090_v7 }
  0x8d   : > { %1754 = vmatmul.msk.bf16.gmra.mxu1 %vm710_vm1, %v2181_v59 }
  0x8e   : > { %1763 = vmatmul.msk.bf16.gmra.mxu2 %vm710_vm1, %v2195_v3 }
  0x8f   : > { %1772 = vmatmul.msk.bf16.gmra.mxu3 %vm710_vm1, %v2199_v4 }
  0x94   : > { %1781 = vmatmul.msk.bf16.gmra.mxu0 %vm710_vm1, %v2050_v30 }
  0x9a   : > { %v2213_v20 = vpop.f32.mrf.mxu1 }
  0x9d   : > { %1755 = vmatmul.msk.bf16.gmra.mxu1 %vm710_vm1, %v2199_v4 }
  0x9e   : > { %1764 = vmatmul.msk.bf16.gmra.mxu2 %vm710_vm1, %v2217_v22 }
  0x9f   : > { %1773 = vmatmul.msk.bf16.gmra.mxu3 %vm710_vm1, %v2221_v23 }
  0xa1   : > { %v2232_v26 = vpop.f32.mrf.mxu2  ;;  %v740_v37 = vpop.f32.mrf.mxu0 }
  0xa2   : > { %v2234_v27 = vpop.f32.mrf.mxu3  ;;  %v2236_v31 = vpop.f32.mrf.mxu1 }
  0xa4   : > { %1782 = vmatmul.msk.bf16.gmra.mxu0 %vm710_vm1, %v2092_v8 }
  0xa9   : > { %v2245_v40 = vpop.f32.mrf.mxu2  ;;  %v742_v47 = vpop.f32.mrf.mxu0 }
  0xaa   : > { %v2247_v41 = vpop.f32.mrf.mxu3  ;;  %v2249_v44 = vpop.f32.mrf.mxu1 }
  0xad   : > { %1756 = vmatmul.msk.bf16.gmra.mxu1 %vm710_vm1, %v2221_v23 }
  0xae   : > { %1765 = vmatmul.msk.bf16.gmra.mxu2 %vm710_vm1, %v2253_v45 }
  0xaf   : > { %1774 = vmatmul.msk.bf16.gmra.mxu3 %vm710_vm1, %v2257_v46 }
  0xb1   : > { %v2265_v48 = vpop.f32.mrf.mxu2  ;;  %v745_v53 = vpop.f32.mrf.mxu0 }
  0xb2   : > { %v2267_v49 = vpop.f32.mrf.mxu3  ;;  %v2269_v52 = vpop.f32.mrf.mxu1 }
  0xb4   : > { %1783 = vmatmul.msk.bf16.gmra.mxu0 %vm710_vm1, %v2223_v24 }
  0xb9   : > { %v2273_v54 = vpop.f32.mrf.mxu2  ;;  %v747_v60 = vpop.f32.mrf.mxu0 }
  0xba   : > { %v2275_v55 = vpop.f32.mrf.mxu3  ;;  %v816_v56 = vpop.f32.mrf.mxu1 }
  0xbb   : > { %v817_v57 = vadd.f32 %v816_v56, %v740_v37 }
  0xbd   : > { %1785 = vmatmul.msk.bf16.vlgmr.msra.gmra.mxu1 %vm710_vm1, %v2124_v34 }
  0xbe   : > { %1794 = vmatmul.msk.bf16.vlgmr.msra.gmra.mxu2 %vm710_vm1, %v2128_v35 }
  0xbf   : > { %1803 = vmatmul.msk.bf16.vlgmr.msra.gmra.mxu3 %vm710_vm1, %v2045_v28 }
  0xc1   : > { %v894_v61 = vpop.f32.mrf.mxu2  ;;  %v1039_v6 = vpop.f32.mrf.mxu0 }
  0xc2   : > { %v967_v62 = vpop.f32.mrf.mxu3  ;;  %v934_v63 = vadd.f32 %v894_v61, %v817_v57  ;;  %v818_v1 = vpop.f32.mrf.mxu1 }
  0xc3   : > { %v819_v2 = vadd.f32 %v818_v1, %v742_v47 }
  0xc4   : > { %v1007_v5 = vadd.f32 %v967_v62, %v934_v63  ;;  %1812 = vmatmul.msk.bf16.vlgmr.msra.gmra.mxu0 %vm710_vm1, %v2141_v42 }
  0xc6   : > { %v2283_v9 = vadd.f32 %v1039_v6, %v1007_v5 }
  0xc9   : > { %v896_v10 = vpop.f32.mrf.mxu2  ;;  %v1041_v14 = vpop.f32.mrf.mxu0 }
  0xca   : > { %v969_v34 = vpop.f32.mrf.mxu3  ;;  %v935_v11 = vadd.f32 %v896_v10, %v819_v2  ;;  %v821_v12 = vpop.f32.mrf.mxu1 }
  0xcb   : > { %v822_v35 = vadd.f32 %v821_v12, %v745_v53 }
  0xcc   : > { %v1008_v13 = vadd.f32 %v969_v34, %v935_v11 }
  0xcd   : > { %1786 = vmatmul.msk.bf16.gmra.mxu1 %vm710_vm1, %v2141_v42 }
  0xce   : > { %1795 = vmatmul.msk.bf16.gmra.mxu2 %vm710_vm1, %v2145_v43  ;;  %v2293_v28 = vadd.f32 %v1041_v14, %v1008_v13 }
  0xcf   : > { %1804 = vmatmul.msk.bf16.gmra.mxu3 %vm710_vm1, %v2080_v0 }
  0xd1   : > { %v899_v15 = vpop.f32.mrf.mxu2  ;;  %v1044_v37 = vpop.f32.mrf.mxu0 }
  0xd2   : > { %v972_v16 = vpop.f32.mrf.mxu3  ;;  %v936_v17 = vadd.f32 %v899_v15, %v822_v35  ;;  %v823_v19 = vpop.f32.mrf.mxu1 }
  0xd3   : > { %v824_v32 = vadd.f32 %v823_v19, %v747_v60 }
  0xd4   : > { %v1009_v33 = vadd.f32 %v972_v16, %v936_v17  ;;  %1813 = vmatmul.msk.bf16.gmra.mxu0 %vm710_vm1, %v2159_v50 }
  0xd6   : > { %v2295_v38 = vadd.f32 %v1044_v37, %v1009_v33 }
  0xd9   : > { %v901_v42 = vpop.f32.mrf.mxu2  ;;  %v1046_v56 = vpop.f32.mrf.mxu0 }
  0xda   : > { %v974_v39 = vpop.f32.mrf.mxu3  ;;  %v937_v43 = vadd.f32 %v901_v42, %v824_v32  ;;  %v826_v47 = vpop.f32.mrf.mxu1 }
  0xdb   : > { %v827_v0 = vadd.f32 %v826_v47, %v2213_v20 }
  0xdc   : > { %v1010_v53 = vadd.f32 %v974_v39, %v937_v43 }
  0xdd   : > { %1787 = vmatmul.msk.bf16.gmra.mxu1 %vm710_vm1, %v2159_v50 }
  0xde   : > { %1796 = vmatmul.msk.bf16.gmra.mxu2 %vm710_vm1, %v2163_v51  ;;  %v2306_v57 = vadd.f32 %v1046_v56, %v1010_v53 }
  0xdf   : > { %1805 = vmatmul.msk.bf16.gmra.mxu3 %vm710_vm1, %v2048_v29 }
  0xe1   : > { %v904_v60 = vpop.f32.mrf.mxu2  ;;  %v1049_v2 = vpop.f32.mrf.mxu0 }
  0xe2   : > { %v977_v61 = vpop.f32.mrf.mxu3  ;;  %v938_v62 = vadd.f32 %v904_v60, %v827_v0  ;;  %v828_v63 = vpop.f32.mrf.mxu1 }
  0xe3   : > { %v829_v1 = vadd.f32 %v828_v63, %v2236_v31 }
  0xe4   : > { %v1011_v20 = vadd.f32 %v977_v61, %v938_v62  ;;  %1814 = vmatmul.msk.bf16.gmra.mxu0 %vm710_vm1, %v2177_v58 }
  0xe6   : > { %v2309_v5 = vadd.f32 %v1049_v2, %v1011_v20  ;;  %v1884_v20 = vld [vmem:[%s444_s18 + $0x8] sm:%s1880_s14] }
  0xe9   : > { %v906_v50 = vpop.f32.mrf.mxu2  ;;  %v1051_v11 = vpop.f32.mrf.mxu0 }
  0xea   : > { %v979_v51 = vpop.f32.mrf.mxu3  ;;  %v939_v6 = vadd.f32 %v906_v50, %v829_v1  ;;  %v831_v29 = vpop.f32.mrf.mxu1  ;;  %v1881_v1 = vld [vmem:[%s444_s18] sm:%s1880_s14] }
  0xeb   : > { %v832_v10 = vadd.f32 %v831_v29, %v2249_v44  ;;  %v520_v29 = vpack.c.bf16 %v1884_v20, %v1884_v20 }
  0xec   : > { %v1012_v34 = vadd.f32 %v979_v51, %v939_v6  ;;  %v519_v6 = vpack.c.bf16 %v1881_v1, %v1881_v1 }
  0xed   : > { %1788 = vmatmul.msk.bf16.gmra.mxu1 %vm710_vm1, %v2177_v58 }
  0xee   : > { %1797 = vmatmul.msk.bf16.gmra.mxu2 %vm710_vm1, %v2181_v59  ;;  %v2320_v31 = vadd.f32 %v1051_v11, %v1012_v34 }
  0xef   : > { %1806 = vmatmul.msk.bf16.gmra.mxu3 %vm710_vm1, %v2090_v7 }
  0xf1   : > { %v909_v12 = vpop.f32.mrf.mxu2  ;;  %v1054_v16 = vpop.f32.mrf.mxu0 }
  0xf2   : > { %v982_v35 = vpop.f32.mrf.mxu3  ;;  %v940_v13 = vadd.f32 %v909_v12, %v832_v10  ;;  %v833_v14 = vpop.f32.mrf.mxu1  ;;  %v560_v12 = vunpack.c.l.b16 %v520_v29 }
  0xf3   : > { %v834_v15 = vadd.f32 %v833_v14, %v2269_v52 }
  0xf4   : > { %v1013_v44 = vadd.f32 %v982_v35, %v940_v13  ;;  %1815 = vmatmul.msk.bf16.gmra.mxu0 %vm710_vm1, %v2195_v3 }
  0xf6   : > { %v2324_v17 = vadd.f32 %v1054_v16, %v1013_v44 }
  0xf9   : > { %v911_v7 = vpop.f32.mrf.mxu2  ;;  %v1056_v32 = vpop.f32.mrf.mxu0 }
  0xfa   : > { %v984_v58 = vpop.f32.mrf.mxu3  ;;  %v941_v59 = vadd.f32 %v911_v7, %v834_v15  ;;  %v836_v19 = vpop.f32.mrf.mxu1  ;;  %v680_v7 = vrot.slane %v631_v36, 1 }
  0xfb   : > { %v837_v37 = vadd.f32 %v836_v19, %v2232_v26 }
  0xfc   : > { %v1014_v52 = vadd.f32 %v984_v58, %v941_v59 }
  0xfd   : > { %1789 = vmatmul.msk.bf16.gmra.mxu1 %vm710_vm1, %v2195_v3 }
  0xfe   : > { %1798 = vmatmul.msk.bf16.gmra.mxu2 %vm710_vm1, %v2199_v4  ;;  %v2340_v33 = vadd.f32 %v1056_v32, %v1014_v52  ;;  %v681_v32 = vor.u32 %v680_v7, %v628_v25 }
  0xff   : > { %1807 = vmatmul.msk.bf16.gmra.mxu3 %vm710_vm1, %v2050_v30 }
 0x101   : > { %v914_v42 = vpop.f32.mrf.mxu2  ;;  %v1059_v3 = vpop.f32.mrf.mxu0 }
 0x102   : > { %v987_v39 = vpop.f32.mrf.mxu3  ;;  %v942_v43 = vadd.f32 %v914_v42, %v837_v37  ;;  %v838_v47 = vpop.f32.mrf.mxu1 }
 0x103   : > { %v839_v30 = vadd.f32 %v838_v47, %v2245_v40 }
 0x104   : > { %v1015_v0 = vadd.f32 %v987_v39, %v942_v43  ;;  %1816 = vmatmul.msk.bf16.gmra.mxu0 %vm710_vm1, %v2217_v22 }
 0x106   : > { %v2346_v53 = vadd.f32 %v1059_v3, %v1015_v0 }
 0x109   : > { %v916_v4 = vpop.f32.mrf.mxu2  ;;  %v1061_v62 = vpop.f32.mrf.mxu0 }
 0x10a   : > { %v989_v26 = vpop.f32.mrf.mxu3  ;;  %v943_v56 = vadd.f32 %v916_v4, %v839_v30  ;;  %v841_v60 = vpop.f32.mrf.mxu1 }
 0x10b   : > { %v842_v63 = vadd.f32 %v841_v60, %v2265_v48 }
 0x10c   : > { %v1016_v61 = vadd.f32 %v989_v26, %v943_v56 }
 0x10d   : > { %1790 = vmatmul.msk.bf16.gmra.mxu1 %vm710_vm1, %v2217_v22 }
 0x10e   : > { %1799 = vmatmul.msk.bf16.gmra.mxu2 %vm710_vm1, %v2221_v23  ;;  %v2363_v40 = vadd.f32 %v1061_v62, %v1016_v61  ;;  %v559_v23 = vunpack.c.l.b16 %v519_v6 }
 0x10f   : > { %1808 = vmatmul.msk.bf16.gmra.mxu3 %vm710_vm1, %v2092_v8 }
 0x110   : > { %v570_v15 = vpack.c.b16 %v560_v12, %v559_v23 }
 0x111   : > { %v919_v2 = vpop.f32.mrf.mxu2  ;;  %v1064_v34 = vpop.f32.mrf.mxu0 }
 0x112   : > { %v992_v50 = vpop.f32.mrf.mxu3  ;;  %v944_v51 = vadd.f32 %v919_v2, %v842_v63  ;;  %v843_v22 = vpop.f32.mrf.mxu1  ;;  %v635_v58 = vshrl.u32 %v570_v15, 16  ;;  %v638_v36 = vshll.u32 %v570_v15, 16 }
 0x113   : > { %v844_v8 = vadd.f32 %v843_v22, %v2273_v54 }
 0x114   : > { %v1017_v10 = vadd.f32 %v992_v50, %v944_v51  ;;  %1817 = vmatmul.msk.bf16.gmra.mxu0 %vm710_vm1, %v2253_v45  ;;  %v637_v42 = vrot.slane %v635_v58, 7  ;;  %v682_v60 = vrot.slane %v638_v36, 1 }
 0x116   : > { %v2366_v11 = vadd.f32 %v1064_v34, %v1017_v10  ;;  %v640_v0 = vor.u32 %v638_v36, %v637_v42  ;;  %v683_v1 = vor.u32 %v682_v60, %v635_v58 }
 0x118   : > { %v663_v4 = vsel %vm2101_vm6, 0, %v640_v0  ;;  %v706_v51 = vsel %vm2106_vm7, %v683_v1, 0 }
 0x119   : > { %v921_v48 = vpop.f32.mrf.mxu2  ;;  %v1066_v16 = vpop.f32.mrf.mxu0 }
 0x11a   : > { %v994_v35 = vpop.f32.mrf.mxu3  ;;  %v945_v13 = vadd.f32 %v921_v48, %v844_v8  ;;  %v846_v14 = vpop.f32.mrf.mxu1 }
 0x11b   : > { %v847_v59 = vadd.f32 %v846_v14, %v2234_v27 }
 0x11c   : > { %v1018_v44 = vadd.f32 %v994_v35, %v945_v13 }
 0x11d   : > { %1791 = vmatmul.msk.bf16.gmra.mxu1 %vm710_vm1, %v2253_v45 }
 0x11e   : > { %1800 = vmatmul.msk.bf16.gmra.mxu2 %vm710_vm1, %v2257_v46  ;;  %v2379_v54 = vadd.f32 %v1066_v16, %v1018_v44  ;;  %v705_v46 = vsel %vm2106_vm7, %v681_v32, 0 }
 0x11f   : > { %1809 = vmatmul.msk.bf16.gmra.mxu3 %vm710_vm1, %v2223_v24 }
 0x121   : > { %v924_v19 = vpop.f32.mrf.mxu2  ;;  %v1069_v43 = vpop.f32.mrf.mxu0 }
 0x122   : > { %v997_v52 = vpop.f32.mrf.mxu3  ;;  %v946_v45 = vadd.f32 %v924_v19, %v847_v59  ;;  %v848_v37 = vpop.f32.mrf.mxu1 }
 0x123   : > { %v849_v27 = vadd.f32 %v848_v37, %v2247_v41 }
 0x124   : > { %v1019_v39 = vadd.f32 %v997_v52, %v946_v45  ;;  %1818 = vmatmul.msk.bf16.gmra.mxu0 %vm710_vm1, %v705_v46 }
 0x126   : > { %v2386_v47 = vadd.f32 %v1069_v43, %v1019_v39 }
 0x129   : > { %v926_v3 = vpop.f32.mrf.mxu2  ;;  %v1071_v56 = vpop.f32.mrf.mxu0 }
 0x12a   : > { %v999_v30 = vpop.f32.mrf.mxu3  ;;  %v947_v24 = vadd.f32 %v926_v3, %v849_v27  ;;  %v851_v25 = vpop.f32.mrf.mxu1 }
 0x12b   : > { %v852_v41 = vadd.f32 %v851_v25, %v2267_v49 }
 0x12c   : > { %v1020_v26 = vadd.f32 %v999_v30, %v947_v24 }
 0x12d   : > { %1792 = vmatmul.msk.bf16.gmra.mxu1 %vm710_vm1, %v705_v46 }
 0x12e   : > { %1801 = vmatmul.msk.bf16.gmra.mxu2 %vm710_vm1, %v663_v4  ;;  %v2395_v61 = vadd.f32 %v1071_v56, %v1020_v26 }
 0x12f   : > { %1810 = vmatmul.msk.bf16.gmra.mxu3 %vm710_vm1, %v570_v15 }
 0x131   : > { %v929_v62 = vpop.f32.mrf.mxu2  ;;  %v1074_v50 = vpop.f32.mrf.mxu0 }
 0x132   : > { %v1002_v63 = vpop.f32.mrf.mxu3  ;;  %v948_v20 = vadd.f32 %v929_v62, %v852_v41  ;;  %v853_v2 = vpop.f32.mrf.mxu1 }
 0x133   : > { %v854_v6 = vadd.f32 %v853_v2, %v2275_v55 }
 0x134   : > { %v1021_v18 = vadd.f32 %v1002_v63, %v948_v20  ;;  %1819 = vmatmul.msk.bf16.gmra.mxu0 %vm710_vm1, %v706_v51 }
 0x136   : > { %v2400_v22 = vadd.f32 %v1074_v50, %v1021_v18 }
 0x139   : > { %v931_v29 = vpop.f32.mrf.mxu2  ;;  %v1076_v12 = vpop.f32.mrf.mxu0 }
 0x13a   : > { %v1004_v10 = vpop.f32.mrf.mxu3  ;;  %v949_v49 = vadd.f32 %v931_v29, %v854_v6  ;;  %v1112_v34 = vpop.f32.mrf.mxu1 }
 0x13b   : > { %v1152_v48 = vadd.f32 %v1112_v34, %v2283_v9 }
 0x13c   : > { %v1022_v23 = vadd.f32 %v1004_v10, %v949_v49 }
 0x13e   : > { %v2404_v8 = vadd.f32 %v1076_v12, %v1022_v23 }
 0x141   : > { %v1185_v35 = vpop.f32.mrf.mxu2  ;;  %v1330_v44 = vpop.f32.mrf.mxu0 }
 0x142   : > { %v1257_v21 = vpop.f32.mrf.mxu3  ;;  %v1225_v13 = vadd.f32 %v1185_v35, %v1152_v48  ;;  %v1114_v14 = vpop.f32.mrf.mxu1 }
 0x143   : > { %v1153_v7 = vadd.f32 %v1114_v14, %v2293_v28 }
 0x144   : > { %v1297_v15 = vadd.f32 %v1257_v21, %v1225_v13 }
 0x146   : > { %v1370_v16 = vadd.f32 %v1330_v44, %v1297_v15 }
 0x148   : > { %v1386_v55 = vpack.c.bf16 %v1370_v16, %v1370_v16  ;;  %v1457_v45 = vmul.f32 %v1370_v16, %v1370_v16  ;;  %v1420_v42 = vsel %vm1419_vm9, %v1370_v16, 0.0 }
 0x149   : > { %v1187_v58 = vpop.f32.mrf.mxu2  ;;  %v1332_v32 = vpop.f32.mrf.mxu0 }
 0x14a   : > { %v1259_v9 = vpop.f32.mrf.mxu3  ;;  %1403 = vst.msk [vmem:[%s2411_s22] sm:$0xf] %vm1402_vm8, %v1386_v55  ;;  %v1226_v59 = vadd.f32 %v1187_v58, %v1153_v7  ;;  %v1117_v19 = vpop.f32.mrf.mxu1  ;;  %v1473_v3 = vsel %vm1419_vm9, %v1457_v45, 0.0 }
 0x14b   : > { %v1154_v28 = vadd.f32 %v1117_v19, %v2295_v38 }
 0x14c   : > { %v1298_v52 = vadd.f32 %v1259_v9, %v1226_v59 }
 0x14e   : > { %v1371_v37 = vadd.f32 %v1332_v32, %v1298_v52 }
 0x150   : > { %v1387_v36 = vpack.c.bf16 %v1371_v37, %v1371_v37  ;;  %v1421_v39 = vsel %vm1419_vm9, %v1371_v37, 0.0  ;;  %v1458_v43 = vmul.f32 %v1371_v37, %v1371_v37 }
 0x151   : > { %v1422_v46 = vadd.f32 %v1421_v39, %v1420_v42  ;;  %v1190_v0 = vpop.f32.mrf.mxu2  ;;  %v1335_v56 = vpop.f32.mrf.mxu0 }
 0x152   : > { %v1262_v27 = vpop.f32.mrf.mxu3  ;;  %1404 = vst.msk [vmem:[%s2411_s22 + $0x4] sm:$0xf] %vm1402_vm8, %v1387_v36  ;;  %v1474_v30 = vsel %vm1419_vm9, %v1458_v43, 0.0  ;;  %v1227_v24 = vadd.f32 %v1190_v0, %v1154_v28  ;;  %v1119_v25 = vpop.f32.mrf.mxu1 }
 0x153   : > { %v1475_v4 = vadd.f32 %v1474_v30, %v1473_v3  ;;  %v1155_v63 = vadd.f32 %v1119_v25, %v2306_v57 }
 0x154   : > { %v1299_v26 = vadd.f32 %v1262_v27, %v1227_v24 }
 0x156   : > { %v1372_v60 = vadd.f32 %v1335_v56, %v1299_v26 }
 0x158   : > { %v1388_v41 = vpack.c.bf16 %v1372_v60, %v1372_v60  ;;  %v1423_v62 = vsel %vm1419_vm9, %v1372_v60, 0.0  ;;  %v1459_v38 = vmul.f32 %v1372_v60, %v1372_v60 }
 0x159   : > { %v1424_v1 = vadd.f32 %v1423_v62, %v1422_v46  ;;  %v1192_v20 = vpop.f32.mrf.mxu2  ;;  %v1337_v10 = vpop.f32.mrf.mxu0 }
 0x15a   : > { %v1264_v2 = vpop.f32.mrf.mxu3  ;;  %1405 = vst.msk [vmem:[%s2411_s22 + $0x8] sm:$0xf] %vm1402_vm8, %v1388_v41  ;;  %v1476_v18 = vsel %vm1419_vm9, %v1459_v38, 0.0  ;;  %v1228_v50 = vadd.f32 %v1192_v20, %v1155_v63  ;;  %v1122_v51 = vpop.f32.mrf.mxu1 }
 0x15b   : > { %v1477_v6 = vadd.f32 %v1476_v18, %v1475_v4  ;;  %v1156_v57 = vadd.f32 %v1122_v51, %v2309_v5 }
 0x15c   : > { %v1300_v29 = vadd.f32 %v1264_v2, %v1228_v50 }
 0x15e   : > { %v1373_v49 = vadd.f32 %v1337_v10, %v1300_v29 }
 0x160   : > { %v1389_v34 = vpack.c.bf16 %v1373_v49, %v1373_v49  ;;  %v1425_v23 = vsel %vm1419_vm9, %v1373_v49, 0.0  ;;  %v1460_v12 = vmul.f32 %v1373_v49, %v1373_v49 }
 0x161   : > { %v1426_v48 = vadd.f32 %v1425_v23, %v1424_v1  ;;  %v1195_v35 = vpop.f32.mrf.mxu2  ;;  %v1340_v55 = vpop.f32.mrf.mxu0 }
 0x162   : > { %v1267_v21 = vpop.f32.mrf.mxu3  ;;  %1406 = vst.msk [vmem:[%s2411_s22 + $0xc] sm:$0xf] %vm1402_vm8, %v1389_v34  ;;  %v1478_v13 = vsel %vm1419_vm9, %v1460_v12, 0.0  ;;  %v1229_v14 = vadd.f32 %v1195_v35, %v1156_v57  ;;  %v1124_v15 = vpop.f32.mrf.mxu1 }
 0x163   : > { %v1479_v44 = vadd.f32 %v1478_v13, %v1477_v6  ;;  %v1157_v5 = vadd.f32 %v1124_v15, %v2320_v31 }
 0x164   : > { %v1301_v16 = vadd.f32 %v1267_v21, %v1229_v14 }
 0x166   : > { %v1374_v7 = vadd.f32 %v1340_v55, %v1301_v16 }
 0x168   : > { %v1390_v58 = vpack.c.bf16 %v1374_v7, %v1374_v7  ;;  %v1427_v9 = vsel %vm1419_vm9, %v1374_v7, 0.0  ;;  %v1461_v59 = vmul.f32 %v1374_v7, %v1374_v7 }
 0x169   : > { %v1428_v19 = vadd.f32 %v1427_v9, %v1426_v48  ;;  %v1197_v52 = vpop.f32.mrf.mxu2  ;;  %v1342_v43 = vpop.f32.mrf.mxu0 }
 0x16a   : > { %v1269_v32 = vpop.f32.mrf.mxu3  ;;  %1407 = vst.msk [vmem:[%s2411_s22 + $0x10] sm:$0xf] %vm1402_vm8, %v1390_v58  ;;  %v1480_v45 = vsel %vm1419_vm9, %v1461_v59, 0.0  ;;  %v1230_v37 = vadd.f32 %v1197_v52, %v1157_v5  ;;  %v1127_v42 = vpop.f32.mrf.mxu1 }
 0x16b   : > { %v1481_v36 = vadd.f32 %v1480_v45, %v1479_v44  ;;  %v1158_v31 = vadd.f32 %v1127_v42, %v2324_v17 }
 0x16c   : > { %v1302_v39 = vadd.f32 %v1269_v32, %v1230_v37 }
 0x16e   : > { %v1375_v28 = vadd.f32 %v1342_v43, %v1302_v39 }
 0x170   : > { %v1391_v46 = vpack.c.bf16 %v1375_v28, %v1375_v28  ;;  %v1429_v0 = vsel %vm1419_vm9, %v1375_v28, 0.0  ;;  %v1462_v27 = vmul.f32 %v1375_v28, %v1375_v28 }
 0x171   : > { %v1430_v3 = vadd.f32 %v1429_v0, %v1428_v19  ;;  %v1200_v30 = vpop.f32.mrf.mxu2  ;;  %v1345_v41 = vpop.f32.mrf.mxu0 }
 0x172   : > { %v1272_v24 = vpop.f32.mrf.mxu3  ;;  %1408 = vst.msk [vmem:[%s2411_s22 + $0x14] sm:$0xf] %vm1402_vm8, %v1391_v46  ;;  %v1482_v25 = vsel %vm1419_vm9, %v1462_v27, 0.0  ;;  %v1231_v4 = vadd.f32 %v1200_v30, %v1158_v31  ;;  %v1129_v26 = vpop.f32.mrf.mxu1 }
 0x173   : > { %v1483_v56 = vadd.f32 %v1482_v25, %v1481_v36  ;;  %v1159_v17 = vadd.f32 %v1129_v26, %v2340_v33 }
 0x174   : > { %v1303_v60 = vadd.f32 %v1272_v24, %v1231_v4 }
 0x176   : > { %v1376_v62 = vadd.f32 %v1345_v41, %v1303_v60 }
 0x178   : > { %v1392_v38 = vpack.c.bf16 %v1376_v62, %v1376_v62  ;;  %v1431_v63 = vsel %vm1419_vm9, %v1376_v62, 0.0  ;;  %v1463_v1 = vmul.f32 %v1376_v62, %v1376_v62 }
 0x179   : > { %v1432_v20 = vadd.f32 %v1431_v63, %v1430_v3  ;;  %v1202_v2 = vpop.f32.mrf.mxu2  ;;  %v1347_v49 = vpop.f32.mrf.mxu0 }
 0x17a   : > { %v1274_v18 = vpop.f32.mrf.mxu3  ;;  %1409 = vst.msk [vmem:[%s2411_s22 + $0x18] sm:$0xf] %vm1402_vm8, %v1392_v38  ;;  %v1484_v50 = vsel %vm1419_vm9, %v1463_v1, 0.0  ;;  %v1232_v51 = vadd.f32 %v1202_v2, %v1159_v17  ;;  %v1132_v6 = vpop.f32.mrf.mxu1 }
 0x17b   : > { %v1485_v29 = vadd.f32 %v1484_v50, %v1483_v56  ;;  %v1160_v33 = vadd.f32 %v1132_v6, %v2346_v53 }
 0x17c   : > { %v1304_v10 = vadd.f32 %v1274_v18, %v1232_v51 }
 0x17e   : > { %v1377_v34 = vadd.f32 %v1347_v49, %v1304_v10 }
 0x180   : > { %v1393_v23 = vpack.c.bf16 %v1377_v34, %v1377_v34  ;;  %v1433_v12 = vsel %vm1419_vm9, %v1377_v34, 0.0  ;;  %v1464_v57 = vmul.f32 %v1377_v34, %v1377_v34 }
 0x181   : > { %v1434_v48 = vadd.f32 %v1433_v12, %v1432_v20  ;;  %v1205_v35 = vpop.f32.mrf.mxu2  ;;  %v1350_v55 = vpop.f32.mrf.mxu0 }
 0x182   : > { %v1277_v21 = vpop.f32.mrf.mxu3  ;;  %1410 = vst.msk [vmem:[%s2411_s22 + $0x1c] sm:$0xf] %vm1402_vm8, %v1393_v23  ;;  %v1486_v13 = vsel %vm1419_vm9, %v1464_v57, 0.0  ;;  %v1233_v14 = vadd.f32 %v1205_v35, %v1160_v33  ;;  %v1134_v15 = vpop.f32.mrf.mxu1 }
 0x183   : > { %v1487_v44 = vadd.f32 %v1486_v13, %v1485_v29  ;;  %v1161_v53 = vadd.f32 %v1134_v15, %v2363_v40 }
 0x184   : > { %v1305_v16 = vadd.f32 %v1277_v21, %v1233_v14 }
 0x186   : > { %v1378_v7 = vadd.f32 %v1350_v55, %v1305_v16 }
 0x188   : > { %v1394_v58 = vpack.c.bf16 %v1378_v7, %v1378_v7  ;;  %v1435_v9 = vsel %vm1419_vm9, %v1378_v7, 0.0  ;;  %v1465_v59 = vmul.f32 %v1378_v7, %v1378_v7 }
 0x189   : > { %v1436_v5 = vadd.f32 %v1435_v9, %v1434_v48  ;;  %v1207_v19 = vpop.f32.mrf.mxu2  ;;  %v1352_v39 = vpop.f32.mrf.mxu0 }
 0x18a   : > { %v1279_v52 = vpop.f32.mrf.mxu3  ;;  %1411 = vst.msk [vmem:[%s2411_s22 + $0x20] sm:$0xf] %vm1402_vm8, %v1394_v58  ;;  %v1488_v32 = vsel %vm1419_vm9, %v1465_v59, 0.0  ;;  %v1234_v45 = vadd.f32 %v1207_v19, %v1161_v53  ;;  %v1137_v37 = vpop.f32.mrf.mxu1 }
 0x18b   : > { %v1489_v42 = vadd.f32 %v1488_v32, %v1487_v44  ;;  %v1162_v40 = vadd.f32 %v1137_v37, %v2366_v11 }
 0x18c   : > { %v1306_v36 = vadd.f32 %v1279_v52, %v1234_v45 }
 0x18e   : > { %v1379_v43 = vadd.f32 %v1352_v39, %v1306_v36 }
 0x190   : > { %v1395_v28 = vpack.c.bf16 %v1379_v43, %v1379_v43  ;;  %v1437_v46 = vsel %vm1419_vm9, %v1379_v43, 0.0  ;;  %v1466_v0 = vmul.f32 %v1379_v43, %v1379_v43 }
 0x191   : > { %v1438_v27 = vadd.f32 %v1437_v46, %v1436_v5  ;;  %v1210_v31 = vpop.f32.mrf.mxu2  ;;  %v1355_v56 = vpop.f32.mrf.mxu0 }
 0x192   : > { %v1282_v3 = vpop.f32.mrf.mxu3  ;;  %1412 = vst.msk [vmem:[%s2411_s22 + $0x24] sm:$0xf] %vm1402_vm8, %v1395_v28  ;;  %v1490_v30 = vsel %vm1419_vm9, %v1466_v0, 0.0  ;;  %v1235_v24 = vadd.f32 %v1210_v31, %v1162_v40  ;;  %v1139_v25 = vpop.f32.mrf.mxu1 }
 0x193   : > { %v1491_v4 = vadd.f32 %v1490_v30, %v1489_v42  ;;  %v1163_v11 = vadd.f32 %v1139_v25, %v2379_v54 }
 0x194   : > { %v1307_v26 = vadd.f32 %v1282_v3, %v1235_v24 }
 0x196   : > { %v1380_v60 = vadd.f32 %v1355_v56, %v1307_v26 }
 0x198   : > { %v1396_v41 = vpack.c.bf16 %v1380_v60, %v1380_v60  ;;  %v1439_v62 = vsel %vm1419_vm9, %v1380_v60, 0.0  ;;  %v1467_v38 = vmul.f32 %v1380_v60, %v1380_v60 }
 0x199   : > { %v1440_v63 = vadd.f32 %v1439_v62, %v1438_v27  ;;  %v1212_v1 = vpop.f32.mrf.mxu2  ;;  %v1357_v6 = vpop.f32.mrf.mxu0 }
 0x19a   : > { %v1284_v17 = vpop.f32.mrf.mxu3  ;;  %1413 = vst.msk [vmem:[%s2411_s22 + $0x28] sm:$0xf] %vm1402_vm8, %v1396_v41  ;;  %v1492_v20 = vsel %vm1419_vm9, %v1467_v38, 0.0  ;;  %v1236_v2 = vadd.f32 %v1212_v1, %v1163_v11  ;;  %v1142_v18 = vpop.f32.mrf.mxu1 }
 0x19b   : > { %v1493_v50 = vadd.f32 %v1492_v20, %v1491_v4  ;;  %v1164_v54 = vadd.f32 %v1142_v18, %v2386_v47 }
 0x19c   : > { %v1308_v51 = vadd.f32 %v1284_v17, %v1236_v2 }
 0x19e   : > { %v1381_v29 = vadd.f32 %v1357_v6, %v1308_v51 }
 0x1a0   : > { %v1397_v10 = vpack.c.bf16 %v1381_v29, %v1381_v29  ;;  %v1441_v49 = vsel %vm1419_vm9, %v1381_v29, 0.0  ;;  %v1468_v34 = vmul.f32 %v1381_v29, %v1381_v29 }
 0x1a1   : > { %v1442_v23 = vadd.f32 %v1441_v49, %v1440_v63  ;;  %v1215_v12 = vpop.f32.mrf.mxu2  ;;  %v1360_v14 = vpop.f32.mrf.mxu0 }
 0x1a2   : > { %v1287_v57 = vpop.f32.mrf.mxu3  ;;  %1414 = vst.msk [vmem:[%s2411_s22 + $0x2c] sm:$0xf] %vm1402_vm8, %v1397_v10  ;;  %v1494_v33 = vsel %vm1419_vm9, %v1468_v34, 0.0  ;;  %v1237_v48 = vadd.f32 %v1215_v12, %v1164_v54  ;;  %v1144_v35 = vpop.f32.mrf.mxu1 }
 0x1a3   : > { %v1495_v21 = vadd.f32 %v1494_v33, %v1493_v50  ;;  %v1165_v47 = vadd.f32 %v1144_v35, %v2395_v61 }
 0x1a4   : > { %v1309_v13 = vadd.f32 %v1287_v57, %v1237_v48 }
 0x1a6   : > { %v1382_v15 = vadd.f32 %v1360_v14, %v1309_v13 }
 0x1a8   : > { %v1398_v44 = vpack.c.bf16 %v1382_v15, %v1382_v15  ;;  %v1443_v16 = vsel %vm1419_vm9, %v1382_v15, 0.0  ;;  %v1469_v55 = vmul.f32 %v1382_v15, %v1382_v15 }
 0x1a9   : > { %v1444_v7 = vadd.f32 %v1443_v16, %v1442_v23  ;;  %v1217_v58 = vpop.f32.mrf.mxu2  ;;  %v1362_v32 = vpop.f32.mrf.mxu0 }
 0x1aa   : > { %v1289_v9 = vpop.f32.mrf.mxu3  ;;  %1415 = vst.msk [vmem:[%s2411_s22 + $0x30] sm:$0xf] %vm1402_vm8, %v1398_v44  ;;  %v1496_v59 = vsel %vm1419_vm9, %v1469_v55, 0.0  ;;  %v1238_v53 = vadd.f32 %v1217_v58, %v1165_v47  ;;  %v1147_v19 = vpop.f32.mrf.mxu1 }
 0x1ab   : > { %v1497_v5 = vadd.f32 %v1496_v59, %v1495_v21  ;;  %v1166_v61 = vadd.f32 %v1147_v19, %v2400_v22 }
 0x1ac   : > { %v1310_v52 = vadd.f32 %v1289_v9, %v1238_v53 }
 0x1ae   : > { %v1383_v45 = vadd.f32 %v1362_v32, %v1310_v52 }
 0x1b0   : > { %v1399_v37 = vpack.c.bf16 %v1383_v45, %v1383_v45  ;;  %v1445_v42 = vsel %vm1419_vm9, %v1383_v45, 0.0  ;;  %v1470_v36 = vmul.f32 %v1383_v45, %v1383_v45 }
 0x1b1   : > { %v1446_v39 = vadd.f32 %v1445_v42, %v1444_v7  ;;  %v1220_v43 = vpop.f32.mrf.mxu2  ;;  %v1365_v31 = vpop.f32.mrf.mxu0 }
 0x1b2   : > { %v1292_v28 = vpop.f32.mrf.mxu3  ;;  %1416 = vst.msk [vmem:[%s2411_s22 + $0x34] sm:$0xf] %vm1402_vm8, %v1399_v37  ;;  %v1498_v46 = vsel %vm1419_vm9, %v1470_v36, 0.0  ;;  %v1239_v0 = vadd.f32 %v1220_v43, %v1166_v61  ;;  %v1149_v3 = vpop.f32.mrf.mxu1 }
 0x1b3   : > { %v1499_v40 = vadd.f32 %v1498_v46, %v1497_v5  ;;  %v1167_v22 = vadd.f32 %v1149_v3, %v2404_v8 }
 0x1b4   : > { %v1311_v27 = vadd.f32 %v1292_v28, %v1239_v0 }
 0x1b6   : > { %v1384_v30 = vadd.f32 %v1365_v31, %v1311_v27 }
 0x1b8   : > { %v1400_v24 = vpack.c.bf16 %v1384_v30, %v1384_v30  ;;  %v1447_v25 = vsel %vm1419_vm9, %v1384_v30, 0.0  ;;  %v1471_v4 = vmul.f32 %v1384_v30, %v1384_v30 }
 0x1b9   : > { %v1448_v26 = vadd.f32 %v1447_v25, %v1446_v39  ;;  %v1222_v56 = vpop.f32.mrf.mxu2  ;;  %v1367_v63 = vpop.f32.mrf.mxu0 }
 0x1ba   : > { %1417 = vst.msk [vmem:[%s2411_s22 + $0x38] sm:$0xf] %vm1402_vm8, %v1400_v24  ;;  %v1500_v60 = vsel %vm1419_vm9, %v1471_v4, 0.0  ;;  %v1240_v41 = vadd.f32 %v1222_v56, %v1167_v22  ;;  %v1294_v38 = vpop.f32.mrf.mxu3 }
 0x1bb   : > { %v1501_v62 = vadd.f32 %v1500_v60, %v1499_v40 }
 0x1bc   : > { %v1312_v11 = vadd.f32 %v1294_v38, %v1240_v41 }
 0x1be   : > { %v1385_v1 = vadd.f32 %v1367_v63, %v1312_v11 }
 0x1c0   : > { %v1401_v17 = vpack.c.bf16 %v1385_v1, %v1385_v1  ;;  %v1449_v20 = vsel %vm1419_vm9, %v1385_v1, 0.0  ;;  %v1472_v2 = vmul.f32 %v1385_v1, %v1385_v1 }
 0x1c1   : > { %v1450_v8 = vadd.f32 %v1449_v20, %v1448_v26 }
 0x1c2   : > { %1418 = vst.msk [vmem:[%s2411_s22 + $0x3c] sm:$0xf] %vm1402_vm8, %v1401_v17  ;;  %v1502_v18 = vsel %vm1419_vm9, %v1472_v2, 0.0 }
 0x1c3   : > { %v1451_v50 = vrot.slane %v1450_v8, 4  ;;  %v1503_v51 = vadd.f32 %v1502_v18, %v1501_v62 }
 0x1c5   : > { %v1452_v6 = vadd.f32 %v1451_v50, %v1450_v8  ;;  %v1504_v29 = vrot.slane %v1503_v51, 4 }
 0x1c7   : > { %v1453_v10 = vrot.slane %v1452_v6, 2  ;;  %v1505_v49 = vadd.f32 %v1504_v29, %v1503_v51 }
 0x1c9   : > { %v1454_v34 = vadd.f32 %v1453_v10, %v1452_v6  ;;  %v1506_v54 = vrot.slane %v1505_v49, 2 }
 0x1cb   : > { %v1455_v23 = vrot.slane %v1454_v34, 1  ;;  %v1507_v12 = vadd.f32 %v1506_v54, %v1505_v49 }
 0x1cd   : > { %v1508_v57 = vrot.slane %v1507_v12, 1  ;;  %v1456_v33 = vadd.f32 %v1455_v23, %v1454_v34 }
 0x1cf   : > { %v1509_v48 = vadd.f32 %v1508_v57, %v1507_v12 }
 0x1d1   : > { %v1511_v35 = vsel %vm651_vm2, %v1456_v33, %v1509_v48 }
 0x1d2   : > { %1513 = vst.msk [vmem:[%s467_s30] sm:$0x3] %vm1512_vm10, %v1511_v35 }
 0x1d3 PF: > { %s18_s28 = sadd.s32 1, %s1923_s28   ;;  %s2528_s24 = smov %s1915_s26 }
 0x1d4   : > { %p15_p12 = scmp.ge.s32.totalorder %s18_s28, 6   ;;  %s2529_s25 = smov %s1919_s27 }
 0x1d5   : > { %s2530_s26 = smov %s2533_s4  ;;  %s2531_s27 = smov %s2537_s5 }
 0x1d6   :  { %17 = sbr.rel (!%p15_p12) target bundleno = 3 (0x3), region = 100 }

// kernel: encoder_block_forward.4
= control target key start
LH: loop header
LB: loop body
LE: loop exit
PB: predicated region body
PF: predicated region fallthrough
CT: control target
= control target key end

     0   :  { %s2177_s24 = smov 0   ;;  %s2179_s25 = smov 0   ;;  %s2772_s0 = inlined_call_operand.vmem [shape: bf16[2,16,16,16], index: 0, kind: input, shape index: {}, may-alias: {0,1,2}]   ;;  %s2773_s1 = inlined_call_operand.vmem [shape: bf16[2,16,16,16], index: 1, kind: input, shape index: {}, may-alias: {0,1,2}]   ;;  %s2774_s2 = inlined_call_operand.vmem [shape: bf16[2,16,16,16], index: 2, kind: input, shape index: {}, may-alias: {0,1,2}]   ;;  %s2775_s3 = inlined_call_operand.vmem [shape: bf16[9,16,16], index: 3, kind: input, shape index: {}]   ;;  %s2776_s4 = inlined_call_operand.vmem [shape: f32[1,16], index: 4, kind: input, shape index: {}]   ;;  %s2777_s5 = inlined_call_operand.vmem [shape: f32[1,16], index: 5, kind: input, shape index: {}]   ;;  %s2778_s6 = inlined_call_operand.vmem [shape: bf16[2,16,16,16], index: 6, kind: output, shape index: {0}]   ;;  %s2779_s7 = inlined_call_operand.vmem [shape: f32[2,2,2,16], index: 7, kind: output, shape index: {1}]  }
   0x1   :  { %s2181_s26 = smov 0   ;;  %s2183_s27 = smov 0  }
   0x2   :  { %s2185_s28 = smov 0  }
   0x3 LB: > { %s27_s29 = sadd.s32 1, %s2127_s26  ;;  %s30_s30 = sadd.s32 1, %s2131_s27  ;;  %s2135_s28 = sphi %s2185_s28, %s18_s28   ;;  %s2131_s27 = sphi %s2183_s27, %s2790_s27   ;;  %s2127_s26 = sphi %s2181_s26, %s2789_s26   ;;  %s2123_s25 = sphi %s2179_s25, %s2788_s25   ;;  %s2119_s24 = sphi %s2177_s24, %s2787_s24  }
   0x4   : > { %p28_p0 = scmp.ge.s32.totalorder %s27_s29, 2  ;;  %p1834_p1 = scmp.ge.s32.totalorder %s2135_s28, 1 }
   0x5   : > { %p328_p2 = scmp.lt.s32.totalorder %s2135_s28, 5 }
   0x6   : > { %s2792_s29 = smov (%p28_p0, %s27_s29), 0  ;;  %s2794_s30 = smov (!%p28_p0, %s30_s30), %s2131_s27 }
   0x7   : > { %p329_p3 = pnand %p1834_p1, %p328_p2  ;;  %p32_p4 = scmp.ge.s32.totalorder %s2794_s30, 2 }
   0x8   : > { %s2213_s10 = sshll.u32 (!%p329_p3), %s2119_s24, 3  ;;  %p405_p5 = scmp.lt.s32.totalorder (!%p329_p3), %s2123_s25, 1 }
   0x9   : > { %s2796_s30 = smov (%p32_p4, %s2794_s30), 0  ;;  %332 = sbr.rel (%p329_p3) target bundleno = 473 (0x1d9), region = 44 }
   0xa   : > { %p407_p6 = scmp.lt.s32.totalorder (!%p329_p3), %s2213_s10, 15  ;;  %s1840_s21 = sadd.s32 (!%p329_p3), 4294967295, %s2213_s10 }
   0xb   : > { %p417_p7 = scmp.gt.s32.totalorder (!%p329_p3), %s1840_s21, 0  ;;  %p1841_p8 = scmp.lt.s32.totalorder (!%p329_p3), %s1840_s21, 15 }
   0xc   : > { %p487_p9 = scmp.gt.s32.totalorder (!%p329_p3), %s2119_s24, 0  ;;  %p462_p11 = scmp.lt.s32.totalorder (!%p329_p3), %s2119_s24, 1 }
   0xe   : > { %v1997_v0 = vld [vmem:[%s2775_s3 + $0x8] sm:$0xff]  ;;  %v1998_v1 = vld [vmem:[%s2775_s3 + $0x10] sm:$0xff]  ;;  %s2798_s25 = smov (!%p405_p5, %s2123_s25), 1  ;;  %v1999_v2 = vld [vmem:[%s2775_s3 + $0x18] sm:$0xff]  ;;  %vm806_vm0 = vcmask 130048   ;;  %vm739_vm2 = vcmask 1040384  }
   0xf   : > { %2052 = vmatpush.bf16.msra.mxu1 %v1997_v0  ;;  %2053 = vmatpush.bf16.msra.mxu2 %v1997_v0  ;;  %v1996_v3 = vld [vmem:[%s2775_s3] sm:$0xff]  ;;  %s408_s17 = scalar_select %p407_p6, %s2213_s10, 15  ;;  %vm740_vm3 = vsmask.f32 256  ;;  %vm782_vm4 = vcmask 1047552   ;;  %vm1525_vm9 = vcmask 125952  }
  0x10   : > { %2054 = vmatpush.bf16.msra.mxu3 %v1997_v0  ;;  %v2000_v4 = vld [vmem:[%s2775_s3 + $0x20] sm:$0xff]  ;;  %s2232_s20 = sshll.u32 %s2798_s25, 5  ;;  %830 = vmatpush.bf16.msra.mxu0 %v1997_v0  ;;  %vm783_vm5 = vsmask.f32 7424  ;;  %vm2350_vm6 = vmand %vm739_vm2, %vm740_vm3  ;;  %s2806_s24 = smov (!%p462_p11, %s2119_s24), 1  ;;  %vm1634_vm10 = vcmask 123904  }
  0x11   : > { %s1836_s22 = sshll.u32 %s408_s17, 1  ;;  %v2250_v5 = vld [vmem:[%s2776_s4] ss:$0 sm:$0xff]  ;;  %vm2355_vm7 = vmand %vm782_vm4, %vm783_vm5 }
  0x12   : > { %s2236_s23 = sadd.s32 %s2232_s20, %s1836_s22  ;;  %v2258_v9 = vld [vmem:[%s2777_s5] ss:$0 sm:$0xff] }
  0x13   : > { %991 = vmatpush.bf16.msrb.mxu2 %v1998_v1  ;;  %909 = vmatpush.bf16.msrb.mxu1 %v1996_v3  ;;  %s1838_s8 = sshll.u32 %s2236_s23, 2  ;;  %s1860_s23 = sshll.u32 %s2798_s25, 1 }
  0x14   : > { %1068 = vmatpush.bf16.msrb.mxu3 %v1999_v2  ;;  %1144 = vmatpush.bf16.msrb.mxu0 %v2000_v4  ;;  %s2245_s12 = scalar_lea.vmem %s2772_s0, %s1838_s8 }
  0x15   : > { %v2045_v6 = vld [vmem:[%s2245_s12 + $0x8] sm:$0xff]   ;;  %v2047_v7 = vld [vmem:[%s2245_s12 + $0x18] sm:$0xff]   ;;  %s418_s15 = scalar_select %p417_p7, %s1840_s21, 0  ;;  %v2046_v14 = vld [vmem:[%s2245_s12 + $0x10] sm:$0xff]  }
  0x16   : > { %v2049_v8 = vld [vmem:[%s2245_s12 + $0x28] sm:$0xff]   ;;  %v2019_v10 = vunpack.c.l.bf16 %v2045_v6  ;;  %v2020_v11 = vunpack.c.h.bf16 %v2045_v6  ;;  %v2027_v12 = vunpack.c.l.bf16 %v2047_v7  ;;  %v2028_v13 = vunpack.c.h.bf16 %v2047_v7  ;;  %s2260_s18 = scalar_select %p487_p9, 1, 0  ;;  %v2048_v55 = vld [vmem:[%s2245_s12 + $0x20] sm:$0xff]   ;;  %v2050_v60 = vld [vmem:[%s2245_s12 + $0x30] sm:$0xff]  }
  0x17   : > { %v2035_v15 = vunpack.c.l.bf16 %v2049_v8  ;;  %v2036_v16 = vunpack.c.h.bf16 %v2049_v8  ;;  %s2800_s15 = smov (!%p1841_p8, %s418_s15), 15  ;;  %v2023_v17 = vunpack.c.l.bf16 %v2046_v14  ;;  %v2024_v18 = vunpack.c.h.bf16 %v2046_v14 }
  0x18   : > { %v543_v19 = vmul.f32 %v2250_v5, %v2019_v10  ;;  %v544_v20 = vmul.f32 %v2250_v5, %v2020_v11  ;;  %v547_v21 = vmul.f32 %v2250_v5, %v2027_v12  ;;  %v548_v22 = vmul.f32 %v2250_v5, %v2028_v13  ;;  %s1846_s19 = sshll.u32 %s2800_s15, 1 }
  0x19   : > { %v551_v23 = vmul.f32 %v2250_v5, %v2035_v15  ;;  %v552_v24 = vmul.f32 %v2250_v5, %v2036_v16  ;;  %v545_v25 = vmul.f32 %v2250_v5, %v2023_v17  ;;  %s425_s21 = sadd.s32 %s1846_s19, %s2232_s20  ;;  %v489_v32 = vstv %s2260_s18  ;;  %v2002_v15 = vld [vmem:[%s2775_s3 + $0x30] sm:$0xff]  ;;  %v2003_v16 = vld [vmem:[%s2775_s3 + $0x38] sm:$0xff]  ;;  %s2668_s19 = scalar_lea.vmem %s2778_s6, %s1838_s8 }
  0x1a   : > { %v559_v26 = vadd.f32 %v2258_v9, %v543_v19  ;;  %v560_v27 = vadd.f32 %v2258_v9, %v544_v20  ;;  %v563_v28 = vadd.f32 %v2258_v9, %v547_v21  ;;  %v564_v29 = vadd.f32 %v2258_v9, %v548_v22  ;;  %s1848_s22 = sshll.u32 %s425_s21, 2  ;;  %v2014_v20 = vld [vmem:[%s2245_s12] sm:$0xff]   ;;  %s465_s8 = sadd.s32 %s1860_s23, %s2806_s24 }
  0x1b   : > { %v567_v30 = vadd.f32 %v2258_v9, %v551_v23  ;;  %v568_v31 = vadd.f32 %v2258_v9, %v552_v24  ;;  %v546_v33 = vmul.f32 %v2250_v5, %v2024_v18  ;;  %s427_s13 = scalar_lea.vmem %s2773_s1, %s1848_s22  ;;  %v561_v41 = vadd.f32 %v2258_v9, %v545_v25  ;;  %s1861_s21 = sshll.u32 %s465_s8, 1 }
  0x1c   : > { %v575_v34 = vmax.f32 %v559_v26, 0.0  ;;  %v576_v35 = vmax.f32 %v560_v27, 0.0  ;;  %v579_v36 = vmax.f32 %v563_v28, 0.0  ;;  %v580_v37 = vmax.f32 %v564_v29, 0.0  ;;  %v2006_v40 = vld [vmem:[%s427_s13] sm:$0xff]   ;;  %s467_s9 = scalar_lea.vmem %s2779_s7, %s1861_s21 }
  0x1d   : > { %v583_v38 = vmax.f32 %v567_v30, 0.0  ;;  %v584_v39 = vmax.f32 %v568_v31, 0.0  ;;  %v562_v42 = vadd.f32 %v2258_v9, %v546_v33  ;;  %v2007_v49 = vunpack.c.l.bf16 %v2006_v40 }
  0x1e   : > { %v593_v43 = vpack.c.bf16 %v575_v34, %v575_v34  ;;  %v594_v44 = vpack.c.bf16 %v576_v35, %v576_v35  ;;  %v597_v45 = vpack.c.bf16 %v579_v36, %v579_v36  ;;  %v598_v46 = vpack.c.bf16 %v580_v37, %v580_v37 }
  0x1f   : > { %v601_v47 = vpack.c.bf16 %v583_v38, %v583_v38  ;;  %v602_v48 = vpack.c.bf16 %v584_v39, %v584_v39  ;;  %v2008_v50 = vunpack.c.h.bf16 %v2006_v40  ;;  %v478_v58 = vmul.f32 %v2250_v5, %v2007_v49 }
  0x20   : > { %v633_v51 = vunpack.c.l.b16 %v593_v43  ;;  %v634_v52 = vunpack.c.l.b16 %v594_v44  ;;  %v637_v53 = vunpack.c.l.b16 %v597_v45  ;;  %v638_v54 = vunpack.c.l.b16 %v598_v46 }
  0x21   : > { %v641_v56 = vunpack.c.l.b16 %v601_v47  ;;  %v642_v57 = vunpack.c.l.b16 %v602_v48  ;;  %v479_v59 = vmul.f32 %v2250_v5, %v2008_v50  ;;  %v577_v63 = vmax.f32 %v561_v41, 0.0 }
  0x22   : > { %v2289_v61 = vpack.c.b16 %v634_v52, %v633_v51  ;;  %v2291_v62 = vpack.c.b16 %v638_v54, %v637_v53  ;;  %v578_v0 = vmax.f32 %v562_v42, 0.0  ;;  %v483_v2 = vadd.f32 %v2258_v9, %v478_v58  ;;  %v2001_v51 = vld [vmem:[%s2775_s3 + $0x28] sm:$0xff]  ;;  %v2004_v52 = vld [vmem:[%s2775_s3 + $0x40] sm:$0xff] }
  0x23   : > { %v2293_v1 = vpack.c.b16 %v642_v57, %v641_v56  ;;  %v484_v3 = vadd.f32 %v2258_v9, %v479_v59  ;;  %v2031_v4 = vunpack.c.l.bf16 %v2048_v55  ;;  %vm2301_vm1 = vcmp.eq.s32.totalorder %v489_v32, 1 }
  0x24   : > { %1870 = vmatmul.msk.bf16.vlgmr.msra.gmra.mxu1 %vm806_vm0, %v2289_v61  ;;  %1872 = vmatmul.msk.bf16.vlgmr.msra.gmra.mxu2 %vm806_vm0, %v2291_v62  ;;  %v595_v7 = vpack.c.bf16 %v577_v63, %v577_v63  ;;  %v2032_v8 = vunpack.c.h.bf16 %v2048_v55  ;;  %v2039_v10 = vunpack.c.l.bf16 %v2050_v60  ;;  %v485_v11 = vmax.f32 %v483_v2, 0.0 }
  0x25   : > { %1874 = vmatmul.msk.bf16.vlgmr.msra.gmra.mxu3 %vm806_vm0, %v2293_v1  ;;  %v486_v12 = vmax.f32 %v484_v3, 0.0  ;;  %v549_v13 = vmul.f32 %v2250_v5, %v2031_v4  ;;  %v2040_v14 = vunpack.c.h.bf16 %v2050_v60  ;;  %v596_v17 = vpack.c.bf16 %v578_v0, %v578_v0  ;;  %1298 = vmatpush.bf16.msra.mxu2 %v2002_v15 }
  0x26   : > { %v550_v18 = vmul.f32 %v2250_v5, %v2032_v8  ;;  %v553_v19 = vmul.f32 %v2250_v5, %v2039_v10  ;;  %v491_v21 = vsel %vm2301_vm1, %v485_v11, 0.0  ;;  %1374 = vmatpush.bf16.msra.mxu3 %v2003_v16  ;;  %v635_v27 = vunpack.c.l.b16 %v595_v7  ;;  %1221 = vmatpush.bf16.msra.mxu1 %v2001_v51 }
  0x27   : > { %v492_v22 = vsel %vm2301_vm1, %v486_v12, 0.0  ;;  %v565_v23 = vadd.f32 %v2258_v9, %v549_v13  ;;  %v554_v24 = vmul.f32 %v2250_v5, %v2040_v14  ;;  %v589_v25 = vpack.c.bf16 %v491_v21, %v491_v21 }
  0x28   : > { %v590_v26 = vpack.c.bf16 %v492_v22, %v492_v22  ;;  %v566_v28 = vadd.f32 %v2258_v9, %v550_v18  ;;  %v569_v30 = vadd.f32 %v2258_v9, %v553_v19  ;;  %v2015_v32 = vunpack.c.l.bf16 %v2014_v20 }
  0x29   : > { %v581_v29 = vmax.f32 %v565_v23, 0.0  ;;  %v570_v31 = vadd.f32 %v2258_v9, %v554_v24  ;;  %v629_v33 = vunpack.c.l.b16 %v589_v25  ;;  %v2016_v36 = vunpack.c.h.bf16 %v2014_v20 }
  0x2a   : > { %v630_v34 = vunpack.c.l.b16 %v590_v26  ;;  %v582_v35 = vmax.f32 %v566_v28, 0.0  ;;  %v585_v38 = vmax.f32 %v569_v30, 0.0  ;;  %v541_v40 = vmul.f32 %v2250_v5, %v2015_v32 }
  0x2b   : > { %v599_v37 = vpack.c.bf16 %v581_v29, %v581_v29  ;;  %v586_v39 = vmax.f32 %v570_v31, 0.0  ;;  %v636_v42 = vunpack.c.l.b16 %v596_v17  ;;  %v542_v44 = vmul.f32 %v2250_v5, %v2016_v36 }
  0x2c   : > { %v649_v41 = vpack.c.b16 %v630_v34, %v629_v33  ;;  %v600_v43 = vpack.c.bf16 %v582_v35, %v582_v35  ;;  %v603_v46 = vpack.c.bf16 %v585_v38, %v585_v38  ;;  %v557_v48 = vadd.f32 %v2258_v9, %v541_v40 }
  0x2d   : > { %v639_v45 = vunpack.c.l.b16 %v599_v37  ;;  %v604_v47 = vpack.c.bf16 %v586_v39, %v586_v39  ;;  %v558_v50 = vadd.f32 %v2258_v9, %v542_v44  ;;  %v2337_v56 = vpack.c.b16 %v636_v42, %v635_v27 }
  0x2e   : > { %1868 = vmatmul.msk.bf16.vlgmr.msra.gmra.mxu0 %vm806_vm0, %v649_v41  ;;  %v640_v49 = vunpack.c.l.b16 %v600_v43  ;;  %v643_v53 = vunpack.c.l.b16 %v603_v46  ;;  %v573_v55 = vmax.f32 %v557_v48, 0.0  ;;  %v660_v3 = vshrl.u32 %v649_v41, 16 }
  0x2f   : > { %v644_v54 = vunpack.c.l.b16 %v604_v47  ;;  %v574_v58 = vmax.f32 %v558_v50, 0.0  ;;  %1451 = vmatpush.bf16.msra.mxu0 %v2004_v52  ;;  %v663_v4 = vshll.u32 %v649_v41, 16  ;;  %v674_v21 = vshrl.u32 %v2289_v61, 16 }
  0x30   : > { %v2339_v57 = vpack.c.b16 %v640_v49, %v639_v45  ;;  %v591_v60 = vpack.c.bf16 %v573_v55, %v573_v55  ;;  %v662_v8 = vrot.slane %v660_v3, 7  ;;  %v677_v24 = vshll.u32 %v2289_v61, 16 }
  0x31   : > { %v2341_v59 = vpack.c.b16 %v644_v54, %v643_v53  ;;  %v592_v63 = vpack.c.bf16 %v574_v58, %v574_v58  ;;  %v752_v10 = vrot.slane %v663_v4, 1  ;;  %v676_v23 = vrot.slane %v674_v21, 7  ;;  %v2051_v54 = vld [vmem:[%s2245_s12 + $0x38] sm:$0xff]   ;;  %s1995_s12 = sadd.s32 8, %s2213_s10 }
  0x32   : > { %v631_v0 = vunpack.c.l.b16 %v591_v60  ;;  %v665_v13 = vor.u32 %v663_v4, %v662_v8  ;;  %v681_v29 = vshrl.u32 %v2337_v56, 16  ;;  %v756_v30 = vrot.slane %v677_v24, 1  ;;  %p2562_p10 = scmp.lt.s32.totalorder %s1995_s12, 15 }
  0x33   : > { %v632_v2 = vunpack.c.l.b16 %v592_v63  ;;  %v753_v15 = vor.u32 %v752_v10, %v660_v3  ;;  %v679_v26 = vor.u32 %v677_v24, %v676_v23  ;;  %v684_v32 = vshll.u32 %v2337_v56, 16 }
  0x34   : > { %1871 = vmatmul.msk.bf16.gmra.mxu1 %vm806_vm0, %v2337_v56  ;;  %1873 = vmatmul.msk.bf16.gmra.mxu2 %vm806_vm0, %v2339_v57  ;;  %v742_v18 = vsel %vm2350_vm6, 0, %v665_v13  ;;  %v683_v31 = vrot.slane %v681_v29, 7  ;;  %v757_v33 = vor.u32 %v756_v30, %v674_v21  ;;  %v688_v37 = vshrl.u32 %v2291_v62, 16  ;;  %s2802_s12 = smov (!%p2562_p10, %s1995_s12), 15 }
  0x35   : > { %1875 = vmatmul.msk.bf16.gmra.mxu3 %vm806_vm0, %v2341_v59  ;;  %v650_v6 = vpack.c.b16 %v632_v2, %v631_v0  ;;  %v785_v19 = vsel %vm2355_vm7, %v753_v15, 0  ;;  %v2377_v28 = vsel %vm2350_vm6, 0, %v679_v26  ;;  %v758_v38 = vrot.slane %v684_v32, 1  ;;  %s2804_s12 = smov (!%p2562_p10, %s2802_s12), 15 }
  0x36   : > { %v686_v34 = vor.u32 %v684_v32, %v683_v31  ;;  %v2390_v35 = vsel %vm2355_vm7, %v757_v33, 0  ;;  %v690_v39 = vrot.slane %v688_v37, 7  ;;  %v691_v40 = vshll.u32 %v2291_v62, 16  ;;  %s1853_s10 = sshll.u32 %s2804_s12, 1 }
  0x37   : > { %v667_v7 = vshrl.u32 %v650_v6, 16  ;;  %v670_v12 = vshll.u32 %v650_v6, 16  ;;  %v759_v41 = vor.u32 %v758_v38, %v681_v29  ;;  %v695_v45 = vshrl.u32 %v2339_v57, 16  ;;  %s442_s11 = sadd.s32 %s1853_s10, %s2232_s20 }
  0x38   : > { %v2394_v36 = vsel %vm2350_vm6, 0, %v686_v34  ;;  %v693_v42 = vor.u32 %v691_v40, %v690_v39  ;;  %v760_v46 = vrot.slane %v691_v40, 1  ;;  %v698_v48 = vshll.u32 %v2339_v57, 16  ;;  %s1855_s13 = sshll.u32 %s442_s11, 2 }
  0x39   : > { %v669_v11 = vrot.slane %v667_v7, 7  ;;  %v754_v22 = vrot.slane %v670_v12, 1  ;;  %v2408_v43 = vsel %vm2355_vm7, %v759_v41, 0  ;;  %v697_v47 = vrot.slane %v695_v45, 7  ;;  %s444_s16 = scalar_lea.vmem %s2774_s2, %s1855_s13 }
  0x3a   : > { %v2412_v44 = vsel %vm2350_vm6, 0, %v693_v42  ;;  %v761_v49 = vor.u32 %v760_v46, %v688_v37  ;;  %v702_v53 = vshrl.u32 %v2293_v1, 16  ;;  %v762_v55 = vrot.slane %v698_v48, 1  ;;  %s504_s20 = scalar_select %p462_p11, 1, 0 }
  0x3b   : > { %v672_v17 = vor.u32 %v670_v12, %v669_v11  ;;  %v755_v25 = vor.u32 %v754_v22, %v667_v7  ;;  %v700_v50 = vor.u32 %v698_v48, %v697_v47  ;;  %v705_v60 = vshll.u32 %v2293_v1, 16 }
  0x3c   : > { %v2426_v51 = vsel %vm2355_vm7, %v761_v49, 0  ;;  %v704_v58 = vrot.slane %v702_v53, 7  ;;  %v2043_v63 = vunpack.c.l.bf16 %v2051_v54  ;;  %v2044_v0 = vunpack.c.h.bf16 %v2051_v54 }
  0x3d   : > { %v743_v20 = vsel %vm2350_vm6, 0, %v672_v17  ;;  %v2373_v27 = vsel %vm2355_vm7, %v755_v25, 0  ;;  %v2430_v52 = vsel %vm2350_vm6, 0, %v700_v50  ;;  %v763_v2 = vor.u32 %v762_v55, %v695_v45 }
  0x3e   : > { %1869 = vmatmul.msk.bf16.gmra.mxu0 %vm806_vm0, %v650_v6  ;;  %v707_v3 = vor.u32 %v705_v60, %v704_v58  ;;  %v555_v4 = vmul.f32 %v2250_v5, %v2043_v63  ;;  %v709_v12 = vshrl.u32 %v2341_v59, 16  ;;  %v764_v17 = vrot.slane %v705_v60, 1 }
  0x3f   : > { %v2447_v7 = vsel %vm2355_vm7, %v763_v2, 0 }
  0x40   : > { %v2451_v8 = vsel %vm2350_vm6, 0, %v707_v3  ;;  %v571_v10 = vadd.f32 %v2258_v9, %v555_v4  ;;  %v765_v22 = vor.u32 %v764_v17, %v702_v53 }
  0x42   : > { %v587_v13 = vmax.f32 %v571_v10, 0.0  ;;  %v2469_v29 = vsel %vm2355_vm7, %v765_v22, 0 }
  0x44   : > { %1880 = vmatmul.msk.bf16.vlgmr.msrb.gmra.mxu1 %vm806_vm0, %v742_v18  ;;  %1894 = vmatmul.msk.bf16.vlgmr.msrb.gmra.mxu2 %vm806_vm0, %v785_v19  ;;  %v711_v18 = vrot.slane %v709_v12, 7  ;;  %v712_v19 = vshll.u32 %v2341_v59, 16 }
  0x45   : > { %1908 = vmatmul.msk.bf16.vlgmr.msrb.gmra.mxu3 %vm806_vm0, %v743_v20 }
  0x46   : > { %v714_v23 = vor.u32 %v712_v19, %v711_v18  ;;  %v766_v38 = vrot.slane %v712_v19, 1 }
  0x48   : > { %v2473_v30 = vsel %vm2350_vm6, 0, %v714_v23  ;;  %v767_v42 = vor.u32 %v766_v38, %v709_v12 }
  0x4a   : > { %v2505_v49 = vsel %vm2355_vm7, %v767_v42, 0 }
  0x4e   : > { %1922 = vmatmul.msk.bf16.vlgmr.msrb.gmra.mxu0 %vm806_vm0, %v650_v6  ;;  %v556_v6 = vmul.f32 %v2250_v5, %v2044_v0 }
  0x50   : > { %v572_v11 = vadd.f32 %v2258_v9, %v556_v6 }
  0x52   : > { %v588_v15 = vmax.f32 %v572_v11, 0.0 }
  0x54   : > { %1881 = vmatmul.msk.bf16.gmra.mxu1 %vm806_vm0, %v743_v20  ;;  %1895 = vmatmul.msk.bf16.gmra.mxu2 %vm806_vm0, %v2373_v27  ;;  %v605_v20 = vpack.c.bf16 %v587_v13, %v587_v13  ;;  %v606_v21 = vpack.c.bf16 %v588_v15, %v588_v15 }
  0x55   : > { %1909 = vmatmul.msk.bf16.gmra.mxu3 %vm806_vm0, %v2377_v28 }
  0x56   : > { %v645_v24 = vunpack.c.l.b16 %v605_v20  ;;  %v646_v25 = vunpack.c.l.b16 %v606_v21 }
  0x58   : > { %v2475_v31 = vpack.c.b16 %v646_v25, %v645_v24 }
  0x5a   : > { %v716_v32 = vshrl.u32 %v2475_v31, 16  ;;  %v719_v40 = vshll.u32 %v2475_v31, 16 }
  0x5c   : > { %v718_v39 = vrot.slane %v716_v32, 7 }
  0x5e   : > { %1923 = vmatmul.msk.bf16.gmra.mxu0 %vm806_vm0, %v2289_v61  ;;  %v721_v45 = vor.u32 %v719_v40, %v718_v39 }
  0x60   : > { %v2509_v50 = vsel %vm2350_vm6, 0, %v721_v45 }
  0x64   : > { %1882 = vmatmul.msk.bf16.gmra.mxu1 %vm806_vm0, %v2377_v28  ;;  %1896 = vmatmul.msk.bf16.gmra.mxu2 %vm806_vm0, %v2390_v35 }
  0x65   : > { %1910 = vmatmul.msk.bf16.gmra.mxu3 %vm806_vm0, %v2394_v36 }
  0x6e   : > { %1924 = vmatmul.msk.bf16.gmra.mxu0 %vm806_vm0, %v2337_v56 }
  0x74   : > { %1883 = vmatmul.msk.bf16.gmra.mxu1 %vm806_vm0, %v2394_v36  ;;  %1897 = vmatmul.msk.bf16.gmra.mxu2 %vm806_vm0, %v2408_v43 }
  0x75   : > { %1911 = vmatmul.msk.bf16.gmra.mxu3 %vm806_vm0, %v2412_v44 }
  0x7e   : > { %1925 = vmatmul.msk.bf16.gmra.mxu0 %vm806_vm0, %v2291_v62 }
  0x84   : > { %1884 = vmatmul.msk.bf16.gmra.mxu1 %vm806_vm0, %v2412_v44  ;;  %1898 = vmatmul.msk.bf16.gmra.mxu2 %vm806_vm0, %v2426_v51 }
  0x85   : > { %1912 = vmatmul.msk.bf16.gmra.mxu3 %vm806_vm0, %v2430_v52 }
  0x8e   : > { %1926 = vmatmul.msk.bf16.gmra.mxu0 %vm806_vm0, %v2339_v57 }
  0x94   : > { %1885 = vmatmul.msk.bf16.gmra.mxu1 %vm806_vm0, %v2430_v52  ;;  %1899 = vmatmul.msk.bf16.gmra.mxu2 %vm806_vm0, %v2447_v7 }
  0x95   : > { %1913 = vmatmul.msk.bf16.gmra.mxu3 %vm806_vm0, %v2451_v8 }
  0x9e   : > { %1927 = vmatmul.msk.bf16.gmra.mxu0 %vm806_vm0, %v2293_v1 }
  0xa1   : > { %v2465_v26 = vpop.f32.mrf.mxu1 }
  0xa4   : > { %1886 = vmatmul.msk.bf16.gmra.mxu1 %vm806_vm0, %v2451_v8  ;;  %1900 = vmatmul.msk.bf16.gmra.mxu2 %vm806_vm0, %v2469_v29 }
  0xa5   : > { %1914 = vmatmul.msk.bf16.gmra.mxu3 %vm806_vm0, %v2473_v30 }
  0xa7   : > { %v2484_v33 = vpop.f32.mrf.mxu2 }
  0xa8   : > { %v2486_v34 = vpop.f32.mrf.mxu3 }
  0xa9   : > { %v2488_v37 = vpop.f32.mrf.mxu1 }
  0xab   : > { %v832_v41 = vpop.f32.mrf.mxu0 }
  0xae   : > { %1928 = vmatmul.msk.bf16.gmra.mxu0 %vm806_vm0, %v2341_v59 }
  0xaf   : > { %v2497_v46 = vpop.f32.mrf.mxu2 }
  0xb0   : > { %v2499_v47 = vpop.f32.mrf.mxu3 }
  0xb1   : > { %v2501_v48 = vpop.f32.mrf.mxu1 }
  0xb3   : > { %v834_v53 = vpop.f32.mrf.mxu0 }
  0xb4   : > { %1887 = vmatmul.msk.bf16.gmra.mxu1 %vm806_vm0, %v2473_v30  ;;  %1901 = vmatmul.msk.bf16.gmra.mxu2 %vm806_vm0, %v2505_v49 }
  0xb5   : > { %1915 = vmatmul.msk.bf16.gmra.mxu3 %vm806_vm0, %v2509_v50 }
  0xb7   : > { %v2517_v54 = vpop.f32.mrf.mxu2 }
  0xb8   : > { %v2519_v55 = vpop.f32.mrf.mxu3 }
  0xb9   : > { %v2521_v58 = vpop.f32.mrf.mxu1 }
  0xbb   : > { %v837_v60 = vpop.f32.mrf.mxu0 }
  0xbe   : > { %1929 = vmatmul.msk.bf16.gmra.mxu0 %vm806_vm0, %v2475_v31 }
  0xbf   : > { %v2525_v63 = vpop.f32.mrf.mxu2 }
  0xc0   : > { %v2527_v0 = vpop.f32.mrf.mxu3 }
  0xc1   : > { %v911_v2 = vpop.f32.mrf.mxu1 }
  0xc2   : > { %v912_v3 = vadd.f32 %v911_v2, %v832_v41 }
  0xc3   : > { %v839_v4 = vpop.f32.mrf.mxu0 }
  0xc4   : > { %1936 = vmatmul.msk.bf16.vlgmr.msra.gmra.mxu1 %vm806_vm0, %v2373_v27  ;;  %1950 = vmatmul.msk.bf16.vlgmr.msra.gmra.mxu2 %vm806_vm0, %v2377_v28 }
  0xc5   : > { %1964 = vmatmul.msk.bf16.vlgmr.msra.gmra.mxu3 %vm806_vm0, %v2289_v61 }
  0xc7   : > { %v993_v6 = vpop.f32.mrf.mxu2 }
  0xc8   : > { %v1033_v10 = vadd.f32 %v993_v6, %v912_v3  ;;  %v1070_v11 = vpop.f32.mrf.mxu3 }
  0xc9   : > { %v913_v12 = vpop.f32.mrf.mxu1 }
  0xca   : > { %v1110_v13 = vadd.f32 %v1070_v11, %v1033_v10  ;;  %v914_v15 = vadd.f32 %v913_v12, %v834_v53 }
  0xcb   : > { %v1146_v17 = vpop.f32.mrf.mxu0 }
  0xcc   : > { %v2535_v18 = vadd.f32 %v1146_v17, %v1110_v13 }
  0xce   : > { %1978 = vmatmul.msk.bf16.vlgmr.msra.gmra.mxu0 %vm806_vm0, %v2390_v35 }
  0xcf   : > { %v995_v19 = vpop.f32.mrf.mxu2 }
  0xd0   : > { %v1034_v27 = vadd.f32 %v995_v19, %v914_v15  ;;  %v1072_v20 = vpop.f32.mrf.mxu3 }
  0xd1   : > { %v916_v21 = vpop.f32.mrf.mxu1 }
  0xd2   : > { %v1111_v28 = vadd.f32 %v1072_v20, %v1034_v27  ;;  %v917_v22 = vadd.f32 %v916_v21, %v837_v60 }
  0xd3   : > { %v1148_v23 = vpop.f32.mrf.mxu0 }
  0xd4   : > { %1937 = vmatmul.msk.bf16.gmra.mxu1 %vm806_vm0, %v2390_v35  ;;  %1951 = vmatmul.msk.bf16.gmra.mxu2 %vm806_vm0, %v2394_v36  ;;  %v2543_v61 = vadd.f32 %v1148_v23, %v1111_v28 }
  0xd5   : > { %1965 = vmatmul.msk.bf16.gmra.mxu3 %vm806_vm0, %v2337_v56 }
  0xd7   : > { %v998_v24 = vpop.f32.mrf.mxu2 }
  0xd8   : > { %v1035_v25 = vadd.f32 %v998_v24, %v917_v22  ;;  %v1075_v38 = vpop.f32.mrf.mxu3 }
  0xd9   : > { %v918_v39 = vpop.f32.mrf.mxu1 }
  0xda   : > { %v1112_v41 = vadd.f32 %v1075_v38, %v1035_v25  ;;  %v919_v42 = vadd.f32 %v918_v39, %v839_v4 }
  0xdb   : > { %v1151_v45 = vpop.f32.mrf.mxu0 }
  0xdc   : > { %v2547_v53 = vadd.f32 %v1151_v45, %v1112_v41 }
  0xde   : > { %1979 = vmatmul.msk.bf16.gmra.mxu0 %vm806_vm0, %v2408_v43 }
  0xdf   : > { %v1000_v35 = vpop.f32.mrf.mxu2 }
  0xe0   : > { %v1036_v36 = vadd.f32 %v1000_v35, %v919_v42  ;;  %v1077_v60 = vpop.f32.mrf.mxu3 }
  0xe1   : > { %v921_v2 = vpop.f32.mrf.mxu1 }
  0xe2   : > { %v1113_v3 = vadd.f32 %v1077_v60, %v1036_v36  ;;  %v922_v56 = vadd.f32 %v921_v2, %v2465_v26 }
  0xe3   : > { %v1153_v6 = vpop.f32.mrf.mxu0 }
  0xe4   : > { %1938 = vmatmul.msk.bf16.gmra.mxu1 %vm806_vm0, %v2408_v43  ;;  %1952 = vmatmul.msk.bf16.gmra.mxu2 %vm806_vm0, %v2412_v44  ;;  %v2556_v4 = vadd.f32 %v1153_v6, %v1113_v3 }
  0xe5   : > { %1966 = vmatmul.msk.bf16.gmra.mxu3 %vm806_vm0, %v2291_v62 }
  0xe7   : > { %v1003_v10 = vpop.f32.mrf.mxu2 }
  0xe8   : > { %v1037_v11 = vadd.f32 %v1003_v10, %v922_v56  ;;  %v1080_v12 = vpop.f32.mrf.mxu3 }
  0xe9   : > { %v923_v13 = vpop.f32.mrf.mxu1 }
  0xea   : > { %v1114_v15 = vadd.f32 %v1080_v12, %v1037_v11  ;;  %v924_v26 = vadd.f32 %v923_v13, %v2488_v37 }
  0xeb   : > { %v1156_v17 = vpop.f32.mrf.mxu0 }
  0xec   : > { %v2566_v43 = vadd.f32 %v1156_v17, %v1114_v15 }
  0xee   : > { %1980 = vmatmul.msk.bf16.gmra.mxu0 %vm806_vm0, %v2426_v51 }
  0xef   : > { %v1005_v62 = vpop.f32.mrf.mxu2 }
  0xf0   : > { %v1038_v44 = vadd.f32 %v1005_v62, %v924_v26  ;;  %v1082_v19 = vpop.f32.mrf.mxu3 }
  0xf1   : > { %v926_v27 = vpop.f32.mrf.mxu1 }
  0xf2   : > { %v1115_v37 = vadd.f32 %v1082_v19, %v1038_v44  ;;  %v927_v20 = vadd.f32 %v926_v27, %v2501_v48  ;;  %v505_v19 = vstv %s504_s20 }
  0xf3   : > { %v1158_v21 = vpop.f32.mrf.mxu0  ;;  %vm506_vm8 = vcmp.eq.s32.totalorder %v505_v19, 1 }
  0xf4   : > { %1939 = vmatmul.msk.bf16.gmra.mxu1 %vm806_vm0, %v2426_v51  ;;  %1953 = vmatmul.msk.bf16.gmra.mxu2 %vm806_vm0, %v2430_v52  ;;  %v2579_v28 = vadd.f32 %v1158_v21, %v1115_v37 }
  0xf5   : > { %1967 = vmatmul.msk.bf16.gmra.mxu3 %vm806_vm0, %v2339_v57 }
  0xf7   : > { %v1008_v22 = vpop.f32.mrf.mxu2 }
  0xf8   : > { %v1039_v23 = vadd.f32 %v1008_v22, %v927_v20  ;;  %v1085_v24 = vpop.f32.mrf.mxu3 }
  0xf9   : > { %v928_v25 = vpop.f32.mrf.mxu1 }
  0xfa   : > { %v1116_v48 = vadd.f32 %v1085_v24, %v1039_v23  ;;  %v929_v38 = vadd.f32 %v928_v25, %v2521_v58  ;;  %v2010_v58 = vld [vmem:[%s444_s16] sm:$0xff]  }
  0xfb   : > { %v1161_v39 = vpop.f32.mrf.mxu0  ;;  %v2011_v2 = vunpack.c.l.bf16 %v2010_v58  ;;  %v2012_v3 = vunpack.c.h.bf16 %v2010_v58 }
  0xfc   : > { %v2585_v41 = vadd.f32 %v1161_v39, %v1116_v48 }
  0xfd   : > { %v498_v13 = vmul.f32 %v2250_v5, %v2012_v3 }
  0xfe   : > { %1981 = vmatmul.msk.bf16.gmra.mxu0 %vm806_vm0, %v2447_v7 }
  0xff   : > { %v1010_v51 = vpop.f32.mrf.mxu2  ;;  %v500_v26 = vadd.f32 %v2258_v9, %v498_v13 }
 0x100   : > { %v1040_v52 = vadd.f32 %v1010_v51, %v929_v38  ;;  %v1087_v42 = vpop.f32.mrf.mxu3 }
 0x101   : > { %v931_v57 = vpop.f32.mrf.mxu1  ;;  %v502_v20 = vmax.f32 %v500_v26, 0.0 }
 0x102   : > { %v1117_v45 = vadd.f32 %v1087_v42, %v1040_v52  ;;  %v932_v60 = vadd.f32 %v931_v57, %v2484_v33 }
 0x103   : > { %v1163_v35 = vpop.f32.mrf.mxu0  ;;  %v508_v23 = vsel %vm506_vm8, %v502_v20, 0.0 }
 0x104   : > { %1940 = vmatmul.msk.bf16.gmra.mxu1 %vm806_vm0, %v2447_v7  ;;  %1954 = vmatmul.msk.bf16.gmra.mxu2 %vm806_vm0, %v2451_v8  ;;  %v2596_v36 = vadd.f32 %v1163_v35, %v1117_v45  ;;  %v497_v7 = vmul.f32 %v2250_v5, %v2011_v2  ;;  %v608_v51 = vpack.c.bf16 %v508_v23, %v508_v23 }
 0x105   : > { %1968 = vmatmul.msk.bf16.gmra.mxu3 %vm806_vm0, %v2293_v1 }
 0x106   : > { %v499_v33 = vadd.f32 %v2258_v9, %v497_v7  ;;  %v648_v57 = vunpack.c.l.b16 %v608_v51 }
 0x107   : > { %v1013_v56 = vpop.f32.mrf.mxu2 }
 0x108   : > { %v1041_v6 = vadd.f32 %v1013_v56, %v932_v60  ;;  %v1090_v10 = vpop.f32.mrf.mxu3  ;;  %v501_v37 = vmax.f32 %v499_v33, 0.0  ;;  %v768_v56 = vrot.slane %v719_v40, 1 }
 0x109   : > { %v933_v11 = vpop.f32.mrf.mxu1 }
 0x10a   : > { %v1118_v12 = vadd.f32 %v1090_v10, %v1041_v6  ;;  %v934_v1 = vadd.f32 %v933_v11, %v2497_v46  ;;  %v507_v22 = vsel %vm506_vm8, %v501_v37, 0.0 }
 0x10b   : > { %v1166_v8 = vpop.f32.mrf.mxu0  ;;  %v607_v39 = vpack.c.bf16 %v507_v22, %v507_v22 }
 0x10c   : > { %v2606_v15 = vadd.f32 %v1166_v8, %v1118_v12  ;;  %v769_v12 = vor.u32 %v768_v56, %v716_v32 }
 0x10e   : > { %1982 = vmatmul.msk.bf16.gmra.mxu0 %vm806_vm0, %v2469_v29 }
 0x10f   : > { %v1015_v17 = vpop.f32.mrf.mxu2 }
 0x110   : > { %v1042_v62 = vadd.f32 %v1015_v17, %v934_v1  ;;  %v1092_v44 = vpop.f32.mrf.mxu3 }
 0x111   : > { %v936_v27 = vpop.f32.mrf.mxu1 }
 0x112   : > { %v1119_v5 = vadd.f32 %v1092_v44, %v1042_v62  ;;  %v937_v9 = vadd.f32 %v936_v27, %v2517_v54 }
 0x113   : > { %v1168_v21 = vpop.f32.mrf.mxu0 }
 0x114   : > { %1941 = vmatmul.msk.bf16.gmra.mxu1 %vm806_vm0, %v2469_v29  ;;  %1955 = vmatmul.msk.bf16.gmra.mxu2 %vm806_vm0, %v2473_v30  ;;  %v2617_v46 = vadd.f32 %v1168_v21, %v1119_v5  ;;  %v647_v30 = vunpack.c.l.b16 %v607_v39 }
 0x115   : > { %1969 = vmatmul.msk.bf16.gmra.mxu3 %vm806_vm0, %v2341_v59 }
 0x116   : > { %v658_v60 = vpack.c.b16 %v648_v57, %v647_v30 }
 0x117   : > { %v1018_v24 = vpop.f32.mrf.mxu2 }
 0x118   : > { %v1043_v25 = vadd.f32 %v1018_v24, %v937_v9  ;;  %v1095_v48 = vpop.f32.mrf.mxu3 }
 0x119   : > { %v938_v38 = vpop.f32.mrf.mxu1 }
 0x11a   : > { %v1120_v52 = vadd.f32 %v1095_v48, %v1043_v25  ;;  %v939_v59 = vadd.f32 %v938_v38, %v2525_v63  ;;  %v723_v63 = vshrl.u32 %v658_v60, 16 }
 0x11b   : > { %v1171_v29 = vpop.f32.mrf.mxu0 }
 0x11c   : > { %v2622_v42 = vadd.f32 %v1171_v29, %v1120_v52  ;;  %v725_v8 = vrot.slane %v723_v63, 7 }
 0x11e   : > { %1983 = vmatmul.msk.bf16.gmra.mxu0 %vm806_vm0, %v2505_v49 }
 0x11f   : > { %v1020_v54 = vpop.f32.mrf.mxu2 }
 0x120   : > { %v1044_v45 = vadd.f32 %v1020_v54, %v939_v59  ;;  %v1097_v35 = vpop.f32.mrf.mxu3 }
 0x121   : > { %v941_v58 = vpop.f32.mrf.mxu1 }
 0x122   : > { %v1121_v2 = vadd.f32 %v1097_v35, %v1044_v45  ;;  %v942_v10 = vadd.f32 %v941_v58, %v2486_v34 }
 0x123   : > { %v1173_v3 = vpop.f32.mrf.mxu0 }
 0x124   : > { %1942 = vmatmul.msk.bf16.gmra.mxu1 %vm806_vm0, %v2505_v49  ;;  %1956 = vmatmul.msk.bf16.gmra.mxu2 %vm806_vm0, %v2509_v50  ;;  %v2633_v6 = vadd.f32 %v1173_v3, %v1121_v2  ;;  %v726_v49 = vshll.u32 %v658_v60, 16  ;;  %v793_v50 = vsel %vm2355_vm7, %v769_v12, 0 }
 0x125   : > { %1970 = vmatmul.msk.bf16.gmra.mxu3 %vm806_vm0, %v2475_v31 }
 0x126   : > { %v728_v17 = vor.u32 %v726_v49, %v725_v8  ;;  %v770_v37 = vrot.slane %v726_v49, 1 }
 0x127   : > { %v1023_v11 = vpop.f32.mrf.mxu2 }
 0x128   : > { %v1045_v7 = vadd.f32 %v1023_v11, %v942_v10  ;;  %v1100_v40 = vpop.f32.mrf.mxu3  ;;  %v751_v19 = vsel %vm2350_vm6, 0, %v728_v17  ;;  %v771_v9 = vor.u32 %v770_v37, %v723_v63 }
 0x129   : > { %v943_v13 = vpop.f32.mrf.mxu1 }
 0x12a   : > { %v1122_v1 = vadd.f32 %v1100_v40, %v1045_v7  ;;  %v944_v34 = vadd.f32 %v943_v13, %v2499_v47  ;;  %v794_v48 = vsel %vm2355_vm7, %v771_v9, 0 }
 0x12b   : > { %v1176_v33 = vpop.f32.mrf.mxu0 }
 0x12c   : > { %v2642_v26 = vadd.f32 %v1176_v33, %v1122_v1 }
 0x12e   : > { %1984 = vmatmul.msk.bf16.gmra.mxu0 %vm806_vm0, %v793_v50 }
 0x12f   : > { %v1025_v62 = vpop.f32.mrf.mxu2 }
 0x130   : > { %v1046_v31 = vadd.f32 %v1025_v62, %v944_v34  ;;  %v1102_v32 = vpop.f32.mrf.mxu3 }
 0x131   : > { %v946_v44 = vpop.f32.mrf.mxu1 }
 0x132   : > { %v1123_v27 = vadd.f32 %v1102_v32, %v1046_v31  ;;  %v947_v47 = vadd.f32 %v946_v44, %v2519_v55 }
 0x133   : > { %v1178_v5 = vpop.f32.mrf.mxu0 }
 0x134   : > { %1943 = vmatmul.msk.bf16.gmra.mxu1 %vm806_vm0, %v793_v50  ;;  %1957 = vmatmul.msk.bf16.gmra.mxu2 %vm806_vm0, %v751_v19  ;;  %v2650_v20 = vadd.f32 %v1178_v5, %v1123_v27 }
 0x135   : > { %1971 = vmatmul.msk.bf16.gmra.mxu3 %vm806_vm0, %v658_v60 }
 0x137   : > { %v1028_v21 = vpop.f32.mrf.mxu2 }
 0x138   : > { %v1047_v22 = vadd.f32 %v1028_v21, %v947_v47  ;;  %v1105_v23 = vpop.f32.mrf.mxu3 }
 0x139   : > { %v948_v24 = vpop.f32.mrf.mxu1 }
 0x13a   : > { %v1124_v14 = vadd.f32 %v1105_v23, %v1047_v22  ;;  %v949_v39 = vadd.f32 %v948_v24, %v2527_v0 }
 0x13b   : > { %v1181_v25 = vpop.f32.mrf.mxu0 }
 0x13c   : > { %v2656_v38 = vadd.f32 %v1181_v25, %v1124_v14 }
 0x13e   : > { %1985 = vmatmul.msk.bf16.gmra.mxu0 %vm806_vm0, %v794_v48 }
 0x13f   : > { %v1030_v51 = vpop.f32.mrf.mxu2 }
 0x140   : > { %v1048_v52 = vadd.f32 %v1030_v51, %v949_v39  ;;  %v1107_v55 = vpop.f32.mrf.mxu3 }
 0x141   : > { %v1223_v29 = vpop.f32.mrf.mxu1 }
 0x142   : > { %v1125_v30 = vadd.f32 %v1107_v55, %v1048_v52  ;;  %v1263_v54 = vadd.f32 %v1223_v29, %v2535_v18 }
 0x143   : > { %v1183_v57 = vpop.f32.mrf.mxu0 }
 0x144   : > { %v2660_v59 = vadd.f32 %v1183_v57, %v1125_v30 }
 0x147   : > { %v1300_v45 = vpop.f32.mrf.mxu2 }
 0x148   : > { %v1340_v16 = vadd.f32 %v1300_v45, %v1263_v54  ;;  %v1376_v35 = vpop.f32.mrf.mxu3 }
 0x149   : > { %v1225_v58 = vpop.f32.mrf.mxu1 }
 0x14a   : > { %v1416_v60 = vadd.f32 %v1376_v35, %v1340_v16  ;;  %v1264_v56 = vadd.f32 %v1225_v58, %v2543_v61 }
 0x14b   : > { %v1453_v2 = vpop.f32.mrf.mxu0 }
 0x14c   : > { %v1493_v3 = vadd.f32 %v1453_v2, %v1416_v60 }
 0x14e   : > { %v1509_v0 = vpack.c.bf16 %v1493_v3, %v1493_v3  ;;  %v1579_v40 = vmul.f32 %v1493_v3, %v1493_v3  ;;  %v1542_v8 = vsel %vm806_vm0, %v1493_v3, 0.0 }
 0x14f   : > { %v1302_v63 = vpop.f32.mrf.mxu2 }
 0x150   : > { %1526 = vst.msk [vmem:[%s2668_s19] sm:$0xf] %vm1525_vm9, %v1509_v0  ;;  %v1341_v18 = vadd.f32 %v1302_v63, %v1264_v56  ;;  %v1378_v10 = vpop.f32.mrf.mxu3  ;;  %v1595_v34 = vsel %vm806_vm0, %v1579_v40, 0.0 }
 0x151   : > { %v1228_v11 = vpop.f32.mrf.mxu1 }
 0x152   : > { %v1417_v12 = vadd.f32 %v1378_v10, %v1341_v18  ;;  %v1265_v50 = vadd.f32 %v1228_v11, %v2547_v53 }
 0x153   : > { %v1455_v7 = vpop.f32.mrf.mxu0 }
 0x154   : > { %v1494_v13 = vadd.f32 %v1455_v7, %v1417_v12 }
 0x156   : > { %v1510_v49 = vpack.c.bf16 %v1494_v13, %v1494_v13  ;;  %v1543_v1 = vsel %vm806_vm0, %v1494_v13, 0.0  ;;  %v1580_v33 = vmul.f32 %v1494_v13, %v1494_v13 }
 0x157   : > { %v1544_v61 = vadd.f32 %v1543_v1, %v1542_v8  ;;  %v1305_v17 = vpop.f32.mrf.mxu2 }
 0x158   : > { %1527 = vst.msk [vmem:[%s2668_s19 + $0x4] sm:$0xf] %vm1525_vm9, %v1510_v49  ;;  %v1596_v62 = vsel %vm806_vm0, %v1580_v33, 0.0  ;;  %v1342_v31 = vadd.f32 %v1305_v17, %v1265_v50  ;;  %v1381_v32 = vpop.f32.mrf.mxu3 }
 0x159   : > { %v1597_v44 = vadd.f32 %v1596_v62, %v1595_v34  ;;  %v1230_v19 = vpop.f32.mrf.mxu1 }
 0x15a   : > { %v1418_v27 = vadd.f32 %v1381_v32, %v1342_v31  ;;  %v1266_v9 = vadd.f32 %v1230_v19, %v2556_v4 }
 0x15b   : > { %v1458_v5 = vpop.f32.mrf.mxu0 }
 0x15c   : > { %v1495_v37 = vadd.f32 %v1458_v5, %v1418_v27 }
 0x15e   : > { %v1511_v47 = vpack.c.bf16 %v1495_v37, %v1495_v37  ;;  %v1545_v21 = vsel %vm806_vm0, %v1495_v37, 0.0  ;;  %v1581_v53 = vmul.f32 %v1495_v37, %v1495_v37 }
 0x15f   : > { %v1546_v22 = vadd.f32 %v1545_v21, %v1544_v61  ;;  %v1307_v23 = vpop.f32.mrf.mxu2 }
 0x160   : > { %1528 = vst.msk [vmem:[%s2668_s19 + $0x8] sm:$0xf] %vm1525_vm9, %v1511_v47  ;;  %v1598_v24 = vsel %vm806_vm0, %v1581_v53, 0.0  ;;  %v1343_v14 = vadd.f32 %v1307_v23, %v1266_v9  ;;  %v1383_v25 = vpop.f32.mrf.mxu3 }
 0x161   : > { %v1599_v48 = vadd.f32 %v1598_v24, %v1597_v44  ;;  %v1233_v39 = vpop.f32.mrf.mxu1 }
 0x162   : > { %v1419_v51 = vadd.f32 %v1383_v25, %v1343_v14  ;;  %v1267_v4 = vadd.f32 %v1233_v39, %v2566_v43 }
 0x163   : > { %v1460_v52 = vpop.f32.mrf.mxu0 }
 0x164   : > { %v1496_v55 = vadd.f32 %v1460_v52, %v1419_v51 }
 0x166   : > { %v1512_v29 = vpack.c.bf16 %v1496_v55, %v1496_v55  ;;  %v1547_v30 = vsel %vm806_vm0, %v1496_v55, 0.0  ;;  %v1582_v57 = vmul.f32 %v1496_v55, %v1496_v55 }
 0x167   : > { %v1548_v54 = vadd.f32 %v1547_v30, %v1546_v22  ;;  %v1310_v45 = vpop.f32.mrf.mxu2 }
 0x168   : > { %1529 = vst.msk [vmem:[%s2668_s19 + $0xc] sm:$0xf] %vm1525_vm9, %v1512_v29  ;;  %v1600_v16 = vsel %vm806_vm0, %v1582_v57, 0.0  ;;  %v1344_v35 = vadd.f32 %v1310_v45, %v1267_v4  ;;  %v1386_v58 = vpop.f32.mrf.mxu3 }
 0x169   : > { %v1601_v60 = vadd.f32 %v1600_v16, %v1599_v48  ;;  %v1235_v2 = vpop.f32.mrf.mxu1 }
 0x16a   : > { %v1420_v3 = vadd.f32 %v1386_v58, %v1344_v35  ;;  %v1268_v43 = vadd.f32 %v1235_v2, %v2579_v28 }
 0x16b   : > { %v1463_v0 = vpop.f32.mrf.mxu0 }
 0x16c   : > { %v1497_v56 = vadd.f32 %v1463_v0, %v1420_v3 }
 0x16e   : > { %v1513_v63 = vpack.c.bf16 %v1497_v56, %v1497_v56  ;;  %v1549_v18 = vsel %vm806_vm0, %v1497_v56, 0.0  ;;  %v1583_v10 = vmul.f32 %v1497_v56, %v1497_v56 }
 0x16f   : > { %v1550_v11 = vadd.f32 %v1549_v18, %v1548_v54  ;;  %v1312_v12 = vpop.f32.mrf.mxu2 }
 0x170   : > { %1530 = vst.msk [vmem:[%s2668_s19 + $0x10] sm:$0xf] %vm1525_vm9, %v1513_v63  ;;  %v1602_v7 = vsel %vm806_vm0, %v1583_v10, 0.0  ;;  %v1345_v40 = vadd.f32 %v1312_v12, %v1268_v43  ;;  %v1388_v13 = vpop.f32.mrf.mxu3 }
 0x171   : > { %v1603_v8 = vadd.f32 %v1602_v7, %v1601_v60  ;;  %v1238_v49 = vpop.f32.mrf.mxu1 }
 0x172   : > { %v1421_v1 = vadd.f32 %v1388_v13, %v1345_v40  ;;  %v1269_v28 = vadd.f32 %v1238_v49, %v2585_v41 }
 0x173   : > { %v1465_v33 = vpop.f32.mrf.mxu0 }
 0x174   : > { %v1498_v50 = vadd.f32 %v1465_v33, %v1421_v1 }
 0x176   : > { %v1514_v61 = vpack.c.bf16 %v1498_v50, %v1498_v50  ;;  %v1551_v17 = vsel %vm806_vm0, %v1498_v50, 0.0  ;;  %v1584_v34 = vmul.f32 %v1498_v50, %v1498_v50 }
 0x177   : > { %v1552_v62 = vadd.f32 %v1551_v17, %v1550_v11  ;;  %v1315_v31 = vpop.f32.mrf.mxu2 }
 0x178   : > { %1531 = vst.msk [vmem:[%s2668_s19 + $0x14] sm:$0xf] %vm1525_vm9, %v1514_v61  ;;  %v1604_v32 = vsel %vm806_vm0, %v1584_v34, 0.0  ;;  %v1346_v44 = vadd.f32 %v1315_v31, %v1269_v28  ;;  %v1391_v19 = vpop.f32.mrf.mxu3 }
 0x179   : > { %v1605_v27 = vadd.f32 %v1604_v32, %v1603_v8  ;;  %v1240_v5 = vpop.f32.mrf.mxu1 }
 0x17a   : > { %v1422_v37 = vadd.f32 %v1391_v19, %v1346_v44  ;;  %v1270_v41 = vadd.f32 %v1240_v5, %v2596_v36 }
 0x17b   : > { %v1468_v47 = vpop.f32.mrf.mxu0 }
 0x17c   : > { %v1499_v21 = vadd.f32 %v1468_v47, %v1422_v37 }
 0x17e   : > { %v1515_v53 = vpack.c.bf16 %v1499_v21, %v1499_v21  ;;  %v1553_v9 = vsel %vm806_vm0, %v1499_v21, 0.0  ;;  %v1585_v22 = vmul.f32 %v1499_v21, %v1499_v21 }
 0x17f   : > { %v1554_v23 = vadd.f32 %v1553_v9, %v1552_v62  ;;  %v1317_v24 = vpop.f32.mrf.mxu2 }
 0x180   : > { %1532 = vst.msk [vmem:[%s2668_s19 + $0x18] sm:$0xf] %vm1525_vm9, %v1515_v53  ;;  %v1606_v14 = vsel %vm806_vm0, %v1585_v22, 0.0  ;;  %v1347_v25 = vadd.f32 %v1317_v24, %v1270_v41  ;;  %v1393_v48 = vpop.f32.mrf.mxu3 }
 0x181   : > { %v1607_v39 = vadd.f32 %v1606_v14, %v1605_v27  ;;  %v1243_v51 = vpop.f32.mrf.mxu1 }
 0x182   : > { %v1423_v52 = vadd.f32 %v1393_v48, %v1347_v25  ;;  %v1271_v36 = vadd.f32 %v1243_v51, %v2606_v15 }
 0x183   : > { %v1470_v55 = vpop.f32.mrf.mxu0 }
 0x184   : > { %v1500_v29 = vadd.f32 %v1470_v55, %v1423_v52 }
 0x186   : > { %v1516_v30 = vpack.c.bf16 %v1500_v29, %v1500_v29  ;;  %v1555_v57 = vsel %vm806_vm0, %v1500_v29, 0.0  ;;  %v1586_v4 = vmul.f32 %v1500_v29, %v1500_v29 }
 0x187   : > { %v1556_v54 = vadd.f32 %v1555_v57, %v1554_v23  ;;  %v1320_v45 = vpop.f32.mrf.mxu2 }
 0x188   : > { %1533 = vst.msk [vmem:[%s2668_s19 + $0x1c] sm:$0xf] %vm1525_vm9, %v1516_v30  ;;  %v1608_v16 = vsel %vm806_vm0, %v1586_v4, 0.0  ;;  %v1348_v35 = vadd.f32 %v1320_v45, %v1271_v36  ;;  %v1396_v58 = vpop.f32.mrf.mxu3 }
 0x189   : > { %v1609_v60 = vadd.f32 %v1608_v16, %v1607_v39  ;;  %v1245_v2 = vpop.f32.mrf.mxu1 }
 0x18a   : > { %v1424_v3 = vadd.f32 %v1396_v58, %v1348_v35  ;;  %v1272_v15 = vadd.f32 %v1245_v2, %v2617_v46 }
 0x18b   : > { %v1473_v0 = vpop.f32.mrf.mxu0 }
 0x18c   : > { %v1501_v56 = vadd.f32 %v1473_v0, %v1424_v3 }
 0x18e   : > { %v1517_v63 = vpack.c.bf16 %v1501_v56, %v1501_v56  ;;  %v1557_v18 = vsel %vm806_vm0, %v1501_v56, 0.0  ;;  %v1587_v10 = vmul.f32 %v1501_v56, %v1501_v56 }
 0x18f   : > { %v1558_v43 = vadd.f32 %v1557_v18, %v1556_v54  ;;  %v1322_v11 = vpop.f32.mrf.mxu2 }
 0x190   : > { %1534 = vst.msk [vmem:[%s2668_s19 + $0x20] sm:$0xf] %vm1525_vm9, %v1517_v63  ;;  %v1610_v12 = vsel %vm806_vm0, %v1587_v10, 0.0  ;;  %v1349_v7 = vadd.f32 %v1322_v11, %v1272_v15  ;;  %v1398_v40 = vpop.f32.mrf.mxu3 }
 0x191   : > { %v1611_v13 = vadd.f32 %v1610_v12, %v1609_v60  ;;  %v1248_v8 = vpop.f32.mrf.mxu1 }
 0x192   : > { %v1425_v49 = vadd.f32 %v1398_v40, %v1349_v7  ;;  %v1273_v46 = vadd.f32 %v1248_v8, %v2622_v42 }
 0x193   : > { %v1475_v1 = vpop.f32.mrf.mxu0 }
 0x194   : > { %v1502_v33 = vadd.f32 %v1475_v1, %v1425_v49 }
 0x196   : > { %v1518_v50 = vpack.c.bf16 %v1502_v33, %v1502_v33  ;;  %v1559_v61 = vsel %vm806_vm0, %v1502_v33, 0.0  ;;  %v1588_v17 = vmul.f32 %v1502_v33, %v1502_v33 }
 0x197   : > { %v1560_v34 = vadd.f32 %v1559_v61, %v1558_v43  ;;  %v1325_v28 = vpop.f32.mrf.mxu2 }
 0x198   : > { %1535 = vst.msk [vmem:[%s2668_s19 + $0x24] sm:$0xf] %vm1525_vm9, %v1518_v50  ;;  %v1612_v62 = vsel %vm806_vm0, %v1588_v17, 0.0  ;;  %v1350_v31 = vadd.f32 %v1325_v28, %v1273_v46  ;;  %v1401_v32 = vpop.f32.mrf.mxu3 }
 0x199   : > { %v1613_v44 = vadd.f32 %v1612_v62, %v1611_v13  ;;  %v1250_v19 = vpop.f32.mrf.mxu1 }
 0x19a   : > { %v1426_v27 = vadd.f32 %v1401_v32, %v1350_v31  ;;  %v1274_v42 = vadd.f32 %v1250_v19, %v2633_v6 }
 0x19b   : > { %v1478_v5 = vpop.f32.mrf.mxu0 }
 0x19c   : > { %v1503_v37 = vadd.f32 %v1478_v5, %v1426_v27 }
 0x19e   : > { %v1519_v47 = vpack.c.bf16 %v1503_v37, %v1503_v37  ;;  %v1561_v21 = vsel %vm806_vm0, %v1503_v37, 0.0  ;;  %v1589_v53 = vmul.f32 %v1503_v37, %v1503_v37 }
 0x19f   : > { %v1562_v9 = vadd.f32 %v1561_v21, %v1560_v34  ;;  %v1327_v22 = vpop.f32.mrf.mxu2 }
 0x1a0   : > { %1536 = vst.msk [vmem:[%s2668_s19 + $0x28] sm:$0xf] %vm1525_vm9, %v1519_v47  ;;  %v1614_v41 = vsel %vm806_vm0, %v1589_v53, 0.0  ;;  %v1351_v23 = vadd.f32 %v1327_v22, %v1274_v42  ;;  %v1403_v24 = vpop.f32.mrf.mxu3 }
 0x1a1   : > { %v1615_v14 = vadd.f32 %v1614_v41, %v1613_v44  ;;  %v1253_v25 = vpop.f32.mrf.mxu1 }
 0x1a2   : > { %v1427_v48 = vadd.f32 %v1403_v24, %v1351_v23  ;;  %v1275_v6 = vadd.f32 %v1253_v25, %v2642_v26 }
 0x1a3   : > { %v1480_v39 = vpop.f32.mrf.mxu0 }
 0x1a4   : > { %v1504_v51 = vadd.f32 %v1480_v39, %v1427_v48 }
 0x1a6   : > { %v1520_v52 = vpack.c.bf16 %v1504_v51, %v1504_v51  ;;  %v1563_v55 = vsel %vm806_vm0, %v1504_v51, 0.0  ;;  %v1590_v29 = vmul.f32 %v1504_v51, %v1504_v51 }
 0x1a7   : > { %v1564_v30 = vadd.f32 %v1563_v55, %v1562_v9  ;;  %v1330_v57 = vpop.f32.mrf.mxu2 }
 0x1a8   : > { %1537 = vst.msk [vmem:[%s2668_s19 + $0x2c] sm:$0xf] %vm1525_vm9, %v1520_v52  ;;  %v1616_v4 = vsel %vm806_vm0, %v1590_v29, 0.0  ;;  %v1352_v36 = vadd.f32 %v1330_v57, %v1275_v6  ;;  %v1406_v54 = vpop.f32.mrf.mxu3 }
 0x1a9   : > { %v1617_v45 = vadd.f32 %v1616_v4, %v1615_v14  ;;  %v1255_v16 = vpop.f32.mrf.mxu1 }
 0x1aa   : > { %v1428_v35 = vadd.f32 %v1406_v54, %v1352_v36  ;;  %v1276_v26 = vadd.f32 %v1255_v16, %v2650_v20 }
 0x1ab   : > { %v1483_v58 = vpop.f32.mrf.mxu0 }
 0x1ac   : > { %v1505_v60 = vadd.f32 %v1483_v58, %v1428_v35 }
 0x1ae   : > { %v1521_v2 = vpack.c.bf16 %v1505_v60, %v1505_v60  ;;  %v1565_v3 = vsel %vm806_vm0, %v1505_v60, 0.0  ;;  %v1591_v0 = vmul.f32 %v1505_v60, %v1505_v60 }
 0x1af   : > { %v1566_v56 = vadd.f32 %v1565_v3, %v1564_v30  ;;  %v1332_v63 = vpop.f32.mrf.mxu2 }
 0x1b0   : > { %1538 = vst.msk [vmem:[%s2668_s19 + $0x30] sm:$0xf] %vm1525_vm9, %v1521_v2  ;;  %v1618_v18 = vsel %vm806_vm0, %v1591_v0, 0.0  ;;  %v1353_v10 = vadd.f32 %v1332_v63, %v1276_v26  ;;  %v1408_v15 = vpop.f32.mrf.mxu3 }
 0x1b1   : > { %v1619_v43 = vadd.f32 %v1618_v18, %v1617_v45  ;;  %v1258_v11 = vpop.f32.mrf.mxu1 }
 0x1b2   : > { %v1429_v12 = vadd.f32 %v1408_v15, %v1353_v10  ;;  %v1277_v20 = vadd.f32 %v1258_v11, %v2656_v38 }
 0x1b3   : > { %v1485_v7 = vpop.f32.mrf.mxu0 }
 0x1b4   : > { %v1506_v40 = vadd.f32 %v1485_v7, %v1429_v12 }
 0x1b6   : > { %v1522_v13 = vpack.c.bf16 %v1506_v40, %v1506_v40  ;;  %v1567_v8 = vsel %vm806_vm0, %v1506_v40, 0.0  ;;  %v1592_v49 = vmul.f32 %v1506_v40, %v1506_v40 }
 0x1b7   : > { %v1568_v1 = vadd.f32 %v1567_v8, %v1566_v56  ;;  %v1335_v33 = vpop.f32.mrf.mxu2 }
 0x1b8   : > { %1539 = vst.msk [vmem:[%s2668_s19 + $0x34] sm:$0xf] %vm1525_vm9, %v1522_v13  ;;  %v1620_v50 = vsel %vm806_vm0, %v1592_v49, 0.0  ;;  %v1354_v61 = vadd.f32 %v1335_v33, %v1277_v20  ;;  %v1411_v17 = vpop.f32.mrf.mxu3 }
 0x1b9   : > { %v1621_v46 = vadd.f32 %v1620_v50, %v1619_v43  ;;  %v1260_v62 = vpop.f32.mrf.mxu1 }
 0x1ba   : > { %v1430_v34 = vadd.f32 %v1411_v17, %v1354_v61  ;;  %v1278_v38 = vadd.f32 %v1260_v62, %v2660_v59 }
 0x1bb   : > { %v1488_v28 = vpop.f32.mrf.mxu0 }
 0x1bc   : > { %v1507_v31 = vadd.f32 %v1488_v28, %v1430_v34 }
 0x1be   : > { %v1523_v32 = vpack.c.bf16 %v1507_v31, %v1507_v31  ;;  %v1569_v44 = vsel %vm806_vm0, %v1507_v31, 0.0  ;;  %v1593_v19 = vmul.f32 %v1507_v31, %v1507_v31 }
 0x1bf   : > { %v1570_v27 = vadd.f32 %v1569_v44, %v1568_v1  ;;  %v1337_v5 = vpop.f32.mrf.mxu2 }
 0x1c0   : > { %1540 = vst.msk [vmem:[%s2668_s19 + $0x38] sm:$0xf] %vm1525_vm9, %v1523_v32  ;;  %v1622_v37 = vsel %vm806_vm0, %v1593_v19, 0.0  ;;  %v1355_v47 = vadd.f32 %v1337_v5, %v1278_v38  ;;  %v1413_v53 = vpop.f32.mrf.mxu3 }
 0x1c1   : > { %v1623_v21 = vadd.f32 %v1622_v37, %v1621_v46 }
 0x1c2   : > { %v1431_v42 = vadd.f32 %v1413_v53, %v1355_v47 }
 0x1c3   : > { %v1490_v9 = vpop.f32.mrf.mxu0 }
 0x1c4   : > { %v1508_v22 = vadd.f32 %v1490_v9, %v1431_v42 }
 0x1c6   : > { %v1524_v41 = vpack.c.bf16 %v1508_v22, %v1508_v22  ;;  %v1571_v23 = vsel %vm806_vm0, %v1508_v22, 0.0  ;;  %v1594_v24 = vmul.f32 %v1508_v22, %v1508_v22 }
 0x1c7   : > { %v1572_v59 = vadd.f32 %v1571_v23, %v1570_v27 }
 0x1c8   : > { %1541 = vst.msk [vmem:[%s2668_s19 + $0x3c] sm:$0xf] %vm1525_vm9, %v1524_v41  ;;  %v1624_v14 = vsel %vm806_vm0, %v1594_v24, 0.0 }
 0x1c9   : > { %v1573_v25 = vrot.slane %v1572_v59, 4  ;;  %v1625_v48 = vadd.f32 %v1624_v14, %v1623_v21 }
 0x1cb   : > { %v1574_v39 = vadd.f32 %v1573_v25, %v1572_v59  ;;  %v1626_v51 = vrot.slane %v1625_v48, 4 }
 0x1cd   : > { %v1575_v52 = vrot.slane %v1574_v39, 2  ;;  %v1627_v55 = vadd.f32 %v1626_v51, %v1625_v48 }
 0x1cf   : > { %v1576_v29 = vadd.f32 %v1575_v52, %v1574_v39  ;;  %v1628_v6 = vrot.slane %v1627_v55, 2 }
 0x1d1   : > { %v1577_v30 = vrot.slane %v1576_v29, 1  ;;  %v1629_v57 = vadd.f32 %v1628_v6, %v1627_v55 }
 0x1d3   : > { %v1630_v4 = vrot.slane %v1629_v57, 1  ;;  %v1578_v36 = vadd.f32 %v1577_v30, %v1576_v29 }
 0x1d5   : > { %v1631_v54 = vadd.f32 %v1630_v4, %v1629_v57 }
 0x1d7   : > { %v1633_v45 = vsel %vm739_vm2, %v1578_v36, %v1631_v54 }
 0x1d8   : > { %1635 = vst.msk [vmem:[%s467_s9] sm:$0x3] %vm1634_vm10, %v1633_v45 }
 0x1d9 PF: > { %s18_s28 = sadd.s32 1, %s2135_s28   ;;  %s2787_s24 = smov %s2127_s26 }
 0x1da   : > { %p15_p12 = scmp.ge.s32.totalorder %s18_s28, 6   ;;  %s2788_s25 = smov %s2131_s27 }
 0x1db   : > { %s2789_s26 = smov %s2792_s29  ;;  %s2790_s27 = smov %s2796_s30 }
 0x1dc   :  { %17 = sbr.rel (!%p15_p12) target bundleno = 3 (0x3), region = 100 }

</bundles_post_ra>
